<compile_context>
chip_gen: v5e
topology: v5e:2x2
jax: 0.10.0
libtpu: 0.0.40
codegen_flags: <defaults>
</compile_context>

<pallas_src>
import jax
import jax.numpy as jnp
from jax.experimental import pallas as pl
from jax.experimental.pallas import tpu as pltpu

# (Cin, Cout, kernel, padding) for the 5 conv layers of `abnormal.sample`.
LAYERS = [
    (100, 256, 3, 1),
    (256, 256, 3, 1),
    (256, 256, 2, 0),
    (256, 512, 2, 0),
    (512, 512, 1, 0),
]
# Layer-1 input channels lane-padded 100 -> 128 (zero channels / zero weight rows).
CIN_PAD = [128, 256, 256, 256, 512]
FC_IN, FC_OUT, FC_OUT_PAD = 512, 100, 128
EPS = 1e-5          # nn.BatchNorm1d default eps
MAX_C = 512


def _geometry(L0):
    geo, lin = [], L0
    for (_cin, cout, k, pad), cpad in zip(LAYERS, CIN_PAD):
        lout = lin + 2 * pad - k + 1
        geo.append(dict(cin=cpad, cout=cout, k=k, pad=pad, lin=lin, lout=lout))
        lin = lout
    assert lin == 1, "input length must give final conv length 1 for .view(-1, 512)"
    return geo


def _build_kernel(N, L0):
    geo = _geometry(L0)
    n_layers = len(geo)

    def kernel(x_ref,
               w1, p1, w2, p2, w3, p3, w4, p4, w5, p5,
               fcw_ref, fcb_ref,
               o_ref, act_ref):
        ws = (w1, w2, w3, w4, w5)          # bf16, (k*Cin_pad, Cout)
        ps = (p1, p2, p3, p4, p5)          # fp32, (2, Cout): rows = [gamma, beta]

        # Zero ONLY the padding row-blocks later layers read (layer-1 padding is
        # already materialized inside x_ref by the wrapper).
        for li in range(1, n_layers):
            g = geo[li]
            if g["pad"]:
                pad, lin, cin = g["pad"], g["lin"], g["cin"]
                zrow = jnp.zeros((pad * N, cin), jnp.float32)
                act_ref[0:pad * N, 0:cin] = zrow
                act_ref[(pad + lin) * N:(2 * pad + lin) * N, 0:cin] = zrow

        z = None
        for li, g in enumerate(geo):
            cin, cout, k, lout = g["cin"], g["cout"], g["k"], g["lout"]
            M = N * lout
            src = x_ref if li == 0 else act_ref

            # im2col: tap kk is one contiguous slice over all batches; row order
            # of the LHS is (output position, batch).  cin is a multiple of 128
            # so the lane-axis concatenate needs no lane shuffles.
            taps = [src[kk * N:(kk + lout) * N, 0:cin] for kk in range(k)]
            lhs = taps[0] if k == 1 else jnp.concatenate(taps, axis=-1)   # (M, k*cin)

            # One MXU matmul per layer: bf16 operands, fp32 accumulation.
            y = jnp.dot(lhs.astype(jnp.bfloat16), ws[li][...],
                        preferred_element_type=jnp.float32)              # (M, cout)

            # BatchNorm1d (training-mode batch statistics) + ReLU in fp32.
            # Conv bias omitted: the mean subtraction cancels it exactly.
            inv_m = 1.0 / M
            s1 = jnp.sum(y, axis=0, keepdims=True)
            s2 = jnp.sum(y * y, axis=0, keepdims=True)
            mean = s1 * inv_m
            var = jnp.maximum(s2 * inv_m - mean * mean, 0.0)
            scale = jax.lax.rsqrt(var + EPS) * ps[li][0:1, :]
            z = jnp.maximum((y - mean) * scale + ps[li][1:2, :], 0.0)     # (M, cout)

            if li + 1 < n_layers:
                # Stage z as the next layer's input: ONE store, honouring the
                # next layer's padding offset.
                npad = geo[li + 1]["pad"]
                act_ref[npad * N:(npad + lout) * N, 0:cout] = z

        # Final conv length is 1, so z is (N, 512) == torch's out.view(-1, 512).
        yfc = jnp.dot(z.astype(jnp.bfloat16), fcw_ref[...],
                      preferred_element_type=jnp.float32) + fcb_ref[...]
        # Sigmoid: exp + EUP reciprocal; lane-dense 128-wide store.
        o_ref[...] = pl.reciprocal(1.0 + jnp.exp(-yfc), approx=True)

    return kernel


def _prepare_params(conv_params, fc_params):
    """One-time conversion of PyTorch-layout parameters into kernel layout."""
    flat = []
    for (cin, cout, k, _pad), cpad, p in zip(LAYERS, CIN_PAD, conv_params):
        w = jnp.transpose(p["w"].astype(jnp.float32), (2, 1, 0))        # (k, Cin, Cout)
        if cpad != cin:
            w = jnp.pad(w, ((0, 0), (0, cpad - cin), (0, 0)))           # zero channel rows
        flat.append(jnp.reshape(w, (k * cpad, cout)).astype(jnp.bfloat16))
        # Conv bias intentionally dropped: training-mode BatchNorm cancels it.
        flat.append(jnp.stack([p["gamma"], p["beta"]]).astype(jnp.float32))
    fcw = jnp.pad(jnp.transpose(fc_params["w"].astype(jnp.float32)),    # (512, 100)
                  ((0, 0), (0, FC_OUT_PAD - FC_OUT))).astype(jnp.bfloat16)  # (512, 128)
    fcb = jnp.pad(fc_params["b"].astype(jnp.float32),
                  (0, FC_OUT_PAD - FC_OUT)).reshape(1, FC_OUT_PAD)
    flat += [fcw, fcb]
    return tuple(flat)


@jax.jit
def abnormal_forward(x_ncl, kernel_params):
    """x_ncl: (N, 100, L) float32, PyTorch NCL layout.  Returns (N, 100)."""
    N, C, L = x_ncl.shape
    geo = _geometry(L)
    pad0 = geo[0]["pad"]

    # Kernel activation layout: rows ordered (position, batch), channels on lanes.
    # Layer-1 length padding and 100->128 channel padding happen here (fused into
    # the XLA transpose), so the kernel reads x directly as the layer-1 input.
    x_lnc = jnp.transpose(x_ncl.astype(jnp.float32), (2, 0, 1))          # (L, N, 100)
    x_lnc = jnp.pad(x_lnc, ((pad0, pad0), (0, 0), (0, CIN_PAD[0] - C)))  # (L+2, N, 128)
    x2 = jnp.reshape(x_lnc, ((L + 2 * pad0) * N, CIN_PAD[0]))

    act_rows = max(g["lin"] + 2 * g["pad"] for g in geo[1:]) * N

    out = pl.pallas_call(
        _build_kernel(N, L),
        out_shape=jax.ShapeDtypeStruct((N, FC_OUT_PAD), jnp.float32),
        in_specs=[pl.BlockSpec(memory_space=pltpu.MemorySpace.VMEM)]
                 * (1 + len(kernel_params)),
        out_specs=pl.BlockSpec(memory_space=pltpu.MemorySpace.VMEM),
        scratch_shapes=[
            pltpu.VMEM((act_rows, MAX_C), jnp.float32),   # (pos*batch, C) activations
        ],
        compiler_params=pltpu.CompilerParams(vmem_limit_bytes=32 * 1024 * 1024),
    )(x2, *kernel_params)
    return out[:, :FC_OUT]


def init_params(key):
    conv = []
    for (cin, cout, k, _pad) in LAYERS:
        key, kw, kb, kg, kt = jax.random.split(key, 5)
        conv.append(dict(
            w=jax.random.normal(kw, (cout, cin, k), jnp.float32) * 0.05,   # torch layout
            b=jax.random.normal(kb, (cout,), jnp.float32) * 0.01,          # canceled by BN
            gamma=1.0 + 0.1 * jax.random.normal(kg, (cout,), jnp.float32),
            beta=0.1 * jax.random.normal(kt, (cout,), jnp.float32),
        ))
    key, kfw, kfb = jax.random.split(key, 3)
    fc = dict(
        w=jax.random.normal(kfw, (FC_OUT, FC_IN), jnp.float32) * 0.05,     # torch layout
        b=jax.random.normal(kfb, (FC_OUT,), jnp.float32) * 0.01,
    )
    return conv, fc


if __name__ == "__main__":
    key = jax.random.PRNGKey(0)
    key, kx, kp = jax.random.split(key, 3)

    # batch=2, 100 input channels, length=3: the two unpadded k=2 convs shrink
    # the length to 1, so out.view(-1, 512) is (2, 512) and the fc gives (2, 100).
    x = jax.random.normal(kx, (2, 100, 3), jnp.float32)

    conv_params, fc_params = init_params(kp)
    kernel_params = _prepare_params(conv_params, fc_params)   # one-time layout prep

    # NOTE: BatchNorm uses training-mode batch statistics (fresh nn.Module
    # default); eval-mode running-stat buffers are not modeled.
    out = abnormal_forward(x, kernel_params)
    out = jax.block_until_ready(out)

    assert out.shape == (2, 100), out.shape
    assert bool(jnp.all(jnp.isfinite(out)))
    print("KERNEL_OK")
</pallas_src>

<mosaic_0001>
module attributes {stable_mosaic.version = 11 : i64} {
  func.func @kernel(%arg0: memref<10x128xf32, #tpu.memory_space<vmem>>, %arg1: memref<384x256xbf16, #tpu.memory_space<vmem>>, %arg2: memref<2x256xf32, #tpu.memory_space<vmem>>, %arg3: memref<768x256xbf16, #tpu.memory_space<vmem>>, %arg4: memref<2x256xf32, #tpu.memory_space<vmem>>, %arg5: memref<512x256xbf16, #tpu.memory_space<vmem>>, %arg6: memref<2x256xf32, #tpu.memory_space<vmem>>, %arg7: memref<512x512xbf16, #tpu.memory_space<vmem>>, %arg8: memref<2x512xf32, #tpu.memory_space<vmem>>, %arg9: memref<512x512xbf16, #tpu.memory_space<vmem>>, %arg10: memref<2x512xf32, #tpu.memory_space<vmem>>, %arg11: memref<512x128xbf16, #tpu.memory_space<vmem>>, %arg12: memref<1x128xf32, #tpu.memory_space<vmem>>, %arg13: memref<2x128xf32, #tpu.memory_space<vmem>>, %arg14: memref<10x512xf32, #tpu.memory_space<vmem>>) attributes {dimension_semantics = [], scalar_prefetch = 0 : i64, scratch_operands = 1 : i64, tpu.core_type = #tpu.core_type<tc>} {
    %cst = arith.constant 0.000000e+00 : f32
    %0 = vector.broadcast %cst : f32 to vector<2x256xf32>
    %c0 = arith.constant 0 : index
    %c0_0 = arith.constant 0 : index
    %1 = vector.load %arg14[%c0, %c0_0] : memref<10x512xf32, #tpu.memory_space<vmem>>, vector<2x256xf32>
    tpu.vector_store %arg14[%c0, %c0_0], %0 {strides = array<i32>} : memref<10x512xf32, #tpu.memory_space<vmem>>, vector<2x256xf32>,
    %c8 = arith.constant 8 : index
    %c0_1 = arith.constant 0 : index
    %2 = vector.load %arg14[%c8, %c0_1] : memref<10x512xf32, #tpu.memory_space<vmem>>, vector<2x256xf32>
    tpu.vector_store %arg14[%c8, %c0_1], %0 {strides = array<i32>} : memref<10x512xf32, #tpu.memory_space<vmem>>, vector<2x256xf32>,
    %c0_2 = arith.constant 0 : index
    %c0_3 = arith.constant 0 : index
    %3 = vector.load %arg0[%c0_2, %c0_3] : memref<10x128xf32, #tpu.memory_space<vmem>>, vector<6x128xf32>
    %c2 = arith.constant 2 : index
    %c0_4 = arith.constant 0 : index
    %4 = vector.load %arg0[%c2, %c0_4] : memref<10x128xf32, #tpu.memory_space<vmem>>, vector<6x128xf32>
    %c4 = arith.constant 4 : index
    %c0_5 = arith.constant 0 : index
    %5 = vector.load %arg0[%c4, %c0_5] : memref<10x128xf32, #tpu.memory_space<vmem>>, vector<6x128xf32>
    %6 = tpu.concatenate %3, %4, %5 in 1 : vector<6x128xf32>, vector<6x128xf32>, vector<6x128xf32> -> vector<6x384xf32>
    %7 = arith.truncf %6 : vector<6x384xf32> to vector<6x384xbf16>
    %c0_6 = arith.constant 0 : index
    %c0_7 = arith.constant 0 : index
    %8 = vector.load %arg1[%c0_6, %c0_7] : memref<384x256xbf16, #tpu.memory_space<vmem>>, vector<384x256xbf16>
    %cst_8 = arith.constant dense<0.000000e+00> : vector<6x256xf32>
    %9 = tpu.matmul %7, %8, %cst_8 {dimension_numbers = #tpu.dot_dimension_numbers<[1], [0], [0], [1], [0, 0, 1, 1], [], []>} : vector<6x384xbf16>, vector<384x256xbf16>, vector<6x256xf32> -> vector<6x256xf32>
    %cst_9 = arith.constant dense<0.000000e+00> : vector<256xf32>
    %10 = vector.multi_reduction <add>, %9, %cst_9 [0] : vector<6x256xf32> to vector<256xf32>
    %11 = vector.shape_cast %10 : vector<256xf32> to vector<1x256xf32>
    %12 = arith.mulf %9, %9 : vector<6x256xf32>
    %cst_10 = arith.constant dense<0.000000e+00> : vector<256xf32>
    %13 = vector.multi_reduction <add>, %12, %cst_10 [0] : vector<6x256xf32> to vector<256xf32>
    %14 = vector.shape_cast %13 : vector<256xf32> to vector<1x256xf32>
    %cst_11 = arith.constant 0.166666672 : f32
    %15 = vector.broadcast %cst_11 : f32 to vector<1x256xf32>
    %16 = arith.mulf %11, %15 : vector<1x256xf32>
    %cst_12 = arith.constant 0.166666672 : f32
    %17 = vector.broadcast %cst_12 : f32 to vector<1x256xf32>
    %18 = arith.mulf %14, %17 : vector<1x256xf32>
    %19 = arith.mulf %16, %16 : vector<1x256xf32>
    %20 = arith.subf %18, %19 : vector<1x256xf32>
    %cst_13 = arith.constant 0.000000e+00 : f32
    %21 = vector.broadcast %cst_13 : f32 to vector<1x256xf32>
    %22 = arith.maximumf %20, %21 : vector<1x256xf32>
    %cst_14 = arith.constant 9.99999974E-6 : f32
    %23 = vector.broadcast %cst_14 : f32 to vector<1x256xf32>
    %24 = arith.addf %22, %23 : vector<1x256xf32>
    %25 = math.rsqrt %24 : vector<1x256xf32>
    %c0_15 = arith.constant 0 : index
    %c0_16 = arith.constant 0 : index
    %26 = vector.load %arg2[%c0_15, %c0_16] : memref<2x256xf32, #tpu.memory_space<vmem>>, vector<1x256xf32>
    %27 = arith.mulf %25, %26 : vector<1x256xf32>
    %28 = vector.broadcast %16 : vector<1x256xf32> to vector<6x256xf32>
    %29 = arith.subf %9, %28 : vector<6x256xf32>
    %30 = vector.broadcast %27 : vector<1x256xf32> to vector<6x256xf32>
    %31 = arith.mulf %29, %30 : vector<6x256xf32>
    %c1 = arith.constant 1 : index
    %c0_17 = arith.constant 0 : index
    %32 = vector.load %arg2[%c1, %c0_17] : memref<2x256xf32, #tpu.memory_space<vmem>>, vector<1x256xf32>
    %33 = vector.broadcast %32 : vector<1x256xf32> to vector<6x256xf32>
    %34 = arith.addf %31, %33 : vector<6x256xf32>
    %cst_18 = arith.constant 0.000000e+00 : f32
    %35 = vector.broadcast %cst_18 : f32 to vector<6x256xf32>
    %36 = arith.maximumf %34, %35 : vector<6x256xf32>
    %c2_19 = arith.constant 2 : index
    %c0_20 = arith.constant 0 : index
    %37 = vector.load %arg14[%c2_19, %c0_20] : memref<10x512xf32, #tpu.memory_space<vmem>>, vector<6x256xf32>
    tpu.vector_store %arg14[%c2_19, %c0_20], %36 {strides = array<i32>} : memref<10x512xf32, #tpu.memory_space<vmem>>, vector<6x256xf32>,
    %c0_21 = arith.constant 0 : index
    %c0_22 = arith.constant 0 : index
    %38 = vector.load %arg14[%c0_21, %c0_22] : memref<10x512xf32, #tpu.memory_space<vmem>>, vector<6x256xf32>
    %c2_23 = arith.constant 2 : index
    %c0_24 = arith.constant 0 : index
    %39 = vector.load %arg14[%c2_23, %c0_24] : memref<10x512xf32, #tpu.memory_space<vmem>>, vector<6x256xf32>
    %c4_25 = arith.constant 4 : index
    %c0_26 = arith.constant 0 : index
    %40 = vector.load %arg14[%c4_25, %c0_26] : memref<10x512xf32, #tpu.memory_space<vmem>>, vector<6x256xf32>
    %41 = tpu.concatenate %38, %39, %40 in 1 : vector<6x256xf32>, vector<6x256xf32>, vector<6x256xf32> -> vector<6x768xf32>
    %42 = arith.truncf %41 : vector<6x768xf32> to vector<6x768xbf16>
    %c0_27 = arith.constant 0 : index
    %c0_28 = arith.constant 0 : index
    %43 = vector.load %arg3[%c0_27, %c0_28] : memref<768x256xbf16, #tpu.memory_space<vmem>>, vector<768x256xbf16>
    %cst_29 = arith.constant dense<0.000000e+00> : vector<6x256xf32>
    %44 = tpu.matmul %42, %43, %cst_29 {dimension_numbers = #tpu.dot_dimension_numbers<[1], [0], [0], [1], [0, 0, 1, 1], [], []>} : vector<6x768xbf16>, vector<768x256xbf16>, vector<6x256xf32> -> vector<6x256xf32>
    %cst_30 = arith.constant dense<0.000000e+00> : vector<256xf32>
    %45 = vector.multi_reduction <add>, %44, %cst_30 [0] : vector<6x256xf32> to vector<256xf32>
    %46 = vector.shape_cast %45 : vector<256xf32> to vector<1x256xf32>
    %47 = arith.mulf %44, %44 : vector<6x256xf32>
    %cst_31 = arith.constant dense<0.000000e+00> : vector<256xf32>
    %48 = vector.multi_reduction <add>, %47, %cst_31 [0] : vector<6x256xf32> to vector<256xf32>
    %49 = vector.shape_cast %48 : vector<256xf32> to vector<1x256xf32>
    %cst_32 = arith.constant 0.166666672 : f32
    %50 = vector.broadcast %cst_32 : f32 to vector<1x256xf32>
    %51 = arith.mulf %46, %50 : vector<1x256xf32>
    %cst_33 = arith.constant 0.166666672 : f32
    %52 = vector.broadcast %cst_33 : f32 to vector<1x256xf32>
    %53 = arith.mulf %49, %52 : vector<1x256xf32>
    %54 = arith.mulf %51, %51 : vector<1x256xf32>
    %55 = arith.subf %53, %54 : vector<1x256xf32>
    %cst_34 = arith.constant 0.000000e+00 : f32
    %56 = vector.broadcast %cst_34 : f32 to vector<1x256xf32>
    %57 = arith.maximumf %55, %56 : vector<1x256xf32>
    %cst_35 = arith.constant 9.99999974E-6 : f32
    %58 = vector.broadcast %cst_35 : f32 to vector<1x256xf32>
    %59 = arith.addf %57, %58 : vector<1x256xf32>
    %60 = math.rsqrt %59 : vector<1x256xf32>
    %c0_36 = arith.constant 0 : index
    %c0_37 = arith.constant 0 : index
    %61 = vector.load %arg4[%c0_36, %c0_37] : memref<2x256xf32, #tpu.memory_space<vmem>>, vector<1x256xf32>
    %62 = arith.mulf %60, %61 : vector<1x256xf32>
    %63 = vector.broadcast %51 : vector<1x256xf32> to vector<6x256xf32>
    %64 = arith.subf %44, %63 : vector<6x256xf32>
    %65 = vector.broadcast %62 : vector<1x256xf32> to vector<6x256xf32>
    %66 = arith.mulf %64, %65 : vector<6x256xf32>
    %c1_38 = arith.constant 1 : index
    %c0_39 = arith.constant 0 : index
    %67 = vector.load %arg4[%c1_38, %c0_39] : memref<2x256xf32, #tpu.memory_space<vmem>>, vector<1x256xf32>
    %68 = vector.broadcast %67 : vector<1x256xf32> to vector<6x256xf32>
    %69 = arith.addf %66, %68 : vector<6x256xf32>
    %cst_40 = arith.constant 0.000000e+00 : f32
    %70 = vector.broadcast %cst_40 : f32 to vector<6x256xf32>
    %71 = arith.maximumf %69, %70 : vector<6x256xf32>
    %c0_41 = arith.constant 0 : index
    %c0_42 = arith.constant 0 : index
    %72 = vector.load %arg14[%c0_41, %c0_42] : memref<10x512xf32, #tpu.memory_space<vmem>>, vector<6x256xf32>
    tpu.vector_store %arg14[%c0_41, %c0_42], %71 {strides = array<i32>} : memref<10x512xf32, #tpu.memory_space<vmem>>, vector<6x256xf32>,
    %c0_43 = arith.constant 0 : index
    %c0_44 = arith.constant 0 : index
    %73 = vector.load %arg14[%c0_43, %c0_44] : memref<10x512xf32, #tpu.memory_space<vmem>>, vector<4x256xf32>
    %c2_45 = arith.constant 2 : index
    %c0_46 = arith.constant 0 : index
    %74 = vector.load %arg14[%c2_45, %c0_46] : memref<10x512xf32, #tpu.memory_space<vmem>>, vector<4x256xf32>
    %75 = tpu.concatenate %73, %74 in 1 : vector<4x256xf32>, vector<4x256xf32> -> vector<4x512xf32>
    %76 = arith.truncf %75 : vector<4x512xf32> to vector<4x512xbf16>
    %c0_47 = arith.constant 0 : index
    %c0_48 = arith.constant 0 : index
    %77 = vector.load %arg5[%c0_47, %c0_48] : memref<512x256xbf16, #tpu.memory_space<vmem>>, vector<512x256xbf16>
    %cst_49 = arith.constant dense<0.000000e+00> : vector<4x256xf32>
    %78 = tpu.matmul %76, %77, %cst_49 {dimension_numbers = #tpu.dot_dimension_numbers<[1], [0], [0], [1], [0, 0, 1, 1], [], []>} : vector<4x512xbf16>, vector<512x256xbf16>, vector<4x256xf32> -> vector<4x256xf32>
    %cst_50 = arith.constant dense<0.000000e+00> : vector<256xf32>
    %79 = vector.multi_reduction <add>, %78, %cst_50 [0] : vector<4x256xf32> to vector<256xf32>
    %80 = vector.shape_cast %79 : vector<256xf32> to vector<1x256xf32>
    %81 = arith.mulf %78, %78 : vector<4x256xf32>
    %cst_51 = arith.constant dense<0.000000e+00> : vector<256xf32>
    %82 = vector.multi_reduction <add>, %81, %cst_51 [0] : vector<4x256xf32> to vector<256xf32>
    %83 = vector.shape_cast %82 : vector<256xf32> to vector<1x256xf32>
    %cst_52 = arith.constant 2.500000e-01 : f32
    %84 = vector.broadcast %cst_52 : f32 to vector<1x256xf32>
    %85 = arith.mulf %80, %84 : vector<1x256xf32>
    %cst_53 = arith.constant 2.500000e-01 : f32
    %86 = vector.broadcast %cst_53 : f32 to vector<1x256xf32>
    %87 = arith.mulf %83, %86 : vector<1x256xf32>
    %88 = arith.mulf %85, %85 : vector<1x256xf32>
    %89 = arith.subf %87, %88 : vector<1x256xf32>
    %cst_54 = arith.constant 0.000000e+00 : f32
    %90 = vector.broadcast %cst_54 : f32 to vector<1x256xf32>
    %91 = arith.maximumf %89, %90 : vector<1x256xf32>
    %cst_55 = arith.constant 9.99999974E-6 : f32
    %92 = vector.broadcast %cst_55 : f32 to vector<1x256xf32>
    %93 = arith.addf %91, %92 : vector<1x256xf32>
    %94 = math.rsqrt %93 : vector<1x256xf32>
    %c0_56 = arith.constant 0 : index
    %c0_57 = arith.constant 0 : index
    %95 = vector.load %arg6[%c0_56, %c0_57] : memref<2x256xf32, #tpu.memory_space<vmem>>, vector<1x256xf32>
    %96 = arith.mulf %94, %95 : vector<1x256xf32>
    %97 = vector.broadcast %85 : vector<1x256xf32> to vector<4x256xf32>
    %98 = arith.subf %78, %97 : vector<4x256xf32>
    %99 = vector.broadcast %96 : vector<1x256xf32> to vector<4x256xf32>
    %100 = arith.mulf %98, %99 : vector<4x256xf32>
    %c1_58 = arith.constant 1 : index
    %c0_59 = arith.constant 0 : index
    %101 = vector.load %arg6[%c1_58, %c0_59] : memref<2x256xf32, #tpu.memory_space<vmem>>, vector<1x256xf32>
    %102 = vector.broadcast %101 : vector<1x256xf32> to vector<4x256xf32>
    %103 = arith.addf %100, %102 : vector<4x256xf32>
    %cst_60 = arith.constant 0.000000e+00 : f32
    %104 = vector.broadcast %cst_60 : f32 to vector<4x256xf32>
    %105 = arith.maximumf %103, %104 : vector<4x256xf32>
    %c0_61 = arith.constant 0 : index
    %c0_62 = arith.constant 0 : index
    %106 = vector.load %arg14[%c0_61, %c0_62] : memref<10x512xf32, #tpu.memory_space<vmem>>, vector<4x256xf32>
    tpu.vector_store %arg14[%c0_61, %c0_62], %105 {strides = array<i32>} : memref<10x512xf32, #tpu.memory_space<vmem>>, vector<4x256xf32>,
    %c0_63 = arith.constant 0 : index
    %c0_64 = arith.constant 0 : index
    %107 = vector.load %arg14[%c0_63, %c0_64] : memref<10x512xf32, #tpu.memory_space<vmem>>, vector<2x256xf32>
    %c2_65 = arith.constant 2 : index
    %c0_66 = arith.constant 0 : index
    %108 = vector.load %arg14[%c2_65, %c0_66] : memref<10x512xf32, #tpu.memory_space<vmem>>, vector<2x256xf32>
    %109 = tpu.concatenate %107, %108 in 1 : vector<2x256xf32>, vector<2x256xf32> -> vector<2x512xf32>
    %110 = arith.truncf %109 : vector<2x512xf32> to vector<2x512xbf16>
    %c0_67 = arith.constant 0 : index
    %c0_68 = arith.constant 0 : index
    %111 = vector.load %arg7[%c0_67, %c0_68] : memref<512x512xbf16, #tpu.memory_space<vmem>>, vector<512x512xbf16>
    %cst_69 = arith.constant dense<0.000000e+00> : vector<2x512xf32>
    %112 = tpu.matmul %110, %111, %cst_69 {dimension_numbers = #tpu.dot_dimension_numbers<[1], [0], [0], [1], [0, 0, 1, 1], [], []>} : vector<2x512xbf16>, vector<512x512xbf16>, vector<2x512xf32> -> vector<2x512xf32>
    %cst_70 = arith.constant dense<0.000000e+00> : vector<512xf32>
    %113 = vector.multi_reduction <add>, %112, %cst_70 [0] : vector<2x512xf32> to vector<512xf32>
    %114 = vector.shape_cast %113 : vector<512xf32> to vector<1x512xf32>
    %115 = arith.mulf %112, %112 : vector<2x512xf32>
    %cst_71 = arith.constant dense<0.000000e+00> : vector<512xf32>
    %116 = vector.multi_reduction <add>, %115, %cst_71 [0] : vector<2x512xf32> to vector<512xf32>
    %117 = vector.shape_cast %116 : vector<512xf32> to vector<1x512xf32>
    %cst_72 = arith.constant 5.000000e-01 : f32
    %118 = vector.broadcast %cst_72 : f32 to vector<1x512xf32>
    %119 = arith.mulf %114, %118 : vector<1x512xf32>
    %cst_73 = arith.constant 5.000000e-01 : f32
    %120 = vector.broadcast %cst_73 : f32 to vector<1x512xf32>
    %121 = arith.mulf %117, %120 : vector<1x512xf32>
    %122 = arith.mulf %119, %119 : vector<1x512xf32>
    %123 = arith.subf %121, %122 : vector<1x512xf32>
    %cst_74 = arith.constant 0.000000e+00 : f32
    %124 = vector.broadcast %cst_74 : f32 to vector<1x512xf32>
    %125 = arith.maximumf %123, %124 : vector<1x512xf32>
    %cst_75 = arith.constant 9.99999974E-6 : f32
    %126 = vector.broadcast %cst_75 : f32 to vector<1x512xf32>
    %127 = arith.addf %125, %126 : vector<1x512xf32>
    %128 = math.rsqrt %127 : vector<1x512xf32>
    %c0_76 = arith.constant 0 : index
    %c0_77 = arith.constant 0 : index
    %129 = vector.load %arg8[%c0_76, %c0_77] : memref<2x512xf32, #tpu.memory_space<vmem>>, vector<1x512xf32>
    %130 = arith.mulf %128, %129 : vector<1x512xf32>
    %131 = vector.broadcast %119 : vector<1x512xf32> to vector<2x512xf32>
    %132 = arith.subf %112, %131 : vector<2x512xf32>
    %133 = vector.broadcast %130 : vector<1x512xf32> to vector<2x512xf32>
    %134 = arith.mulf %132, %133 : vector<2x512xf32>
    %c1_78 = arith.constant 1 : index
    %c0_79 = arith.constant 0 : index
    %135 = vector.load %arg8[%c1_78, %c0_79] : memref<2x512xf32, #tpu.memory_space<vmem>>, vector<1x512xf32>
    %136 = vector.broadcast %135 : vector<1x512xf32> to vector<2x512xf32>
    %137 = arith.addf %134, %136 : vector<2x512xf32>
    %cst_80 = arith.constant 0.000000e+00 : f32
    %138 = vector.broadcast %cst_80 : f32 to vector<2x512xf32>
    %139 = arith.maximumf %137, %138 : vector<2x512xf32>
    %c0_81 = arith.constant 0 : index
    %c0_82 = arith.constant 0 : index
    %140 = vector.load %arg14[%c0_81, %c0_82] : memref<10x512xf32, #tpu.memory_space<vmem>>, vector<2x512xf32>
    tpu.vector_store %arg14[%c0_81, %c0_82], %139 {strides = array<i32>} : memref<10x512xf32, #tpu.memory_space<vmem>>, vector<2x512xf32>,
    %c0_83 = arith.constant 0 : index
    %c0_84 = arith.constant 0 : index
    %141 = vector.load %arg14[%c0_83, %c0_84] : memref<10x512xf32, #tpu.memory_space<vmem>>, vector<2x512xf32>
    %142 = arith.truncf %141 : vector<2x512xf32> to vector<2x512xbf16>
    %c0_85 = arith.constant 0 : index
    %c0_86 = arith.constant 0 : index
    %143 = vector.load %arg9[%c0_85, %c0_86] : memref<512x512xbf16, #tpu.memory_space<vmem>>, vector<512x512xbf16>
    %cst_87 = arith.constant dense<0.000000e+00> : vector<2x512xf32>
    %144 = tpu.matmul %142, %143, %cst_87 {dimension_numbers = #tpu.dot_dimension_numbers<[1], [0], [0], [1], [0, 0, 1, 1], [], []>} : vector<2x512xbf16>, vector<512x512xbf16>, vector<2x512xf32> -> vector<2x512xf32>
    %cst_88 = arith.constant dense<0.000000e+00> : vector<512xf32>
    %145 = vector.multi_reduction <add>, %144, %cst_88 [0] : vector<2x512xf32> to vector<512xf32>
    %146 = vector.shape_cast %145 : vector<512xf32> to vector<1x512xf32>
    %147 = arith.mulf %144, %144 : vector<2x512xf32>
    %cst_89 = arith.constant dense<0.000000e+00> : vector<512xf32>
    %148 = vector.multi_reduction <add>, %147, %cst_89 [0] : vector<2x512xf32> to vector<512xf32>
    %149 = vector.shape_cast %148 : vector<512xf32> to vector<1x512xf32>
    %cst_90 = arith.constant 5.000000e-01 : f32
    %150 = vector.broadcast %cst_90 : f32 to vector<1x512xf32>
    %151 = arith.mulf %146, %150 : vector<1x512xf32>
    %cst_91 = arith.constant 5.000000e-01 : f32
    %152 = vector.broadcast %cst_91 : f32 to vector<1x512xf32>
    %153 = arith.mulf %149, %152 : vector<1x512xf32>
    %154 = arith.mulf %151, %151 : vector<1x512xf32>
    %155 = arith.subf %153, %154 : vector<1x512xf32>
    %cst_92 = arith.constant 0.000000e+00 : f32
    %156 = vector.broadcast %cst_92 : f32 to vector<1x512xf32>
    %157 = arith.maximumf %155, %156 : vector<1x512xf32>
    %cst_93 = arith.constant 9.99999974E-6 : f32
    %158 = vector.broadcast %cst_93 : f32 to vector<1x512xf32>
    %159 = arith.addf %157, %158 : vector<1x512xf32>
    %160 = math.rsqrt %159 : vector<1x512xf32>
    %c0_94 = arith.constant 0 : index
    %c0_95 = arith.constant 0 : index
    %161 = vector.load %arg10[%c0_94, %c0_95] : memref<2x512xf32, #tpu.memory_space<vmem>>, vector<1x512xf32>
    %162 = arith.mulf %160, %161 : vector<1x512xf32>
    %163 = vector.broadcast %151 : vector<1x512xf32> to vector<2x512xf32>
    %164 = arith.subf %144, %163 : vector<2x512xf32>
    %165 = vector.broadcast %162 : vector<1x512xf32> to vector<2x512xf32>
    %166 = arith.mulf %164, %165 : vector<2x512xf32>
    %c1_96 = arith.constant 1 : index
    %c0_97 = arith.constant 0 : index
    %167 = vector.load %arg10[%c1_96, %c0_97] : memref<2x512xf32, #tpu.memory_space<vmem>>, vector<1x512xf32>
    %168 = vector.broadcast %167 : vector<1x512xf32> to vector<2x512xf32>
    %169 = arith.addf %166, %168 : vector<2x512xf32>
    %cst_98 = arith.constant 0.000000e+00 : f32
    %170 = vector.broadcast %cst_98 : f32 to vector<2x512xf32>
    %171 = arith.maximumf %169, %170 : vector<2x512xf32>
    %172 = arith.truncf %171 : vector<2x512xf32> to vector<2x512xbf16>
    %c0_99 = arith.constant 0 : index
    %c0_100 = arith.constant 0 : index
    %173 = vector.load %arg11[%c0_99, %c0_100] : memref<512x128xbf16, #tpu.memory_space<vmem>>, vector<512x128xbf16>
    %cst_101 = arith.constant dense<0.000000e+00> : vector<2x128xf32>
    %174 = tpu.matmul %172, %173, %cst_101 {dimension_numbers = #tpu.dot_dimension_numbers<[1], [0], [0], [1], [0, 0, 1, 1], [], []>} : vector<2x512xbf16>, vector<512x128xbf16>, vector<2x128xf32> -> vector<2x128xf32>
    %c0_102 = arith.constant 0 : index
    %c0_103 = arith.constant 0 : index
    %175 = vector.load %arg12[%c0_102, %c0_103] : memref<1x128xf32, #tpu.memory_space<vmem>>, vector<1x128xf32>
    %176 = vector.broadcast %175 : vector<1x128xf32> to vector<2x128xf32>
    %177 = arith.addf %174, %176 : vector<2x128xf32>
    %cst_104 = arith.constant 0.000000e+00 : f32
    %178 = vector.broadcast %cst_104 : f32 to vector<2x128xf32>
    %179 = arith.subf %178, %177 : vector<2x128xf32>
    %180 = math.exp %179 : vector<2x128xf32>
    %cst_105 = arith.constant 1.000000e+00 : f32
    %181 = vector.broadcast %cst_105 : f32 to vector<2x128xf32>
    %182 = arith.addf %181, %180 : vector<2x128xf32>
    %183 = tpu.reciprocal %182 {approx = true} : vector<2x128xf32> -> vector<2x128xf32>
    %c0_106 = arith.constant 0 : index
    %c0_107 = arith.constant 0 : index
    %184 = vector.load %arg13[%c0_106, %c0_107] : memref<2x128xf32, #tpu.memory_space<vmem>>, vector<2x128xf32>
    tpu.vector_store %arg13[%c0_106, %c0_107], %183 {strides = array<i32>} : memref<2x128xf32, #tpu.memory_space<vmem>>, vector<2x128xf32>,
    return
  }
}

</mosaic_0001>

<bundles_post_ra>
// kernel: abnormal_forward.1
= control target key start
LH: loop header
LB: loop body
LE: loop exit
PB: predicated region body
PF: predicated region fallthrough
CT: control target
= control target key end

     0   :  { %18 = vsyncpa [#allocation4], 0  ;;  %s7988_s0 = inlined_call_operand.vmem [shape: f32[10,128], index: 0, kind: input, shape index: {}]   ;;  %s7989_s1 = inlined_call_operand.hbm [shape: bf16[384,256], index: 1, kind: input, shape index: {}]   ;;  %s7990_s2 = inlined_call_operand.vmem [shape: f32[2,256], index: 2, kind: input, shape index: {}]   ;;  %s7991_s3 = inlined_call_operand.hbm [shape: bf16[768,256], index: 3, kind: input, shape index: {}]   ;;  %s7992_s4 = inlined_call_operand.vmem [shape: f32[2,256], index: 4, kind: input, shape index: {}]   ;;  %s7993_s5 = inlined_call_operand.hbm [shape: bf16[512,256], index: 5, kind: input, shape index: {}]   ;;  %s7994_s6 = inlined_call_operand.vmem [shape: f32[2,256], index: 6, kind: input, shape index: {}]   ;;  %s7995_s7 = inlined_call_operand.hbm [shape: bf16[512,512], index: 7, kind: input, shape index: {}]   ;;  %s7996_s8 = inlined_call_operand.vmem [shape: f32[2,512], index: 8, kind: input, shape index: {}]   ;;  %s7997_s9 = inlined_call_operand.hbm [shape: bf16[512,512], index: 9, kind: input, shape index: {}]   ;;  %s7998_s10 = inlined_call_operand.vmem [shape: f32[2,512], index: 10, kind: input, shape index: {}]   ;;  %s7999_s11 = inlined_call_operand.hbm [shape: bf16[512,128], index: 11, kind: input, shape index: {}]   ;;  %s8000_s12 = inlined_call_operand.vmem [shape: f32[1,128], index: 12, kind: input, shape index: {}]   ;;  %s8001_s13 = inlined_call_operand.hbm [shape: f32[2,128], index: 13, kind: output, shape index: {}]  }
   0x1   :  { %19 = vsyncpa [#allocation7], 0 }
   0x2   :  { %20 = vsyncpa [#allocation10], 0 }
   0x3   :  { %21 = vsyncpa [#allocation13], 0 }
   0x4   :  { %22 = vsyncpa [#allocation5], 0  ;;  %s44_s27 = sshll.u32 %s7991_s3, 4  ;;  %s7425_s28 = smov [#allocation6]   ;;  %s45_s27 = int_to_ptr.hbm [resolvable:$true] %s44_s27 }
   0x5   :  { %s46_s29 = sshll.u32 %s7425_s28, 4  ;;  %s74_s15 = sshll.u32 %s7995_s7, 4  ;;  %s47_s29 = int_to_ptr.vmem [resolvable:$true] %s46_s29  ;;  %s75_s15 = int_to_ptr.hbm [resolvable:$true] %s74_s15 }
   0x6   :  { %s7426_s16 = smov 128   ;;  %s7427_s17 = smov 8  }
   0x7   :  { %52 = dma.hbm_to_vmem [thread:$0]  %s45_s27, 12288, %s47_s29, [#allocation7], %s7426_s16, %s7426_s16, %s7427_s17  }
   0x8   :  { %s7428_s18 = smov [#allocation9]   ;;  %s7429_s20 = smov 256  }
   0x9   :  { %s76_s19 = sshll.u32 %s7428_s18, 4  ;;  %s7430_s21 = smov 16   ;;  %s77_s19 = int_to_ptr.vmem [resolvable:$true] %s76_s19 }
   0xa   :  { %82 = dma.hbm_to_vmem [thread:$0]  %s75_s15, 16384, %s77_s19, [#allocation10], %s7429_s20, %s7429_s20, %s7430_s21  }
   0xb   :  { %s29_s23 = sshll.u32 %s7989_s1, 4  ;;  %s7431_s24 = smov [#allocation3]   ;;  %s30_s23 = int_to_ptr.hbm [resolvable:$true] %s29_s23 }
   0xc   :  { %s31_s25 = sshll.u32 %s7431_s24, 4  ;;  %s59_s28 = sshll.u32 %s7993_s5, 4  ;;  %s32_s25 = int_to_ptr.vmem [resolvable:$true] %s31_s25  ;;  %s60_s28 = int_to_ptr.hbm [resolvable:$true] %s59_s28 }
   0xd   :  { %37 = dma.hbm_to_vmem [thread:$0]  %s30_s23, 6144, %s32_s25, [#allocation4], %s7426_s16, %s7426_s16, %s7427_s17  }
   0xe   :  { %s7432_s27 = smov [#allocation8]   ;;  %s89_s15 = sshll.u32 %s7997_s9, 4  ;;  %s90_s15 = int_to_ptr.hbm [resolvable:$true] %s89_s15 }
   0xf   :  { %s61_s29 = sshll.u32 %s7432_s27, 4  ;;  %s104_s19 = sshll.u32 %s7999_s11, 4  ;;  %s62_s29 = int_to_ptr.vmem [resolvable:$true] %s61_s29  ;;  %s105_s19 = int_to_ptr.hbm [resolvable:$true] %s104_s19 }
  0x10   :  { %67 = dma.hbm_to_vmem [thread:$0]  %s60_s28, 8192, %s62_s29, [#allocation7], %s7426_s16, %s7426_s16, %s7427_s17  }
  0x11   :  { %s7433_s22 = smov [#allocation11]   ;;  %s7434_s5 = smov [#allocation12]  }
  0x12   :  { %s91_s3 = sshll.u32 %s7433_s22, 4  ;;  %s106_s23 = sshll.u32 %s7434_s5, 4  ;;  %s92_s3 = int_to_ptr.vmem [resolvable:$true] %s91_s3  ;;  %s107_s23 = int_to_ptr.vmem [resolvable:$true] %s106_s23 }
  0x13   :  { %97 = dma.hbm_to_vmem [thread:$0]  %s90_s15, 16384, %s92_s3, [#allocation10], %s7429_s20, %s7429_s20, %s7430_s21  }
  0x14   :  { %s7435_s24 = smov 64   ;;  %s7436_s25 = smov 4  }
  0x15   :  { %112 = dma.hbm_to_vmem [thread:$0]  %s105_s19, 4096, %s107_s23, [#allocation13], %s7435_s24, %s7435_s24, %s7436_s25  }
  0x16   :  { %7415 = dma.done.wait [#allocation4], 6144  }
  0x17   :  { %7416 = vsyncadd [#allocation4], 4294961152 }
  0x18   :  { %7417 = dma.done.wait [#allocation7], 20480  }
  0x19   :  { %7418 = vsyncadd [#allocation7], 4294946816 }
  0x1a   :  { %7419 = dma.done.wait [#allocation10], 32768  }
  0x1b   :  { %7420 = vsyncadd [#allocation10], 4294934528 }
  0x1c   :  { %7421 = dma.done.wait [#allocation13], 4096  }
  0x1d   :  { %7422 = vsyncadd [#allocation13], 4294963200  ;;  %v4773_v0 = vld [vmem:[#allocation3 + $0x70] sm:$0xf]  ;;  %v6719_v1 = vld [vmem:[#allocation3 + $0x74] sm:$0xf0] }
  0x1e   :  { %v4837_v2 = vld [vmem:[#allocation3 + $0xf0] sm:$0xf]  ;;  %v4774_v3 = vor.u32 %v6719_v1, %v4773_v0  ;;  %v6735_v4 = vld [vmem:[#allocation3 + $0xf4] sm:$0xf0]  ;;  %v4765_v9 = vld [vmem:[#allocation3 + $0x60] sm:$0xf] }
  0x1f   :  { %v4901_v5 = vld [vmem:[#allocation3 + $0x170] sm:$0xf]  ;;  %v6751_v6 = vld [vmem:[#allocation3 + $0x174] sm:$0xf0]  ;;  %v4838_v7 = vor.u32 %v6735_v4, %v4837_v2  ;;  %v6717_v10 = vld [vmem:[#allocation3 + $0x64] sm:$0xf0] }
  0x20   :  { %v4902_v8 = vor.u32 %v6751_v6, %v4901_v5  ;;  %v4829_v11 = vld [vmem:[#allocation3 + $0xe0] sm:$0xf]  ;;  %437 = vmatpush.bf16.msra.mxu0 %v4774_v3  ;;  %v4766_v12 = vor.u32 %v6717_v10, %v4765_v9  ;;  %v6733_v13 = vld [vmem:[#allocation3 + $0xe4] sm:$0xf0]  ;;  %v4757_v18 = vld [vmem:[#allocation3 + $0x50] sm:$0xf] }
  0x21   :  { %v4893_v14 = vld [vmem:[#allocation3 + $0x160] sm:$0xf]  ;;  %v6749_v15 = vld [vmem:[#allocation3 + $0x164] sm:$0xf0]  ;;  %450 = vmatpush.bf16.msra.mxu1 %v4838_v7  ;;  %v4830_v16 = vor.u32 %v6733_v13, %v4829_v11  ;;  %v6715_v19 = vld [vmem:[#allocation3 + $0x54] sm:$0xf0] }
  0x22   :  { %463 = vmatpush.bf16.msra.mxu2 %v4902_v8  ;;  %v4894_v17 = vor.u32 %v6749_v15, %v4893_v14  ;;  %v4821_v20 = vld [vmem:[#allocation3 + $0xd0] sm:$0xf]  ;;  %v6731_v21 = vld [vmem:[#allocation3 + $0xd4] sm:$0xf0]  ;;  %v4758_v24 = vor.u32 %v6715_v19, %v4757_v18  ;;  %v4749_v25 = vld [vmem:[#allocation3 + $0x40] sm:$0xf] }
  0x23   :  { %v4885_v22 = vld [vmem:[#allocation3 + $0x150] sm:$0xf]  ;;  %v6747_v23 = vld [vmem:[#allocation3 + $0x154] sm:$0xf0]  ;;  %v6713_v26 = vld [vmem:[#allocation3 + $0x44] sm:$0xf0]  ;;  %v4822_v27 = vor.u32 %v6731_v21, %v4821_v20 }
  0x24   :  { %438 = vmatpush.bf16.msra.mxu0 %v4766_v12  ;;  %v4886_v28 = vor.u32 %v6747_v23, %v4885_v22  ;;  %v4813_v29 = vld [vmem:[#allocation3 + $0xc0] sm:$0xf]  ;;  %v6718_v30 = vld [vmem:[#allocation3 + $0x74] sm:$0xf]  ;;  %v4775_v31 = vld [vmem:[#allocation3 + $0x78] sm:$0xf0]  ;;  %v4750_v37 = vor.u32 %v6713_v26, %v4749_v25 }
  0x25   :  { %451 = vmatpush.bf16.msra.mxu1 %v4830_v16  ;;  %v6729_v32 = vld [vmem:[#allocation3 + $0xc4] sm:$0xf0]  ;;  %v4877_v33 = vld [vmem:[#allocation3 + $0x140] sm:$0xf]  ;;  %v4778_v35 = vor.u32 %v6718_v30, %v4775_v31  ;;  %v6716_v36 = vld [vmem:[#allocation3 + $0x64] sm:$0xf] }
  0x26   :  { %464 = vmatpush.bf16.msra.mxu2 %v4894_v17  ;;  %v6745_v34 = vld [vmem:[#allocation3 + $0x144] sm:$0xf0]  ;;  %v4741_v38 = vld [vmem:[#allocation3 + $0x30] sm:$0xf]  ;;  %v6711_v39 = vld [vmem:[#allocation3 + $0x34] sm:$0xf0]  ;;  %v4814_v41 = vor.u32 %v6729_v32, %v4813_v29 }
  0x27   :  { %476 = vmatpush.bf16.msra.mxu3 %v4778_v35  ;;  %v4767_v40 = vld [vmem:[#allocation3 + $0x68] sm:$0xf0]  ;;  %v4878_v42 = vor.u32 %v6745_v34, %v4877_v33  ;;  %v4805_v43 = vld [vmem:[#allocation3 + $0xb0] sm:$0xf]  ;;  %v6727_v44 = vld [vmem:[#allocation3 + $0xb4] sm:$0xf0]  ;;  %v4742_v50 = vor.u32 %v6711_v39, %v4741_v38 }
  0x28   :  { %439 = vmatpush.bf16.msra.mxu0 %v4758_v24  ;;  %v4869_v45 = vld [vmem:[#allocation3 + $0x130] sm:$0xf]  ;;  %v4770_v46 = vor.u32 %v6716_v36, %v4767_v40  ;;  %v6743_v47 = vld [vmem:[#allocation3 + $0x134] sm:$0xf0]  ;;  %v6714_v48 = vld [vmem:[#allocation3 + $0x54] sm:$0xf]  ;;  %v4806_v54 = vor.u32 %v6727_v44, %v4805_v43 }
  0x29   :  { %452 = vmatpush.bf16.msra.mxu1 %v4822_v27  ;;  %v4759_v49 = vld [vmem:[#allocation3 + $0x58] sm:$0xf0]  ;;  %v4733_v51 = vld [vmem:[#allocation3 + $0x20] sm:$0xf]  ;;  %v6709_v52 = vld [vmem:[#allocation3 + $0x24] sm:$0xf0]  ;;  %v4870_v55 = vor.u32 %v6743_v47, %v4869_v45 }
  0x2a   :  { %465 = vmatpush.bf16.msra.mxu2 %v4886_v28  ;;  %v4762_v53 = vor.u32 %v6714_v48, %v4759_v49  ;;  %v4797_v56 = vld [vmem:[#allocation3 + $0xa0] sm:$0xf]  ;;  %v6712_v57 = vld [vmem:[#allocation3 + $0x44] sm:$0xf]  ;;  %v4751_v58 = vld [vmem:[#allocation3 + $0x48] sm:$0xf0]  ;;  %v4734_v62 = vor.u32 %v6709_v52, %v4733_v51 }
  0x2b   :  { %477 = vmatpush.bf16.msra.mxu3 %v4770_v46  ;;  %v6725_v59 = vld [vmem:[#allocation3 + $0xa4] sm:$0xf0]  ;;  %v4861_v60 = vld [vmem:[#allocation3 + $0x120] sm:$0xf]  ;;  %v4725_v63 = vld [vmem:[#allocation3 + $0x10] sm:$0xf]  ;;  %v4754_v1 = vor.u32 %v6712_v57, %v4751_v58 }
  0x2c   :  { %440 = vmatpush.bf16.msra.mxu0 %v4750_v37  ;;  %v6741_v61 = vld [vmem:[#allocation3 + $0x124] sm:$0xf0]  ;;  %v6707_v0 = vld [vmem:[#allocation3 + $0x14] sm:$0xf0]  ;;  %v4798_v2 = vor.u32 %v6725_v59, %v4797_v56  ;;  %v4789_v4 = vld [vmem:[#allocation3 + $0x90] sm:$0xf] }
  0x2d   :  { %453 = vmatpush.bf16.msra.mxu1 %v4814_v41  ;;  %v4862_v3 = vor.u32 %v6741_v61, %v4861_v60  ;;  %v6710_v5 = vld [vmem:[#allocation3 + $0x34] sm:$0xf]  ;;  %v4743_v6 = vld [vmem:[#allocation3 + $0x38] sm:$0xf0]  ;;  %v6723_v7 = vld [vmem:[#allocation3 + $0x94] sm:$0xf0]  ;;  %v4726_v10 = vor.u32 %v6707_v0, %v4725_v63 }
  0x2e   :  { %466 = vmatpush.bf16.msra.mxu2 %v4878_v42  ;;  %v4853_v8 = vld [vmem:[#allocation3 + $0x110] sm:$0xf]  ;;  %v6739_v9 = vld [vmem:[#allocation3 + $0x114] sm:$0xf0]  ;;  %v4717_v11 = vld [vmem:[#allocation3] sm:$0xf]  ;;  %v4746_v14 = vor.u32 %v6710_v5, %v4743_v6  ;;  %v4790_v15 = vor.u32 %v6723_v7, %v4789_v4 }
  0x2f   :  { %478 = vmatpush.bf16.msra.mxu3 %v4762_v53  ;;  %v6705_v12 = vld [vmem:[#allocation3 + $0x4] sm:$0xf0]  ;;  %v4781_v13 = vld [vmem:[#allocation3 + $0x80] sm:$0xf]  ;;  %v4854_v16 = vor.u32 %v6739_v9, %v4853_v8  ;;  %v6708_v18 = vld [vmem:[#allocation3 + $0x24] sm:$0xf] }
  0x30   :  { %441 = vmatpush.bf16.msra.mxu0 %v4742_v50  ;;  %v6721_v17 = vld [vmem:[#allocation3 + $0x84] sm:$0xf0]  ;;  %v4735_v19 = vld [vmem:[#allocation3 + $0x28] sm:$0xf0]  ;;  %v4845_v20 = vld [vmem:[#allocation3 + $0x100] sm:$0xf]  ;;  %v4718_v26 = vor.u32 %v6705_v12, %v4717_v11 }
  0x31   :  { %454 = vmatpush.bf16.msra.mxu1 %v4806_v54  ;;  %v6737_v21 = vld [vmem:[#allocation3 + $0x104] sm:$0xf0]  ;;  %v6734_v22 = vld [vmem:[#allocation3 + $0xf4] sm:$0xf]  ;;  %v4839_v23 = vld [vmem:[#allocation3 + $0xf8] sm:$0xf0]  ;;  %v4738_v28 = vor.u32 %v6708_v18, %v4735_v19  ;;  %v4782_v29 = vor.u32 %v6721_v17, %v4781_v13 }
  0x32   :  { %467 = vmatpush.bf16.msra.mxu2 %v4870_v55  ;;  %v6750_v24 = vld [vmem:[#allocation3 + $0x174] sm:$0xf]  ;;  %v4903_v25 = vld [vmem:[#allocation3 + $0x178] sm:$0xf0]  ;;  %v143_v27 = vld [vmem:[%s7988_s0] sm:$0x3f]  ;;  %v4846_v30 = vor.u32 %v6737_v21, %v4845_v20  ;;  %v4842_v33 = vor.u32 %v6734_v22, %v4839_v23 }
  0x33   :  { %479 = vmatpush.bf16.msra.mxu3 %v4754_v1  ;;  %v145_v31 = vld [vmem:[%s7988_s0 + $0x4] sm:$0x3f]  ;;  %v4906_v34 = vor.u32 %v6750_v24, %v4903_v25  ;;  %v6706_v36 = vld [vmem:[#allocation3 + $0x14] sm:$0xf]  ;;  %v4727_v37 = vld [vmem:[#allocation3 + $0x18] sm:$0xf0]  ;;  %v146_v41 = vpack.c.bf16 %v143_v27, %v143_v27 }
  0x34   :  { %442 = vmatpush.bf16.msra.mxu0 %v4734_v62  ;;  %v144_v32 = vld [vmem:[%s7988_s0 + $0x2] sm:$0x3f]  ;;  %v4831_v38 = vld [vmem:[#allocation3 + $0xe8] sm:$0xf0]  ;;  %v7536_v42 = vpack.c.bf16 %v145_v31, %v145_v31  ;;  %v6730_v44 = vld [vmem:[#allocation3 + $0xd4] sm:$0xf]  ;;  %v4730_v45 = vor.u32 %v6706_v36, %v4727_v37 }
  0x35   :  { %455 = vmatpush.bf16.msra.mxu1 %v4798_v2  ;;  %v6732_v35 = vld [vmem:[#allocation3 + $0xe4] sm:$0xf]  ;;  %v4895_v40 = vld [vmem:[#allocation3 + $0x168] sm:$0xf0]  ;;  %v7538_v43 = vpack.c.bf16 %v144_v32, %v144_v32  ;;  %v4823_v50 = vld [vmem:[#allocation3 + $0xd8] sm:$0xf0] }
  0x36   :  { %468 = vmatpush.bf16.msra.mxu2 %v4862_v3  ;;  %v6748_v39 = vld [vmem:[#allocation3 + $0x164] sm:$0xf]  ;;  %v4834_v46 = vor.u32 %v6732_v35, %v4831_v38  ;;  %v4719_v49 = vld [vmem:[#allocation3 + $0x8] sm:$0xf0]  ;;  %v6746_v51 = vld [vmem:[#allocation3 + $0x154] sm:$0xf]  ;;  %v4826_v54 = vor.u32 %v6730_v44, %v4823_v50 }
  0x37   :  { %480 = vmatpush.bf16.msra.mxu3 %v4746_v14  ;;  %v4898_v47 = vor.u32 %v6748_v39, %v4895_v40  ;;  %v6704_v48 = vld [vmem:[#allocation3 + $0x4] sm:$0xf]  ;;  %v4887_v52 = vld [vmem:[#allocation3 + $0x158] sm:$0xf0]  ;;  %v4815_v57 = vld [vmem:[#allocation3 + $0xc8] sm:$0xf0] }
  0x38   :  { %443 = vmatpush.bf16.msra.mxu0 %v4726_v10  ;;  %v4722_v53 = vor.u32 %v6704_v48, %v4719_v49  ;;  %v4890_v55 = vor.u32 %v6746_v51, %v4887_v52  ;;  %v6728_v56 = vld [vmem:[#allocation3 + $0xc4] sm:$0xf]  ;;  %v4879_v59 = vld [vmem:[#allocation3 + $0x148] sm:$0xf0]  ;;  %v6726_v62 = vld [vmem:[#allocation3 + $0xb4] sm:$0xf] }
  0x39   :  { %456 = vmatpush.bf16.msra.mxu1 %v4790_v15  ;;  %v6744_v58 = vld [vmem:[#allocation3 + $0x144] sm:$0xf]  ;;  %v4818_v60 = vor.u32 %v6728_v56, %v4815_v57  ;;  %v4807_v63 = vld [vmem:[#allocation3 + $0xb8] sm:$0xf0]  ;;  %v6742_v0 = vld [vmem:[#allocation3 + $0x134] sm:$0xf] }
  0x3a   :  { %469 = vmatpush.bf16.msra.mxu2 %v4854_v16  ;;  %v4882_v61 = vor.u32 %v6744_v58, %v4879_v59  ;;  %v4871_v1 = vld [vmem:[#allocation3 + $0x138] sm:$0xf0]  ;;  %v4810_v2 = vor.u32 %v6726_v62, %v4807_v63  ;;  %v6724_v4 = vld [vmem:[#allocation3 + $0xa4] sm:$0xf]  ;;  %v4799_v5 = vld [vmem:[#allocation3 + $0xa8] sm:$0xf0] }
  0x3b   :  { %481 = vmatpush.bf16.msra.mxu3 %v4738_v28  ;;  %v4874_v3 = vor.u32 %v6742_v0, %v4871_v1  ;;  %v6740_v6 = vld [vmem:[#allocation3 + $0x124] sm:$0xf]  ;;  %v4863_v7 = vld [vmem:[#allocation3 + $0x128] sm:$0xf0]  ;;  %v4802_v8 = vor.u32 %v6724_v4, %v4799_v5  ;;  %v6722_v10 = vld [vmem:[#allocation3 + $0x94] sm:$0xf] }
  0x3c   :  { %444 = vmatpush.bf16.msra.mxu0 %v4718_v26  ;;  %v4866_v9 = vor.u32 %v6740_v6, %v4863_v7  ;;  %v4791_v11 = vld [vmem:[#allocation3 + $0x98] sm:$0xf0]  ;;  %v6738_v12 = vld [vmem:[#allocation3 + $0x114] sm:$0xf]  ;;  %v6720_v16 = vld [vmem:[#allocation3 + $0x84] sm:$0xf] }
  0x3d   :  { %457 = vmatpush.bf16.msra.mxu1 %v4782_v29  ;;  %v4855_v13 = vld [vmem:[#allocation3 + $0x118] sm:$0xf0]  ;;  %v4794_v14 = vor.u32 %v6722_v10, %v4791_v11  ;;  %v4783_v17 = vld [vmem:[#allocation3 + $0x88] sm:$0xf0]  ;;  %v6736_v18 = vld [vmem:[#allocation3 + $0x104] sm:$0xf] }
  0x3e   :  { %470 = vmatpush.bf16.msra.mxu2 %v4846_v30  ;;  %v4858_v15 = vor.u32 %v6738_v12, %v4855_v13  ;;  %v4847_v19 = vld [vmem:[#allocation3 + $0x108] sm:$0xf0]  ;;  %v4786_v20 = vor.u32 %v6720_v16, %v4783_v17  ;;  %v4966_v22 = vld [vmem:[#allocation6 + $0x70] sm:$0xf]  ;;  %v6767_v23 = vld [vmem:[#allocation6 + $0x74] sm:$0xf0] }
  0x3f   :  { %445 = vmatmul.bf16.vlgmr.msra.gmra.mxu0 %v146_v41  ;;  %482 = vmatpush.bf16.msra.mxu3 %v4730_v45  ;;  %v4850_v21 = vor.u32 %v6736_v18, %v4847_v19  ;;  %v4967_v24 = vor.u32 %v6767_v23, %v4966_v22  ;;  %v5094_v25 = vld [vmem:[#allocation6 + $0x170] sm:$0xf]  ;;  %v6799_v26 = vld [vmem:[#allocation6 + $0x174] sm:$0xf0]  ;;  %v4958_v28 = vld [vmem:[#allocation6 + $0x60] sm:$0xf] }
  0x40   :  { %489 = vmatpush.bf16.msrb.mxu0 %v4842_v33  ;;  %458 = vmatmul.bf16.vlgmr.msra.gmra.mxu1 %v7538_v43  ;;  %v5095_v27 = vor.u32 %v6799_v26, %v5094_v25  ;;  %v6765_v29 = vld [vmem:[#allocation6 + $0x64] sm:$0xf0]  ;;  %v5086_v31 = vld [vmem:[#allocation6 + $0x160] sm:$0xf]  ;;  %v6763_v35 = vld [vmem:[#allocation6 + $0x54] sm:$0xf0] }
  0x41   :  { %502 = vmatpush.bf16.msrb.mxu1 %v4906_v34  ;;  %471 = vmatmul.bf16.vlgmr.msra.gmra.mxu2 %v7536_v42  ;;  %v4959_v30 = vor.u32 %v6765_v29, %v4958_v28  ;;  %v6797_v32 = vld [vmem:[#allocation6 + $0x164] sm:$0xf0]  ;;  %v4950_v34 = vld [vmem:[#allocation6 + $0x50] sm:$0xf]  ;;  %v6795_v38 = vld [vmem:[#allocation6 + $0x154] sm:$0xf0] }
  0x42   :  { %1220 = vmatpush.bf16.msrb.mxu2 %v4967_v24  ;;  %v5087_v33 = vor.u32 %v6797_v32, %v5086_v31  ;;  %v4951_v36 = vor.u32 %v6763_v35, %v4950_v34  ;;  %v5078_v37 = vld [vmem:[#allocation6 + $0x150] sm:$0xf]  ;;  %v4942_v40 = vld [vmem:[#allocation6 + $0x40] sm:$0xf]  ;;  %v6793_v44 = vld [vmem:[#allocation6 + $0x144] sm:$0xf0] }
  0x43   :  { %483 = vmatpush.bf16.msra.mxu3 %v4722_v53  ;;  %v5079_v39 = vor.u32 %v6795_v38, %v5078_v37  ;;  %v5062_v49 = vld [vmem:[#allocation6 + $0x130] sm:$0xf]  ;;  %v6791_v50 = vld [vmem:[#allocation6 + $0x134] sm:$0xf0]  ;;  %v5054_v57 = vld [vmem:[#allocation6 + $0x120] sm:$0xf] }
  0x44   :  { %490 = vmatpush.bf16.msrb.mxu0 %v4834_v46  ;;  %v4934_v46 = vld [vmem:[#allocation6 + $0x30] sm:$0xf]  ;;  %v5063_v52 = vor.u32 %v6791_v50, %v5062_v49  ;;  %v6789_v58 = vld [vmem:[#allocation6 + $0x124] sm:$0xf0]  ;;  %v6755_v62 = vld [vmem:[#allocation6 + $0x14] sm:$0xf0] }
  0x45   :  { %503 = vmatpush.bf16.msrb.mxu1 %v4898_v47  ;;  %v6759_v47 = vld [vmem:[#allocation6 + $0x34] sm:$0xf0]  ;;  %v5030_v0 = vld [vmem:[#allocation6 + $0xf0] sm:$0xf]  ;;  %vm515_vm0 = vcmask 1045504   ;;  %vm629_vm7 = vcmask 1043456  }
  0x46   :  { %484 = vmatmul.bf16.vlgmr.msra.gmra.mxu3 %v146_v41  ;;  %1221 = vmatpush.bf16.msrb.mxu2 %v4959_v30  ;;  %v6761_v41 = vld [vmem:[#allocation6 + $0x44] sm:$0xf0]  ;;  %v4935_v48 = vor.u32 %v6759_v47, %v4934_v46  ;;  %v6783_v1 = vld [vmem:[#allocation6 + $0xf4] sm:$0xf0]  ;;  %v5046_v4 = vld [vmem:[#allocation6 + $0x110] sm:$0xf] }
  0x47   :  { %v6787_v5 = vld [vmem:[#allocation6 + $0x114] sm:$0xf0]  ;;  %v4910_v13 = vld [vmem:[#allocation6] sm:$0xf]  ;;  %v6781_v19 = vld [vmem:[#allocation6 + $0xe4] sm:$0xf0] }
  0x48   :  { %491 = vmatpush.bf16.msrb.mxu0 %v4826_v54  ;;  %v4926_v54 = vld [vmem:[#allocation6 + $0x20] sm:$0xf]  ;;  %v6815_v10 = vld [vmem:[#allocation6 + $0x1f4] sm:$0xf0]  ;;  %v5222_v22 = vld [vmem:[#allocation6 + $0x270] sm:$0xf] }
  0x49   :  { %504 = vmatpush.bf16.msrb.mxu1 %v4890_v55  ;;  %v6757_v55 = vld [vmem:[#allocation6 + $0x24] sm:$0xf0]  ;;  %v5022_v18 = vld [vmem:[#allocation6 + $0xe0] sm:$0xf]  ;;  %v6831_v23 = vld [vmem:[#allocation6 + $0x274] sm:$0xf0] }
  0x4a   :  { %1222 = vmatpush.bf16.msrb.mxu2 %v4951_v36  ;;  %v4927_v56 = vor.u32 %v6757_v55, %v4926_v54  ;;  %v5223_v25 = vor.u32 %v6831_v23, %v5222_v22  ;;  %v5038_v26 = vld [vmem:[#allocation6 + $0x100] sm:$0xf]  ;;  %v6813_v32 = vld [vmem:[#allocation6 + $0x1e4] sm:$0xf0]  ;;  %v6766_v34 = vld [vmem:[#allocation6 + $0x74] sm:$0xf] }
  0x4b   :  { %v5150_v31 = vld [vmem:[#allocation6 + $0x1e0] sm:$0xf]  ;;  %v4968_v35 = vld [vmem:[#allocation6 + $0x78] sm:$0xf0]  ;;  %v5014_v36 = vld [vmem:[#allocation6 + $0xd0] sm:$0xf] }
  0x4c   :  { %492 = vmatpush.bf16.msrb.mxu0 %v4818_v60  ;;  %v5055_v60 = vor.u32 %v6789_v58, %v5054_v57  ;;  %v5142_v49 = vld [vmem:[#allocation6 + $0x1d0] sm:$0xf]  ;;  %v6811_v50 = vld [vmem:[#allocation6 + $0x1d4] sm:$0xf0]  ;;  %v5006_v54 = vld [vmem:[#allocation6 + $0xc0] sm:$0xf] }
  0x4d   :  { %505 = vmatpush.bf16.msrb.mxu1 %v4882_v61  ;;  %v4918_v61 = vld [vmem:[#allocation6 + $0x10] sm:$0xf]  ;;  %v6777_v58 = vld [vmem:[#allocation6 + $0xc4] sm:$0xf0]  ;;  %v4944_v23 = vld [vmem:[#allocation6 + $0x48] sm:$0xf0] }
  0x4e   :  { %v4919_v63 = vor.u32 %v6755_v62, %v4918_v61  ;;  %v6827_v61 = vld [vmem:[#allocation6 + $0x254] sm:$0xf0]  ;;  %v5134_v62 = vld [vmem:[#allocation6 + $0x1c0] sm:$0xf]  ;;  %s7438_s25 = smov [#allocation14]   ;;  %s4702_s17 = sshll.u32 %s8001_s13, 4  ;;  %s4703_s17 = int_to_ptr.hbm [resolvable:$true] %s4702_s17 }
  0x4f   :  { %s4700_s9 = sshll.u32 %s7438_s25, 4  ;;  %s4701_s9 = int_to_ptr.vmem [resolvable:$true] %s4700_s9 }
  0x50   :  { %493 = vmatpush.bf16.msrb.mxu0 %v4810_v2 }
  0x51   :  { %506 = vmatpush.bf16.msrb.mxu1 %v4874_v3  ;;  %v5031_v3 = vor.u32 %v6783_v1, %v5030_v0 }
  0x53   :  { %1233 = vmatpush.bf16.msrb.mxu3 %v5031_v3 }
  0x54   :  { %494 = vmatpush.bf16.msrb.mxu0 %v4802_v8  ;;  %v5047_v8 = vor.u32 %v6787_v5, %v5046_v4  ;;  %v6762_v4 = vld [vmem:[#allocation6 + $0x54] sm:$0xf]  ;;  %v4952_v5 = vld [vmem:[#allocation6 + $0x58] sm:$0xf0] }
  0x55   :  { %507 = vmatpush.bf16.msrb.mxu1 %v4866_v9  ;;  %v5158_v9 = vld [vmem:[#allocation6 + $0x1f0] sm:$0xf] }
  0x56   :  { %v5159_v12 = vor.u32 %v6815_v10, %v5158_v9 }
  0x58   :  { %495 = vmatpush.bf16.msrb.mxu0 %v4794_v14  ;;  %v6753_v14 = vld [vmem:[#allocation6 + $0x4] sm:$0xf0] }
  0x59   :  { %508 = vmatpush.bf16.msrb.mxu1 %v4858_v15  ;;  %v4911_v17 = vor.u32 %v6753_v14, %v4910_v13  ;;  %v5198_v14 = vld [vmem:[#allocation6 + $0x240] sm:$0xf] }
  0x5c   :  { %496 = vmatpush.bf16.msrb.mxu0 %v4786_v20 }
  0x5d   :  { %509 = vmatpush.bf16.msrb.mxu1 %v4850_v21  ;;  %v5023_v21 = vor.u32 %v6781_v19, %v5022_v18 }
  0x5f   :  { %497 = vmatmul.bf16.vlgmr.msrb.gmra.mxu0 %v7538_v43  ;;  %v5070_v43 = vld [vmem:[#allocation6 + $0x140] sm:$0xf]  ;;  %1234 = vmatpush.bf16.msrb.mxu3 %v5023_v21  ;;  %v6760_v21 = vld [vmem:[#allocation6 + $0x44] sm:$0xf] }
  0x60   :  { %510 = vmatmul.bf16.vlgmr.msrb.gmra.mxu1 %v7536_v42  ;;  %1246 = vmatpush.bf16.msra.mxu0 %v5095_v27  ;;  %v4943_v42 = vor.u32 %v6761_v41, %v4942_v40  ;;  %v5071_v45 = vor.u32 %v6793_v44, %v5070_v43  ;;  %v6785_v27 = vld [vmem:[#allocation6 + $0x104] sm:$0xf0]  ;;  %v4971_v41 = vor.u32 %v6766_v34, %v4968_v35  ;;  %v5214_v43 = vld [vmem:[#allocation6 + $0x260] sm:$0xf]  ;;  %v6758_v34 = vld [vmem:[#allocation6 + $0x34] sm:$0xf] }
  0x61   :  { %1259 = vmatpush.bf16.msra.mxu1 %v5159_v12  ;;  %v5039_v30 = vor.u32 %v6785_v27, %v5038_v26  ;;  %v6775_v12 = vld [vmem:[#allocation6 + $0xb4] sm:$0xf0]  ;;  %v4947_v27 = vor.u32 %v6760_v21, %v4944_v23  ;;  %v5166_v21 = vld [vmem:[#allocation6 + $0x200] sm:$0xf] }
  0x62   :  { %1223 = vmatpush.bf16.msrb.mxu2 %v4943_v42  ;;  %v6779_v42 = vld [vmem:[#allocation6 + $0xd4] sm:$0xf0] }
  0x63   :  { %v5015_v44 = vor.u32 %v6779_v42, %v5014_v36  ;;  %v4982_v42 = vld [vmem:[#allocation6 + $0x90] sm:$0xf] }
  0x64   :  { %1247 = vmatpush.bf16.msra.mxu0 %v5087_v33  ;;  %v5151_v33 = vor.u32 %v6813_v32, %v5150_v31  ;;  %v5118_v32 = vld [vmem:[#allocation6 + $0x1a0] sm:$0xf] }
  0x65   :  { %1235 = vmatpush.bf16.msrb.mxu3 %v5015_v44  ;;  %v5182_v44 = vld [vmem:[#allocation6 + $0x220] sm:$0xf] }
  0x66   :  { %1224 = vmatpush.bf16.msrb.mxu2 %v4935_v48  ;;  %1260 = vmatpush.bf16.msra.mxu1 %v5151_v33  ;;  %v6805_v33 = vld [vmem:[#allocation6 + $0x1a4] sm:$0xf0] }
  0x67   :  { %v5119_v36 = vor.u32 %v6805_v33, %v5118_v32 }
  0x68   :  { %1248 = vmatpush.bf16.msra.mxu0 %v5079_v39 }
  0x6a   :  { %1225 = vmatpush.bf16.msrb.mxu2 %v4927_v56 }
  0x6c   :  { %1249 = vmatpush.bf16.msra.mxu0 %v5071_v45  ;;  %v6829_v45 = vld [vmem:[#allocation6 + $0x264] sm:$0xf0] }
  0x6d   :  { %v5215_v48 = vor.u32 %v6829_v45, %v5214_v43  ;;  %v6771_v43 = vld [vmem:[#allocation6 + $0x94] sm:$0xf0] }
  0x6e   :  { %1226 = vmatpush.bf16.msrb.mxu2 %v4919_v63  ;;  %v6809_v63 = vld [vmem:[#allocation6 + $0x1c4] sm:$0xf0] }
  0x6f   :  { %v5135_v3 = vor.u32 %v6809_v63, %v5134_v62  ;;  %v6819_v63 = vld [vmem:[#allocation6 + $0x214] sm:$0xf0] }
  0x70   :  { %1250 = vmatpush.bf16.msra.mxu0 %v5063_v52  ;;  %v6764_v52 = vld [vmem:[#allocation6 + $0x64] sm:$0xf] }
  0x72   :  { %1227 = vmatpush.bf16.msrb.mxu2 %v4911_v17 }
  0x74   :  { %1251 = vmatpush.bf16.msra.mxu0 %v5055_v60  ;;  %v5007_v60 = vor.u32 %v6777_v58, %v5006_v54  ;;  %v6769_v58 = vld [vmem:[#allocation6 + $0x84] sm:$0xf0] }
  0x76   :  { %1272 = vmatpush.bf16.msra.mxu2 %v5223_v25  ;;  %1236 = vmatpush.bf16.msrb.mxu3 %v5007_v60  ;;  %v6773_v25 = vld [vmem:[#allocation6 + $0xa4] sm:$0xf0] }
  0x78   :  { %1252 = vmatpush.bf16.msra.mxu0 %v5047_v8  ;;  %v4998_v8 = vld [vmem:[#allocation6 + $0xb0] sm:$0xf] }
  0x79   :  { %v4999_v13 = vor.u32 %v6775_v12, %v4998_v8  ;;  %v6801_v8 = vld [vmem:[#allocation6 + $0x184] sm:$0xf0] }
  0x7a   :  { %1273 = vmatpush.bf16.msra.mxu2 %v5215_v48  ;;  %v6821_v48 = vld [vmem:[#allocation6 + $0x224] sm:$0xf0] }
  0x7b   :  { %1237 = vmatpush.bf16.msrb.mxu3 %v4999_v13 }
  0x7c   :  { %1253 = vmatpush.bf16.msra.mxu0 %v5039_v30  ;;  %v6823_v30 = vld [vmem:[#allocation6 + $0x234] sm:$0xf0] }
  0x80   :  { %1298 = vmatpush.bf16.msrb.mxu0 %v4971_v41 }
  0xbc   :  { %v446_v51 = vpop.f32.mrf.mxu0 }
  0xbd   :  { %v459_v53 = vpop.f32.mrf.mxu1 }
  0xbe   :  { %v460_v59 = vadd.f32 %v459_v53, %v446_v51  ;;  %v5143_v51 = vor.u32 %v6811_v50, %v5142_v49  ;;  %v4960_v53 = vld [vmem:[#allocation6 + $0x68] sm:$0xf0]  ;;  %v5183_v49 = vor.u32 %v6821_v48, %v5182_v44  ;;  %v5110_v50 = vld [vmem:[#allocation6 + $0x190] sm:$0xf] }
  0xbf   :  { %v4963_v57 = vor.u32 %v6764_v52, %v4960_v53  ;;  %v6756_v52 = vld [vmem:[#allocation6 + $0x24] sm:$0xf] }
  0xc0   :  { %1261 = vmatpush.bf16.msra.mxu1 %v5143_v51  ;;  %v6803_v51 = vld [vmem:[#allocation6 + $0x194] sm:$0xf0] }
  0xc1   :  { %1299 = vmatpush.bf16.msrb.mxu0 %v4963_v57  ;;  %v5111_v54 = vor.u32 %v6803_v51, %v5110_v50 }
  0xc4   :  { %v472_v2 = vpop.f32.mrf.mxu2  ;;  %v448_v7 = vpop.f32.mrf.mxu0  ;;  %1262 = vmatpush.bf16.msra.mxu1 %v5135_v3  ;;  %v6847_v3 = vld [vmem:[#allocation6 + $0x2f4] sm:$0xf0] }
  0xc5   :  { %v7544_v6 = vadd.f32 %v472_v2, %v460_v59  ;;  %v461_v11 = vpop.f32.mrf.mxu1  ;;  %v5206_v59 = vld [vmem:[#allocation6 + $0x250] sm:$0xf]  ;;  %v4955_v7 = vor.u32 %v6762_v4, %v4952_v5  ;;  %v5102_v4 = vld [vmem:[#allocation6 + $0x180] sm:$0xf] }
  0xc6   :  { %v5207_v2 = vor.u32 %v6827_v61, %v5206_v59  ;;  %v5174_v59 = vld [vmem:[#allocation6 + $0x210] sm:$0xf] }
  0xc7   :  { %v516_v15 = vsel %vm515_vm0, %v7544_v6, 0.0  ;;  %v530_v16 = vmul.f32 %v7544_v6, %v7544_v6  ;;  %1300 = vmatpush.bf16.msrb.mxu0 %v4955_v7 }
  0xc8   :  { %v517_v20 = vrot.slane %v516_v15, 4  ;;  %1274 = vmatpush.bf16.msra.mxu2 %v5207_v2  ;;  %v5175_v2 = vor.u32 %v6819_v63, %v5174_v59 }
  0xc9   :  { %v532_v24 = vsel %vm515_vm0, %v530_v16, 0.0  ;;  %v7551_v39 = vpop.f32.mrf.mxu3  ;;  %v5126_v16 = vld [vmem:[#allocation6 + $0x1b0] sm:$0xf] }
  0xca   :  { %v518_v28 = vadd.f32 %v517_v20, %v516_v15  ;;  %v533_v29 = vrot.slane %v532_v24, 4  ;;  %v6825_v15 = vld [vmem:[#allocation6 + $0x244] sm:$0xf0]  ;;  %v6807_v20 = vld [vmem:[#allocation6 + $0x1b4] sm:$0xf0] }
  0xcb   :  { %v5199_v19 = vor.u32 %v6825_v15, %v5198_v14  ;;  %v5127_v22 = vor.u32 %v6807_v20, %v5126_v16  ;;  %1301 = vmatpush.bf16.msrb.mxu0 %v4947_v27  ;;  %v5103_v15 = vor.u32 %v6801_v8, %v5102_v4  ;;  %v4920_v16 = vld [vmem:[#allocation6 + $0x18] sm:$0xf0]  ;;  %v6839_v8 = vld [vmem:[#allocation6 + $0x2b4] sm:$0xf0] }
  0xcc   :  { %v519_v37 = vrot.slane %v518_v28, 2  ;;  %v534_v38 = vadd.f32 %v533_v29, %v532_v24  ;;  %v474_v40 = vpop.f32.mrf.mxu2  ;;  %v4990_v24 = vld [vmem:[#allocation6 + $0xa0] sm:$0xf]  ;;  %v5190_v29 = vld [vmem:[#allocation6 + $0x230] sm:$0xf] }
  0xcd   :  { %1275 = vmatpush.bf16.msra.mxu2 %v5199_v19  ;;  %1263 = vmatpush.bf16.msra.mxu1 %v5127_v22  ;;  %v5191_v31 = vor.u32 %v6823_v30, %v5190_v29  ;;  %v5032_v20 = vld [vmem:[#allocation6 + $0xf8] sm:$0xf0]  ;;  %v6845_v29 = vld [vmem:[#allocation6 + $0x2e4] sm:$0xf0] }
  0xce   :  { %v520_v46 = vadd.f32 %v519_v37, %v518_v28  ;;  %v535_v47 = vrot.slane %v534_v38, 2  ;;  %v4991_v28 = vor.u32 %v6773_v25, %v4990_v24  ;;  %v4936_v37 = vld [vmem:[#allocation6 + $0x38] sm:$0xf0]  ;;  %v6817_v25 = vld [vmem:[#allocation6 + $0x204] sm:$0xf0] }
  0xcf   :  { %v4939_v41 = vor.u32 %v6758_v34, %v4936_v37  ;;  %v5167_v27 = vor.u32 %v6817_v25, %v5166_v21  ;;  %v6780_v37 = vld [vmem:[#allocation6 + $0xe4] sm:$0xf]  ;;  %v6837_v21 = vld [vmem:[#allocation6 + $0x2a4] sm:$0xf0] }
  0xd0   :  { %v521_v55 = vrot.slane %v520_v46, 1  ;;  %v536_v56 = vadd.f32 %v535_v47, %v534_v38  ;;  %1238 = vmatpush.bf16.msrb.mxu3 %v4991_v28  ;;  %v4983_v47 = vor.u32 %v6771_v43, %v4982_v42  ;;  %v5278_v28 = vld [vmem:[#allocation6 + $0x2e0] sm:$0xf]  ;;  %v5024_v43 = vld [vmem:[#allocation6 + $0xe8] sm:$0xf0] }
  0xd1   :  { %v487_v11 = vpop.f32.mrf.mxu3  ;;  %1276 = vmatpush.bf16.msra.mxu2 %v5191_v31  ;;  %1264 = vmatpush.bf16.msra.mxu1 %v5119_v36  ;;  %v7576_v31 = vld [vmem:[%s7990_s2] ss:$2 sm:$0x3]  ;;  %v5279_v34 = vor.u32 %v6845_v29, %v5278_v28  ;;  %v4912_v36 = vld [vmem:[#allocation6 + $0x8] sm:$0xf0]  ;;  %v5027_v44 = vor.u32 %v6780_v37, %v5024_v43 }
  0xd2   :  { %v522_v0 = vadd.f32 %v521_v55, %v520_v46  ;;  %v537_v1 = vrot.slane %v536_v56, 1  ;;  %1302 = vmatpush.bf16.msrb.mxu0 %v4939_v41  ;;  %v4928_v55 = vld [vmem:[#allocation6 + $0x28] sm:$0xf0]  ;;  %v580_v51 = vperm.slane %v7576_v31, 0  ;;  %v6798_v43 = vld [vmem:[#allocation6 + $0x174] sm:$0xf] }
  0xd3   :  { %v4931_v57 = vor.u32 %v6756_v52, %v4928_v55  ;;  %v5016_v55 = vld [vmem:[#allocation6 + $0xd8] sm:$0xf0] }
  0xd4   :  { %v538_v9 = vadd.f32 %v537_v1, %v536_v56  ;;  %v7553_v10 = vmul.f32 0.16666667, %v522_v0  ;;  %v7437_v56 = vmov 0.0   ;;  %1239 = vmatpush.bf16.msrb.mxu3 %v4983_v47  ;;  %v5286_v0 = vld [vmem:[#allocation6 + $0x2f0] sm:$0xf] }
  0xd5   :  { %139 = vst [vmem:[#allocation2 + $0x18] sm:$0x3] %v7437_v56  ;;  %1277 = vmatpush.bf16.msra.mxu2 %v5183_v49  ;;  %1265 = vmatpush.bf16.msra.mxu1 %v5111_v54  ;;  %v5287_v7 = vor.u32 %v6847_v3, %v5286_v0  ;;  %v6843_v47 = vld [vmem:[#allocation6 + $0x2d4] sm:$0xf0]  ;;  %v6778_v54 = vld [vmem:[#allocation6 + $0xd4] sm:$0xf] }
  0xd6   :  { %v548_v17 = vmul.f32 0.16666667, %v538_v9  ;;  %v550_v18 = vmul.f32 %v7553_v10, %v7553_v10  ;;  %1303 = vmatpush.bf16.msrb.mxu0 %v4931_v57  ;;  %v6754_v9 = vld [vmem:[#allocation6 + $0x14] sm:$0xf]  ;;  %140 = vst [vmem:[#allocation2 + $0x20] sm:$0x3] %v7437_v56  ;;  %v5019_v59 = vor.u32 %v6778_v54, %v5016_v55 }
  0xd7   :  { %v4923_v19 = vor.u32 %v6754_v9, %v4920_v16  ;;  %141 = vst [vmem:[#allocation2 + $0x8] sm:$0x3] %v7437_v56  ;;  %v7585_v57 = vld [vmem:[%s7990_s2 + $0x1] ss:$2 sm:$0x3]  ;;  %v586_v9 = vsub.f32 %v7544_v6, %v7553_v10 }
  0xd8   :  { %v552_v26 = vsub.f32 %v548_v17, %v550_v18  ;;  %v6782_v17 = vld [vmem:[#allocation6 + $0xf4] sm:$0xf]  ;;  %142 = vst [vmem:[#allocation2] sm:$0x3] %v7437_v56  ;;  %v5008_v3 = vld [vmem:[#allocation6 + $0xc8] sm:$0xf0] }
  0xd9   :  { %1278 = vmatpush.bf16.msra.mxu2 %v5175_v2  ;;  %1266 = vmatpush.bf16.msra.mxu1 %v5103_v15  ;;  %v5000_v16 = vld [vmem:[#allocation6 + $0xb8] sm:$0xf0]  ;;  %v4992_v6 = vld [vmem:[#allocation6 + $0xa8] sm:$0xf0] }
  0xda   :  { %v554_v35 = vmax.f32 %v552_v26, 0.0  ;;  %1304 = vmatpush.bf16.msrb.mxu0 %v4923_v19  ;;  %v5035_v26 = vor.u32 %v6782_v17, %v5032_v20  ;;  %v5246_v19 = vld [vmem:[#allocation6 + $0x2a0] sm:$0xf] }
  0xdc   :  { %v498_v38 = vpop.f32.mrf.mxu0  ;;  %v7557_v45 = vadd.f32 1e-05, %v554_v35  ;;  %v6752_v35 = vld [vmem:[#allocation6 + $0x4] sm:$0xf] }
  0xdd   :  { %v511_v40 = vpop.f32.mrf.mxu1  ;;  %v499_v46 = vadd.f32 %v498_v38, %v7551_v39  ;;  %v4974_v39 = vld [vmem:[#allocation6 + $0x80] sm:$0xf]  ;;  %1311 = vmatpush.bf16.msrb.mxu1 %v5035_v26  ;;  %1279 = vmatpush.bf16.msra.mxu2 %v5167_v27  ;;  %v4915_v42 = vor.u32 %v6752_v35, %v4912_v36  ;;  %v5238_v26 = vld [vmem:[#allocation6 + $0x290] sm:$0xf]  ;;  %v6835_v27 = vld [vmem:[#allocation6 + $0x294] sm:$0xf0] }
  0xde   :  { %7215 = vrsqrt.f32 %v7557_v45  ;;  %v4975_v62 = vor.u32 %v6769_v58, %v4974_v39  ;;  %vm564_vm2 = vweird.f32 %v7557_v45  ;;  %v5239_v29 = vor.u32 %v6835_v27, %v5238_v26  ;;  %v6833_v35 = vld [vmem:[#allocation6 + $0x284] sm:$0xf0]  ;;  %v6822_v26 = vld [vmem:[#allocation6 + $0x234] sm:$0xf]  ;;  %v5192_v27 = vld [vmem:[#allocation6 + $0x238] sm:$0xf0] }
  0xdf   :  { %v7561_v53 = vadd.f32 %v511_v40, %v499_v46  ;;  %v5270_v46 = vld [vmem:[#allocation6 + $0x2d0] sm:$0xf]  ;;  %1305 = vmatpush.bf16.msrb.mxu0 %v4915_v42 }
  0xe0   :  { %1240 = vmatpush.bf16.msrb.mxu3 %v4975_v62  ;;  %v5271_v52 = vor.u32 %v6843_v47, %v5270_v46 }
  0xe1   :  { %v523_v60 = vsel %vm515_vm0, %v7561_v53, 0.0  ;;  %v531_v61 = vmul.f32 %v7561_v53, %v7561_v53  ;;  %1312 = vmatpush.bf16.msrb.mxu1 %v5027_v44  ;;  %v5096_v44 = vld [vmem:[#allocation6 + $0x178] sm:$0xf0] }
  0xe2   :  { %v524_v1 = vrot.slane %v523_v60, 4 }
  0xe3   :  { %v539_v5 = vsel %vm515_vm0, %v531_v61, 0.0  ;;  %v6841_v61 = vld [vmem:[#allocation6 + $0x2c4] sm:$0xf0] }
  0xe4   :  { %v525_v11 = vadd.f32 %v524_v1, %v523_v60  ;;  %v540_v12 = vrot.slane %v539_v5, 4  ;;  %v500_v13 = vpop.f32.mrf.mxu0  ;;  %v7568_v18 = vpop.eup %7215  ;;  %1285 = vmatpush.bf16.msra.mxu3 %v5287_v7  ;;  %v5262_v60 = vld [vmem:[#allocation6 + $0x2c0] sm:$0xf]  ;;  %v5254_v7 = vld [vmem:[#allocation6 + $0x2b0] sm:$0xf] }
  0xe5   :  { %v513_v14 = vpop.f32.mrf.mxu1  ;;  %v559_v22 = vmul.f32 %v7568_v18, %v7557_v45  ;;  %vm565_vm1 = vweird.f32 %v7568_v18  ;;  %v6776_v45 = vld [vmem:[#allocation6 + $0xc4] sm:$0xf]  ;;  %1313 = vmatpush.bf16.msrb.mxu1 %v5019_v59  ;;  %v5263_v2 = vor.u32 %v6841_v61, %v5262_v60  ;;  %v5255_v13 = vor.u32 %v6839_v8, %v5254_v7  ;;  %v5088_v59 = vld [vmem:[#allocation6 + $0x168] sm:$0xf0]  ;;  %v6826_v7 = vld [vmem:[#allocation6 + $0x254] sm:$0xf] }
  0xe6   :  { %v526_v23 = vrot.slane %v525_v11, 2  ;;  %v541_v24 = vadd.f32 %v540_v12, %v539_v5  ;;  %vm566_vm3 = vmor %vm564_vm2, %vm565_vm1  ;;  %v5011_v5 = vor.u32 %v6776_v45, %v5008_v3  ;;  %v595_v12 = vperm.slane %v7585_v57, 0  ;;  %v6774_v14 = vld [vmem:[#allocation6 + $0xb4] sm:$0xf]  ;;  %v5216_v45 = vld [vmem:[#allocation6 + $0x268] sm:$0xf0] }
  0xe7   :  { %v560_v30 = vmul.f32 %v7568_v18, %v559_v22  ;;  %v581_v60 = vperm.slane %v7576_v31, 1  ;;  %v6794_v3 = vld [vmem:[#allocation6 + $0x154] sm:$0xf]  ;;  %v5208_v8 = vld [vmem:[#allocation6 + $0x258] sm:$0xf0] }
  0xe8   :  { %v527_v32 = vadd.f32 %v526_v23, %v525_v11  ;;  %v542_v33 = vrot.slane %v541_v24, 2  ;;  %1286 = vmatpush.bf16.msra.mxu3 %v5279_v34  ;;  %v5247_v23 = vor.u32 %v6837_v21, %v5246_v19  ;;  %v5230_v34 = vld [vmem:[#allocation6 + $0x280] sm:$0xf]  ;;  %v5211_v19 = vor.u32 %v6826_v7, %v5208_v8  ;;  %v6810_v7 = vld [vmem:[#allocation6 + $0x1d4] sm:$0xf] }
  0xe9   :  { %v561_v38 = vmul.f32 0.5, %v560_v30  ;;  %1314 = vmatpush.bf16.msrb.mxu1 %v5011_v5  ;;  %v6770_v30 = vld [vmem:[#allocation6 + $0x94] sm:$0xf]  ;;  %v5144_v8 = vld [vmem:[#allocation6 + $0x1d8] sm:$0xf0] }
  0xea   :  { %v528_v40 = vrot.slane %v527_v32, 1  ;;  %v543_v41 = vadd.f32 %v542_v33, %v541_v24  ;;  %v6772_v24 = vld [vmem:[#allocation6 + $0xa4] sm:$0xf] }
  0xeb   :  { %v562_v48 = vsub.f32 1.5, %v561_v38  ;;  %v4995_v25 = vor.u32 %v6772_v24, %v4992_v6  ;;  %v5231_v38 = vor.u32 %v6833_v35, %v5230_v34  ;;  %v5195_v34 = vor.u32 %v6822_v26, %v5192_v27  ;;  %v6820_v35 = vld [vmem:[#allocation6 + $0x224] sm:$0xf]  ;;  %v5120_v27 = vld [vmem:[#allocation6 + $0x1a8] sm:$0xf0] }
  0xec   :  { %v529_v49 = vadd.f32 %v528_v40, %v527_v32  ;;  %v544_v50 = vrot.slane %v543_v41, 1  ;;  %1287 = vmatpush.bf16.msra.mxu3 %v5271_v52  ;;  %v4984_v32 = vld [vmem:[#allocation6 + $0x98] sm:$0xf0]  ;;  %v6768_v40 = vld [vmem:[#allocation6 + $0x84] sm:$0xf] }
  0xed   :  { %v563_v56 = vmul.f32 %v7568_v18, %v562_v48  ;;  %v4987_v33 = vor.u32 %v6770_v30, %v4984_v32  ;;  %v6830_v48 = vld [vmem:[#allocation6 + $0x274] sm:$0xf]  ;;  %v6788_v32 = vld [vmem:[#allocation6 + $0x124] sm:$0xf] }
  0xee   :  { %v545_v39 = vadd.f32 %v544_v50, %v543_v41  ;;  %v7587_v58 = vmul.f32 0.16666667, %v529_v49  ;;  %v4976_v41 = vld [vmem:[#allocation6 + $0x88] sm:$0xf0]  ;;  %v5224_v49 = vld [vmem:[#allocation6 + $0x278] sm:$0xf0] }
  0xef   :  { %v567_v62 = vsel %vm566_vm3, %v7568_v18, %v563_v56  ;;  %v5003_v18 = vor.u32 %v6774_v14, %v5000_v16  ;;  %v4979_v46 = vor.u32 %v6768_v40, %v4976_v41  ;;  %v5227_v61 = vor.u32 %v6830_v48, %v5224_v49  ;;  %v6792_v16 = vld [vmem:[#allocation6 + $0x144] sm:$0xf]  ;;  %v5048_v40 = vld [vmem:[#allocation6 + $0x118] sm:$0xf0]  ;;  %v6846_v48 = vld [vmem:[#allocation6 + $0x2f4] sm:$0xf] }
  0xf0   :  { %v549_v63 = vmul.f32 0.16666667, %v545_v39  ;;  %v551_v0 = vmul.f32 %v7587_v58, %v7587_v58  ;;  %v584_v1 = vmul.f32 %v580_v51, %v567_v62  ;;  %1288 = vmatpush.bf16.msra.mxu3 %v5263_v2  ;;  %v5099_v51 = vor.u32 %v6798_v43, %v5096_v44  ;;  %v6796_v39 = vld [vmem:[#allocation6 + $0x164] sm:$0xf]  ;;  %v5160_v43 = vld [vmem:[#allocation6 + $0x1f8] sm:$0xf0] }
  0xf1   :  { %1315 = vmatpush.bf16.msrb.mxu1 %v5003_v18  ;;  %v596_v14 = vperm.slane %v7585_v57, 1  ;;  %v6818_v44 = vld [vmem:[#allocation6 + $0x214] sm:$0xf]  ;;  %v5288_v49 = vld [vmem:[#allocation6 + $0x2f8] sm:$0xf0] }
  0xf2   :  { %v553_v4 = vsub.f32 %v549_v63, %v551_v0  ;;  %v588_v11 = vperm.slane %v584_v1, 0  ;;  %v6828_v0 = vld [vmem:[#allocation6 + $0x264] sm:$0xf]  ;;  %v5091_v1 = vor.u32 %v6796_v39, %v5088_v59 }
  0xf3   :  { %v5219_v31 = vor.u32 %v6828_v0, %v5216_v45  ;;  %v6816_v0 = vld [vmem:[#allocation6 + $0x204] sm:$0xf]  ;;  %v5168_v45 = vld [vmem:[#allocation6 + $0x208] sm:$0xf0] }
  0xf4   :  { %v555_v15 = vmax.f32 %v553_v4, 0.0  ;;  %v590_v17 = vmul.f32 %v588_v11, %v586_v9  ;;  %1289 = vmatpush.bf16.msra.mxu3 %v5255_v13  ;;  %v5080_v4 = vld [vmem:[#allocation6 + $0x158] sm:$0xf0]  ;;  %v617_v11 = vld [vmem:[#allocation2 + $0x8] sm:$0x3] }
  0xf5   :  { %1316 = vmatpush.bf16.msrb.mxu1 %v4995_v25  ;;  %v631_v21 = vrot.slane %v617_v11, 4  ;;  %v618_v11 = vld [vmem:[#allocation2] sm:$0x3]  ;;  %v6804_v26 = vld [vmem:[#allocation6 + $0x1a4] sm:$0xf] }
  0xf6   :  { %v557_v20 = vadd.f32 1e-05, %v555_v15  ;;  %v599_v22 = vadd.f32 %v595_v12, %v590_v17  ;;  %v587_v12 = vsub.f32 %v7561_v53, %v7587_v58  ;;  %v5083_v15 = vor.u32 %v6794_v3, %v5080_v4  ;;  %v5072_v17 = vld [vmem:[#allocation6 + $0x148] sm:$0xf0]  ;;  %v5064_v53 = vld [vmem:[#allocation6 + $0x138] sm:$0xf0] }
  0xf7   :  { %v5075_v6 = vor.u32 %v6792_v16, %v5072_v17  ;;  %v6844_v3 = vld [vmem:[#allocation6 + $0x2e4] sm:$0xf]  ;;  %v5280_v4 = vld [vmem:[#allocation6 + $0x2e8] sm:$0xf0] }
  0xf8   :  { %7217 = vrsqrt.f32 %v557_v20  ;;  %v601_v10 = vmax.f32 %v599_v22, 0.0  ;;  %1290 = vmatpush.bf16.msra.mxu3 %v5247_v23  ;;  %vm574_vm5 = vweird.f32 %v557_v20  ;;  %v6824_v22 = vld [vmem:[#allocation6 + $0x244] sm:$0xf]  ;;  %v5200_v23 = vld [vmem:[#allocation6 + $0x248] sm:$0xf0] }
  0xf9   :  { %1317 = vmatpush.bf16.msrb.mxu1 %v4987_v33  ;;  %v5203_v57 = vor.u32 %v6824_v22, %v5200_v23  ;;  %v5056_v33 = vld [vmem:[#allocation6 + $0x128] sm:$0xf0]  ;;  %v6808_v16 = vld [vmem:[#allocation6 + $0x1c4] sm:$0xf] }
  0xfa   :  { %v605_v28 = vrot.slane %v601_v10, 6  ;;  %v6790_v10 = vld [vmem:[#allocation6 + $0x134] sm:$0xf]  ;;  %v5136_v17 = vld [vmem:[#allocation6 + $0x1c8] sm:$0xf0] }
  0xfb   :  { %v5264_v22 = vld [vmem:[#allocation6 + $0x2c8] sm:$0xf0]  ;;  %v5139_v23 = vor.u32 %v6808_v16, %v5136_v17  ;;  %v6859_v16 = vld [vmem:[#allocation8 + $0x54] sm:$0xf0] }
  0xfc   :  { %609 = vst [vmem:[#allocation2 + $0x18] sm:$0xfc] %v605_v28  ;;  %1291 = vmatpush.bf16.msra.mxu3 %v5239_v29  ;;  %v5067_v29 = vor.u32 %v6790_v10, %v5064_v53 }
  0xfd   :  { %1318 = vmatpush.bf16.msrb.mxu1 %v4979_v46  ;;  %v5176_v46 = vld [vmem:[#allocation6 + $0x218] sm:$0xf0] }
  0xfe   :  { %v7218_v36 = vpop.eup %7217  ;;  %v5179_v59 = vor.u32 %v6818_v44, %v5176_v46  ;;  %v5232_v44 = vld [vmem:[#allocation6 + $0x288] sm:$0xf0] }
  0xff   :  { %v569_v37 = vmul.f32 %v7218_v36, %v557_v20  ;;  %vm575_vm4 = vweird.f32 %v7218_v36 }
 0x100   :  { %1292 = vmatpush.bf16.msra.mxu3 %v5231_v38  ;;  %vm576_vm6 = vmor %vm574_vm5, %vm575_vm4  ;;  %v6786_v38 = vld [vmem:[#allocation6 + $0x114] sm:$0xf]  ;;  %vm3046_vm4 = vcmask 1041408  }
 0x101   :  { %v570_v42 = vmul.f32 %v7218_v36, %v569_v37  ;;  %v5059_v37 = vor.u32 %v6788_v32, %v5056_v33  ;;  %v5248_v32 = vld [vmem:[#allocation6 + $0x2a8] sm:$0xf0]  ;;  %v6802_v33 = vld [vmem:[#allocation6 + $0x194] sm:$0xf] }
 0x103   :  { %v571_v47 = vmul.f32 0.5, %v570_v42  ;;  %v611_v50 = vld [vmem:[#allocation2 + $0x18] sm:$0x3f]  ;;  %v6814_v42 = vld [vmem:[#allocation6 + $0x1f4] sm:$0xf] }
 0x104   :  { %v613_v52 = vld [vmem:[#allocation2 + $0x18] sm:$0xfc]  ;;  %v7595_v55 = vpack.c.bf16 %v611_v50, %v611_v50  ;;  %v6784_v50 = vld [vmem:[#allocation6 + $0x104] sm:$0xf] }
 0x105   :  { %v572_v54 = vsub.f32 1.5, %v571_v47  ;;  %v621_v56 = vrot.slane %v613_v52, 2  ;;  %v615_v9 = vld [vmem:[#allocation2 + $0x18] sm:$0xf0]  ;;  %v5051_v47 = vor.u32 %v6786_v38, %v5048_v40  ;;  %v5163_v52 = vor.u32 %v6814_v42, %v5160_v43  ;;  %v6800_v40 = vld [vmem:[#allocation6 + $0x184] sm:$0xf] }
 0x106   :  { %1228 = vmatmul.bf16.vlgmr.msrb.gmra.mxu2 %v7595_v55  ;;  %v630_v20 = vrot.slane %v615_v9, 4  ;;  %v5283_v9 = vor.u32 %v6844_v3, %v5280_v4  ;;  %v6832_v43 = vld [vmem:[#allocation6 + $0x284] sm:$0xf] }
 0x107   :  { %v573_v62 = vmul.f32 %v7218_v36, %v572_v54  ;;  %v7599_v63 = vpack.c.bf16 %v621_v56, %v621_v56  ;;  %1324 = vmatpush.bf16.msrb.mxu2 %v5099_v51  ;;  %v5040_v56 = vld [vmem:[#allocation6 + $0x108] sm:$0xf0] }
 0x108   :  { %v632_v25 = vsel %vm629_vm7, %v630_v20, %v631_v21  ;;  %v634_v20 = vrot.slane %v618_v11, 4  ;;  %v6840_v21 = vld [vmem:[#allocation6 + $0x2c4] sm:$0xf]  ;;  %v5471_v11 = vld [vmem:[#allocation8 + $0x160] sm:$0xf] }
 0x109   :  { %v577_v2 = vsel %vm576_vm6, %v7218_v36, %v573_v62  ;;  %1254 = vmatmul.bf16.vlgmr.msra.gmra.mxu0 %v7599_v63  ;;  %v7606_v30 = vpack.c.bf16 %v632_v25, %v632_v25  ;;  %v5184_v36 = vld [vmem:[#allocation6 + $0x228] sm:$0xf0]  ;;  %v5291_v62 = vor.u32 %v6846_v48, %v5288_v49  ;;  %v5267_v10 = vor.u32 %v6840_v21, %v5264_v22  ;;  %v6891_v21 = vld [vmem:[#allocation8 + $0x154] sm:$0xf0] }
 0x10a   :  { %v585_v5 = vmul.f32 %v581_v60, %v577_v2  ;;  %1350 = vmatpush.bf16.msra.mxu0 %v5227_v61  ;;  %v5187_v41 = vor.u32 %v6820_v35, %v5184_v36  ;;  %v6812_v60 = vld [vmem:[#allocation6 + $0x1e4] sm:$0xf]  ;;  %v5152_v61 = vld [vmem:[#allocation6 + $0x1e8] sm:$0xf0]  ;;  %v5043_v2 = vor.u32 %v6784_v50, %v5040_v56  ;;  %v6834_v36 = vld [vmem:[#allocation6 + $0x294] sm:$0xf] }
 0x10b   :  { %1325 = vmatpush.bf16.msrb.mxu2 %v5091_v1 }
 0x10c   :  { %v589_v13 = vperm.slane %v585_v5, 0  ;;  %v5155_v5 = vor.u32 %v6812_v60, %v5152_v61  ;;  %v5351_v60 = vld [vmem:[#allocation8 + $0x70] sm:$0xf]  ;;  %v6863_v61 = vld [vmem:[#allocation8 + $0x74] sm:$0xf0] }
 0x10e   :  { %v591_v18 = vmul.f32 %v589_v13, %v587_v12  ;;  %1351 = vmatpush.bf16.msra.mxu0 %v5219_v31  ;;  %v5171_v31 = vor.u32 %v6816_v0, %v5168_v45  ;;  %v6842_v12 = vld [vmem:[#allocation6 + $0x2d4] sm:$0xf]  ;;  %v5272_v13 = vld [vmem:[#allocation6 + $0x2d8] sm:$0xf0] }
 0x10f   :  { %1326 = vmatpush.bf16.msrb.mxu2 %v5083_v15  ;;  %v5147_v15 = vor.u32 %v6810_v7, %v5144_v8 }
 0x110   :  { %v600_v24 = vadd.f32 %v596_v14, %v591_v18  ;;  %v5275_v18 = vor.u32 %v6842_v12, %v5272_v13  ;;  %v6893_v12 = vld [vmem:[#allocation8 + $0x164] sm:$0xf0] }
 0x112   :  { %v602_v58 = vmax.f32 %v600_v24, 0.0  ;;  %1352 = vmatpush.bf16.msra.mxu0 %v5211_v19  ;;  %v6806_v24 = vld [vmem:[#allocation6 + $0x1b4] sm:$0xf] }
 0x113   :  { %1327 = vmatpush.bf16.msrb.mxu2 %v5075_v6  ;;  %v5128_v6 = vld [vmem:[#allocation6 + $0x1b8] sm:$0xf0] }
 0x114   :  { %v606_v28 = vrot.slane %v602_v58, 6  ;;  %v6838_v58 = vld [vmem:[#allocation6 + $0x2b4] sm:$0xf] }
 0x116   :  { %610 = vst [vmem:[#allocation2 + $0x20] sm:$0xfc] %v606_v28  ;;  %1353 = vmatpush.bf16.msra.mxu0 %v5203_v57  ;;  %1280 = vmatmul.bf16.vlgmr.msra.gmra.mxu2 %v7606_v30  ;;  %v5256_v57 = vld [vmem:[#allocation6 + $0x2b8] sm:$0xf0] }
 0x117   :  { %1328 = vmatpush.bf16.msrb.mxu2 %v5067_v29  ;;  %v5259_v28 = vor.u32 %v6838_v58, %v5256_v57  ;;  %v6836_v29 = vld [vmem:[#allocation6 + $0x2a4] sm:$0xf]  ;;  %v5455_v57 = vld [vmem:[#allocation8 + $0x140] sm:$0xf] }
 0x118   :  { %v5251_v35 = vor.u32 %v6836_v29, %v5248_v32  ;;  %v6855_v29 = vld [vmem:[#allocation8 + $0x34] sm:$0xf0] }
 0x119   :  { %1306 = vmatmul.bf16.vlgmr.msrb.gmra.mxu0 %v7595_v55 }
 0x11a   :  { %1354 = vmatpush.bf16.msra.mxu0 %v5195_v34  ;;  %v5112_v34 = vld [vmem:[#allocation6 + $0x198] sm:$0xf0] }
 0x11b   :  { %1329 = vmatpush.bf16.msrb.mxu2 %v5059_v37  ;;  %v5240_v37 = vld [vmem:[#allocation6 + $0x298] sm:$0xf0]  ;;  %v5115_v38 = vor.u32 %v6802_v33, %v5112_v34  ;;  %v5447_v34 = vld [vmem:[#allocation8 + $0x130] sm:$0xf] }
 0x11c   :  { %v5243_v42 = vor.u32 %v6834_v36, %v5240_v37 }
 0x11d   :  { %v612_v51 = vld [vmem:[#allocation2 + $0x20] sm:$0x3f] }
 0x11e   :  { %v614_v54 = vld [vmem:[#allocation2 + $0x20] sm:$0xfc]  ;;  %1355 = vmatpush.bf16.msra.mxu0 %v5187_v41  ;;  %v639_v39 = vpack.c.bf16 %v612_v51, %v612_v51  ;;  %v5104_v41 = vld [vmem:[#allocation6 + $0x188] sm:$0xf0] }
 0x11f   :  { %v622_v55 = vrot.slane %v614_v54, 2  ;;  %1330 = vmatpush.bf16.msrb.mxu2 %v5051_v47  ;;  %v616_v14 = vld [vmem:[#allocation2 + $0x20] sm:$0xf0]  ;;  %v5107_v46 = vor.u32 %v6800_v40, %v5104_v41  ;;  %v5235_v47 = vor.u32 %v6832_v43, %v5232_v44  ;;  %v5311_v41 = vld [vmem:[#allocation8 + $0x20] sm:$0xf] }
 0x120   :  { %1241 = vmatmul.bf16.vlgmr.msrb.gmra.mxu3 %v639_v39  ;;  %v633_v19 = vrot.slane %v616_v14, 4  ;;  %v5472_v14 = vor.u32 %v6893_v12, %v5471_v11 }
 0x121   :  { %v7610_v1 = vpack.c.bf16 %v622_v55, %v622_v55  ;;  %1337 = vmatpush.bf16.msrb.mxu3 %v5163_v52 }
 0x122   :  { %1356 = vmatpush.bf16.msra.mxu0 %v5179_v59  ;;  %v635_v53 = vsel %vm629_vm7, %v633_v19, %v634_v20  ;;  %v5463_v20 = vld [vmem:[#allocation8 + $0x150] sm:$0xf] }
 0x123   :  { %1267 = vmatmul.bf16.vlgmr.msra.gmra.mxu1 %v7610_v1  ;;  %1331 = vmatpush.bf16.msrb.mxu2 %v5043_v2  ;;  %v643_v25 = vpack.c.bf16 %v635_v53, %v635_v53  ;;  %v5479_v2 = vld [vmem:[#allocation8 + $0x170] sm:$0xf] }
 0x124   :  { %1363 = vmatpush.bf16.msra.mxu1 %v5291_v62  ;;  %v5352_v62 = vor.u32 %v6863_v61, %v5351_v60  ;;  %v6911_v60 = vld [vmem:[#allocation8 + $0x1f4] sm:$0xf0] }
 0x125   :  { %1338 = vmatpush.bf16.msrb.mxu3 %v5155_v5  ;;  %v5343_v5 = vld [vmem:[#allocation8 + $0x60] sm:$0xf] }
 0x126   :  { %1357 = vmatpush.bf16.msra.mxu0 %v5171_v31  ;;  %1332 = vmatmul.bf16.vlgmr.msrb.gmra.mxu2 %v7599_v63  ;;  %v5131_v63 = vor.u32 %v6806_v24, %v5128_v6  ;;  %v6861_v31 = vld [vmem:[#allocation8 + $0x64] sm:$0xf0]  ;;  %v5327_v24 = vld [vmem:[#allocation8 + $0x40] sm:$0xf] }
 0x127   :  { %1863 = vmatpush.bf16.msra.mxu2 %v5352_v62  ;;  %v5344_v7 = vor.u32 %v6861_v31, %v5343_v5  ;;  %v6857_v6 = vld [vmem:[#allocation8 + $0x44] sm:$0xf0]  ;;  %v5303_v62 = vld [vmem:[#allocation8 + $0x10] sm:$0xf] }
 0x128   :  { %1364 = vmatpush.bf16.msra.mxu1 %v5283_v9  ;;  %v6877_v31 = vld [vmem:[#allocation8 + $0xe4] sm:$0xf0] }
 0x129   :  { %1339 = vmatpush.bf16.msrb.mxu3 %v5147_v15  ;;  %1358 = vmatmul.bf16.vlgmr.msra.gmra.mxu0 %v7606_v30  ;;  %v5123_v30 = vor.u32 %v6804_v26, %v5120_v27  ;;  %v5335_v15 = vld [vmem:[#allocation8 + $0x50] sm:$0xf] }
 0x12a   :  { %v5336_v17 = vor.u32 %v6859_v16, %v5335_v15  ;;  %v5535_v15 = vld [vmem:[#allocation8 + $0x1e0] sm:$0xf] }
 0x12b   :  { %1864 = vmatpush.bf16.msra.mxu2 %v5344_v7  ;;  %v5431_v7 = vld [vmem:[#allocation8 + $0x110] sm:$0xf] }
 0x12c   :  { %1365 = vmatpush.bf16.msra.mxu1 %v5275_v18 }
 0x12d   :  { %1340 = vmatpush.bf16.msrb.mxu3 %v5139_v23  ;;  %v5464_v23 = vor.u32 %v6891_v21, %v5463_v20 }
 0x12f   :  { %1865 = vmatpush.bf16.msra.mxu2 %v5336_v17  ;;  %v6909_v17 = vld [vmem:[#allocation8 + $0x1e4] sm:$0xf0] }
 0x130   :  { %1366 = vmatpush.bf16.msra.mxu1 %v5267_v10  ;;  %1293 = vmatmul.bf16.vlgmr.msra.gmra.mxu3 %v643_v25  ;;  %v5328_v10 = vor.u32 %v6857_v6, %v5327_v24  ;;  %v6875_v24 = vld [vmem:[#allocation8 + $0xd4] sm:$0xf0] }
 0x131   :  { %1341 = vmatpush.bf16.msrb.mxu3 %v5131_v63  ;;  %v6889_v63 = vld [vmem:[#allocation8 + $0x144] sm:$0xf0] }
 0x132   :  { %v5456_v26 = vor.u32 %v6889_v63, %v5455_v57 }
 0x133   :  { %1319 = vmatmul.bf16.vlgmr.msrb.gmra.mxu1 %v639_v39  ;;  %1866 = vmatpush.bf16.msra.mxu2 %v5328_v10 }
 0x134   :  { %1367 = vmatpush.bf16.msra.mxu1 %v5259_v28  ;;  %v5319_v28 = vld [vmem:[#allocation8 + $0x30] sm:$0xf] }
 0x135   :  { %1342 = vmatpush.bf16.msrb.mxu3 %v5123_v30  ;;  %v5320_v32 = vor.u32 %v6855_v29, %v5319_v28  ;;  %v5423_v29 = vld [vmem:[#allocation8 + $0x100] sm:$0xf] }
 0x137   :  { %1867 = vmatpush.bf16.msra.mxu2 %v5320_v32  ;;  %v6881_v32 = vld [vmem:[#allocation8 + $0x104] sm:$0xf0] }
 0x138   :  { %1368 = vmatpush.bf16.msra.mxu1 %v5251_v35  ;;  %v6887_v35 = vld [vmem:[#allocation8 + $0x134] sm:$0xf0] }
 0x139   :  { %1343 = vmatpush.bf16.msrb.mxu3 %v5115_v38  ;;  %v5448_v38 = vor.u32 %v6887_v35, %v5447_v34  ;;  %v6907_v35 = vld [vmem:[#allocation8 + $0x1d4] sm:$0xf0] }
 0x13c   :  { %1369 = vmatpush.bf16.msra.mxu1 %v5243_v42  ;;  %v6853_v42 = vld [vmem:[#allocation8 + $0x24] sm:$0xf0] }
 0x13d   :  { %1344 = vmatpush.bf16.msrb.mxu3 %v5107_v46  ;;  %v5312_v46 = vor.u32 %v6853_v42, %v5311_v41  ;;  %v5391_v41 = vld [vmem:[#allocation8 + $0xc0] sm:$0xf]  ;;  %v6873_v42 = vld [vmem:[#allocation8 + $0xc4] sm:$0xf0] }
 0x13f   :  { %1868 = vmatpush.bf16.msra.mxu2 %v5312_v46 }
 0x140   :  { %1370 = vmatpush.bf16.msra.mxu1 %v5235_v47  ;;  %1345 = vmatmul.bf16.vlgmr.msrb.gmra.mxu3 %v7610_v1  ;;  %v6895_v1 = vld [vmem:[#allocation8 + $0x174] sm:$0xf0]  ;;  %v5415_v47 = vld [vmem:[#allocation8 + $0xf0] sm:$0xf] }
 0x141   :  { %v5480_v4 = vor.u32 %v6895_v1, %v5479_v2  ;;  %v6851_v1 = vld [vmem:[#allocation8 + $0x14] sm:$0xf0] }
 0x142   :  { %v5304_v5 = vor.u32 %v6851_v1, %v5303_v62  ;;  %v6871_v62 = vld [vmem:[#allocation8 + $0xb4] sm:$0xf0] }
 0x143   :  { %1371 = vmatmul.bf16.vlgmr.msra.gmra.mxu1 %v643_v25  ;;  %1889 = vmatpush.bf16.msrb.mxu0 %v5480_v4 }
 0x144   :  { %1869 = vmatpush.bf16.msra.mxu2 %v5304_v5 }
 0x147   :  { %1890 = vmatpush.bf16.msrb.mxu0 %v5472_v14  ;;  %v6883_v14 = vld [vmem:[#allocation8 + $0x114] sm:$0xf0] }
 0x148   :  { %v5432_v16 = vor.u32 %v6883_v14, %v5431_v7  ;;  %v6890_v14 = vld [vmem:[#allocation8 + $0x154] sm:$0xf] }
 0x14b   :  { %1891 = vmatpush.bf16.msrb.mxu0 %v5464_v23  ;;  %v5536_v23 = vor.u32 %v6909_v17, %v5535_v15  ;;  %v5465_v17 = vld [vmem:[#allocation8 + $0x158] sm:$0xf0] }
 0x14f   :  { %1892 = vmatpush.bf16.msrb.mxu0 %v5456_v26 }
 0x153   :  { %1893 = vmatpush.bf16.msrb.mxu0 %v5448_v38 }
 0x186   :  { %v1255_v48 = vpop.f32.mrf.mxu0 }
 0x189   :  { %v1229_v49 = vpop.f32.mrf.mxu2 }
 0x18e   :  { %v1257_v50 = vpop.f32.mrf.mxu0 }
 0x18f   :  { %v5439_v50 = vld [vmem:[#allocation8 + $0x120] sm:$0xf] }
 0x191   :  { %v1231_v51 = vpop.f32.mrf.mxu2 }
 0x192   :  { %v6885_v51 = vld [vmem:[#allocation8 + $0x124] sm:$0xf0] }
 0x196   :  { %v7617_v52 = vpop.f32.mrf.mxu0 }
 0x199   :  { %v1281_v54 = vpop.f32.mrf.mxu2 }
 0x19e   :  { %v1309_v56 = vpop.f32.mrf.mxu0 }
 0x1a0   :  { %v1268_v39 = vpop.f32.mrf.mxu1 }
 0x1a1   :  { %v1283_v55 = vpop.f32.mrf.mxu2 }
 0x1a3   :  { %v1242_v59 = vpop.f32.mrf.mxu3 }
 0x1a4   :  { %v1243_v0 = vadd.f32 %v1242_v59, %v1229_v49  ;;  %v5440_v59 = vor.u32 %v6885_v51, %v5439_v50  ;;  %v5519_v50 = vld [vmem:[#allocation8 + $0x1c0] sm:$0xf] }
 0x1a6   :  { %v7619_v45 = vpop.f32.mrf.mxu0  ;;  %v1256_v8 = vadd.f32 %v1255_v48, %v1243_v0  ;;  %v6879_v48 = vld [vmem:[#allocation8 + $0xf4] sm:$0xf0]  ;;  %1894 = vmatpush.bf16.msrb.mxu0 %v5440_v59 }
 0x1a7   :  { %v5416_v49 = vor.u32 %v6879_v48, %v5415_v47  ;;  %v5392_v47 = vor.u32 %v6873_v42, %v5391_v41  ;;  %v6860_v48 = vld [vmem:[#allocation8 + $0x64] sm:$0xf] }
 0x1a8   :  { %v1270_v3 = vpop.f32.mrf.mxu1  ;;  %v1269_v19 = vadd.f32 %v1268_v39, %v1256_v8 }
 0x1a9   :  { %v7621_v9 = vpop.f32.mrf.mxu2  ;;  %1876 = vmatpush.bf16.msra.mxu3 %v5416_v49  ;;  %v5407_v3 = vld [vmem:[#allocation8 + $0xe0] sm:$0xf]  ;;  %v5345_v49 = vld [vmem:[#allocation8 + $0x68] sm:$0xf0] }
 0x1aa   :  { %v1282_v58 = vadd.f32 %v1281_v54, %v1269_v19  ;;  %v5543_v54 = vld [vmem:[#allocation8 + $0x1f0] sm:$0xf]  ;;  %v6849_v19 = vld [vmem:[#allocation8 + $0x4] sm:$0xf0]  ;;  %1895 = vmatpush.bf16.msrb.mxu0 %v5432_v16 }
 0x1ab   :  { %v1244_v13 = vpop.f32.mrf.mxu3  ;;  %v5544_v61 = vor.u32 %v6911_v60, %v5543_v54  ;;  %v5348_v54 = vor.u32 %v6860_v48, %v5345_v49  ;;  %v5359_v48 = vld [vmem:[#allocation8 + $0x80] sm:$0xf]  ;;  %v6865_v49 = vld [vmem:[#allocation8 + $0x84] sm:$0xf0] }
 0x1ac   :  { %v5408_v13 = vor.u32 %v6877_v31, %v5407_v3  ;;  %v6858_v3 = vld [vmem:[#allocation8 + $0x54] sm:$0xf] }
 0x1ad   :  { %1902 = vmatpush.bf16.msrb.mxu1 %v5544_v61  ;;  %v5383_v61 = vld [vmem:[#allocation8 + $0xb0] sm:$0xf] }
 0x1ae   :  { %v1361_v18 = vpop.f32.mrf.mxu0  ;;  %1877 = vmatpush.bf16.msra.mxu3 %v5408_v13  ;;  %v5384_v1 = vor.u32 %v6871_v62, %v5383_v61  ;;  %v6903_v13 = vld [vmem:[#allocation8 + $0x1b4] sm:$0xf0]  ;;  %v6878_v62 = vld [vmem:[#allocation8 + $0xf4] sm:$0xf] }
 0x1af   :  { %v5295_v18 = vld [vmem:[#allocation8] sm:$0xf] }
 0x1b0   :  { %v1320_v22 = vpop.f32.mrf.mxu1 }
 0x1b1   :  { %v1335_v53 = vpop.f32.mrf.mxu2  ;;  %v1321_v4 = vadd.f32 %v1320_v22, %v7617_v52  ;;  %v5296_v52 = vor.u32 %v6849_v19, %v5295_v18  ;;  %v5399_v22 = vld [vmem:[#allocation8 + $0xd0] sm:$0xf]  ;;  %1903 = vmatpush.bf16.msrb.mxu1 %v5536_v23  ;;  %v5375_v18 = vld [vmem:[#allocation8 + $0xa0] sm:$0xf]  ;;  %v6856_v23 = vld [vmem:[#allocation8 + $0x44] sm:$0xf] }
 0x1b2   :  { %v5400_v10 = vor.u32 %v6875_v24, %v5399_v22  ;;  %v6862_v53 = vld [vmem:[#allocation8 + $0x74] sm:$0xf] }
 0x1b3   :  { %v1294_v25 = vpop.f32.mrf.mxu3  ;;  %v1334_v6 = vadd.f32 %v7621_v9, %v1321_v4  ;;  %1870 = vmatpush.bf16.msra.mxu2 %v5296_v52  ;;  %v5424_v9 = vor.u32 %v6881_v32, %v5423_v29  ;;  %v5337_v4 = vld [vmem:[#allocation8 + $0x58] sm:$0xf0]  ;;  %v5329_v52 = vld [vmem:[#allocation8 + $0x48] sm:$0xf0] }
 0x1b4   :  { %v7623_v27 = vadd.f32 %v1294_v25, %v1282_v58  ;;  %v5353_v25 = vld [vmem:[#allocation8 + $0x78] sm:$0xf0]  ;;  %1878 = vmatpush.bf16.msra.mxu3 %v5400_v10  ;;  %v5332_v10 = vor.u32 %v6856_v23, %v5329_v52  ;;  %v6876_v52 = vld [vmem:[#allocation8 + $0xe4] sm:$0xf] }
 0x1b5   :  { %v5356_v28 = vor.u32 %v6862_v53, %v5353_v25  ;;  %1896 = vmatpush.bf16.msrb.mxu0 %v5424_v9  ;;  %v5503_v53 = vld [vmem:[#allocation8 + $0x1a0] sm:$0xf]  ;;  %v6888_v25 = vld [vmem:[#allocation8 + $0x144] sm:$0xf]  ;;  %v5305_v23 = vld [vmem:[#allocation8 + $0x18] sm:$0xf0] }
 0x1b6   :  { %v1376_v30 = vsel %vm515_vm0, %v7623_v27, 0.0  ;;  %v1390_v33 = vmul.f32 %v7623_v27, %v7623_v27 }
 0x1b7   :  { %v1377_v36 = vrot.slane %v1376_v30, 4  ;;  %1915 = vmatpush.bf16.msrb.mxu2 %v5356_v28  ;;  %v5367_v28 = vld [vmem:[#allocation8 + $0x90] sm:$0xf] }
 0x1b8   :  { %v1322_v37 = vpop.f32.mrf.mxu1  ;;  %v1392_v40 = vsel %vm515_vm0, %v1390_v33, 0.0  ;;  %1879 = vmatpush.bf16.msra.mxu3 %v5392_v47 }
 0x1b9   :  { %v1378_v43 = vadd.f32 %v1377_v36, %v1376_v30  ;;  %v1393_v44 = vrot.slane %v1392_v40, 4  ;;  %v5527_v30 = vld [vmem:[#allocation8 + $0x1d0] sm:$0xf]  ;;  %v6894_v36 = vld [vmem:[#allocation8 + $0x174] sm:$0xf] }
 0x1ba   :  { %v5528_v38 = vor.u32 %v6907_v35, %v5527_v30  ;;  %v5321_v35 = vld [vmem:[#allocation8 + $0x38] sm:$0xf0] }
 0x1bb   :  { %v1379_v56 = vrot.slane %v1378_v43, 2  ;;  %v1394_v39 = vadd.f32 %v1393_v44, %v1392_v40  ;;  %v1296_v55 = vpop.f32.mrf.mxu3  ;;  %v5481_v40 = vld [vmem:[#allocation8 + $0x178] sm:$0xf0]  ;;  %1916 = vmatpush.bf16.msrb.mxu2 %v5348_v54 }
 0x1bc   :  { %v5484_v46 = vor.u32 %v6894_v36, %v5481_v40  ;;  %1904 = vmatpush.bf16.msrb.mxu1 %v5528_v38  ;;  %1880 = vmatpush.bf16.msra.mxu3 %v5384_v1  ;;  %v5495_v36 = vld [vmem:[#allocation8 + $0x190] sm:$0xf] }
 0x1bd   :  { %v1380_v0 = vadd.f32 %v1379_v56, %v1378_v43  ;;  %v1395_v2 = vrot.slane %v1394_v39, 2  ;;  %v6905_v56 = vld [vmem:[#allocation8 + $0x1c4] sm:$0xf0] }
 0x1be   :  { %1941 = vmatpush.bf16.msra.mxu0 %v5484_v46  ;;  %v5520_v59 = vor.u32 %v6905_v56, %v5519_v50  ;;  %v7654_v50 = vld [vmem:[%s7992_s4] ss:$2 sm:$0x3] }
 0x1bf   :  { %v1381_v8 = vrot.slane %v1380_v0, 1  ;;  %v1396_v11 = vadd.f32 %v1395_v2, %v1394_v39  ;;  %v6892_v39 = vld [vmem:[#allocation8 + $0x164] sm:$0xf] }
 0x1c0   :  { %v1372_v12 = vpop.f32.mrf.mxu1  ;;  %1905 = vmatpush.bf16.msrb.mxu1 %v5520_v59  ;;  %v5313_v59 = vld [vmem:[#allocation8 + $0x28] sm:$0xf0] }
 0x1c1   :  { %v1382_v20 = vadd.f32 %v1381_v8, %v1380_v0  ;;  %v1397_v21 = vrot.slane %v1396_v11, 1  ;;  %v5340_v8 = vor.u32 %v6858_v3, %v5337_v4 }
 0x1c3   :  { %v1398_v58 = vadd.f32 %v1397_v21, %v1396_v11  ;;  %v7632_v57 = vmul.f32 0.16666667, %v1382_v20  ;;  %v1346_v63 = vpop.f32.mrf.mxu3  ;;  %v5511_v11 = vld [vmem:[#allocation8 + $0x1b0] sm:$0xf]  ;;  %1917 = vmatpush.bf16.msrb.mxu2 %v5340_v8  ;;  %v5468_v20 = vor.u32 %v6890_v14, %v5465_v17  ;;  %v6869_v21 = vld [vmem:[#allocation8 + $0xa4] sm:$0xf0] }
 0x1c4   :  { %v1347_v26 = vadd.f32 %v1346_v63, %v1334_v6  ;;  %v5512_v19 = vor.u32 %v6903_v13, %v5511_v11  ;;  %v5376_v6 = vor.u32 %v6869_v21, %v5375_v18  ;;  %v6910_v13 = vld [vmem:[#allocation8 + $0x1f4] sm:$0xf]  ;;  %v5545_v17 = vld [vmem:[#allocation8 + $0x1f8] sm:$0xf0] }
 0x1c5   :  { %v1408_v33 = vmul.f32 0.16666667, %v1398_v58  ;;  %v1410_v34 = vmul.f32 %v7632_v57, %v7632_v57  ;;  %v6901_v58 = vld [vmem:[#allocation8 + $0x1a4] sm:$0xf0]  ;;  %v6850_v18 = vld [vmem:[#allocation8 + $0x14] sm:$0xf]  ;;  %v5548_v21 = vor.u32 %v6910_v13, %v5545_v17 }
 0x1c6   :  { %v1360_v37 = vadd.f32 %v7619_v45, %v1347_v26  ;;  %v5473_v45 = vld [vmem:[#allocation8 + $0x168] sm:$0xf0]  ;;  %1906 = vmatpush.bf16.msrb.mxu1 %v5512_v19  ;;  %v5504_v63 = vor.u32 %v6901_v58, %v5503_v53  ;;  %1881 = vmatpush.bf16.msra.mxu3 %v5376_v6  ;;  %v5308_v6 = vor.u32 %v6850_v18, %v5305_v23  ;;  %v6882_v53 = vld [vmem:[#allocation8 + $0x114] sm:$0xf]  ;;  %v5433_v58 = vld [vmem:[#allocation8 + $0x118] sm:$0xf0] }
 0x1c7   :  { %v1412_v43 = vsub.f32 %v1408_v33, %v1410_v34  ;;  %v5476_v60 = vor.u32 %v6892_v39, %v5473_v45  ;;  %v5457_v26 = vld [vmem:[#allocation8 + $0x148] sm:$0xf0]  ;;  %v6867_v33 = vld [vmem:[#allocation8 + $0x94] sm:$0xf0]  ;;  %v6854_v34 = vld [vmem:[#allocation8 + $0x34] sm:$0xf]  ;;  %1918 = vmatpush.bf16.msrb.mxu2 %v5332_v10  ;;  %v5360_v45 = vor.u32 %v6865_v49, %v5359_v48 }
 0x1c8   :  { %v1374_v44 = vpop.f32.mrf.mxu1  ;;  %v7637_v51 = vadd.f32 %v1372_v12, %v1360_v37  ;;  %v5460_v30 = vor.u32 %v6888_v25, %v5457_v26  ;;  %v5368_v9 = vor.u32 %v6867_v33, %v5367_v28  ;;  %v6899_v37 = vld [vmem:[#allocation8 + $0x194] sm:$0xf0]  ;;  %v5324_v42 = vor.u32 %v6854_v34, %v5321_v35  ;;  %v5409_v10 = vld [vmem:[#allocation8 + $0xe8] sm:$0xf0]  ;;  %v6908_v26 = vld [vmem:[#allocation8 + $0x1e4] sm:$0xf] }
 0x1c9   :  { %v1414_v55 = vmax.f32 %v1412_v43, 0.0  ;;  %1942 = vmatpush.bf16.msra.mxu0 %v5476_v60  ;;  %v6886_v43 = vld [vmem:[#allocation8 + $0x134] sm:$0xf]  ;;  %v5449_v44 = vld [vmem:[#allocation8 + $0x138] sm:$0xf0]  ;;  %v5496_v47 = vor.u32 %v6899_v37, %v5495_v36  ;;  %v5412_v25 = vor.u32 %v6876_v52, %v5409_v10 }
 0x1ca   :  { %v1383_v0 = vsel %vm515_vm0, %v7637_v51, 0.0  ;;  %v1391_v2 = vmul.f32 %v7637_v51, %v7637_v51  ;;  %1907 = vmatpush.bf16.msrb.mxu1 %v5504_v63  ;;  %1882 = vmatpush.bf16.msra.mxu3 %v5368_v9  ;;  %v5452_v39 = vor.u32 %v6886_v43, %v5449_v44  ;;  %v5537_v28 = vld [vmem:[#allocation8 + $0x1e8] sm:$0xf0]  ;;  %v6848_v33 = vld [vmem:[#allocation8 + $0x4] sm:$0xf] }
 0x1cb   :  { %v7643_v5 = vadd.f32 1e-05, %v1414_v55  ;;  %v1384_v31 = vrot.slane %v1383_v0, 4  ;;  %v1348_v7 = vpop.f32.mrf.mxu3  ;;  %v6852_v55 = vld [vmem:[#allocation8 + $0x24] sm:$0xf]  ;;  %1919 = vmatpush.bf16.msrb.mxu2 %v5324_v42 }
 0x1cc   :  { %v1399_v12 = vsel %vm515_vm0, %v1391_v2, 0.0  ;;  %v5316_v61 = vor.u32 %v6852_v55, %v5313_v59  ;;  %v5487_v2 = vld [vmem:[#allocation8 + $0x180] sm:$0xf]  ;;  %v6884_v7 = vld [vmem:[#allocation8 + $0x124] sm:$0xf] }
 0x1cd   :  { %7219 = vrsqrt.f32 %v7643_v5  ;;  %v1385_v15 = vadd.f32 %v1384_v31, %v1383_v0  ;;  %v1400_v16 = vrot.slane %v1399_v12, 4  ;;  %1943 = vmatpush.bf16.msra.mxu0 %v5468_v20  ;;  %v5417_v0 = vld [vmem:[#allocation8 + $0xf8] sm:$0xf0]  ;;  %v6897_v31 = vld [vmem:[#allocation8 + $0x184] sm:$0xf0]  ;;  %v1440_v20 = vperm.slane %v7654_v50, 0 }
 0x1ce   :  { %v5420_v4 = vor.u32 %v6878_v62, %v5417_v0  ;;  %1908 = vmatpush.bf16.msrb.mxu1 %v5496_v47  ;;  %v5488_v11 = vor.u32 %v6897_v31, %v5487_v2  ;;  %1883 = vmatpush.bf16.msra.mxu3 %v5360_v45  ;;  %vm1424_vm9 = vweird.f32 %v7643_v5  ;;  %v5297_v34 = vld [vmem:[#allocation8 + $0x8] sm:$0xf0]  ;;  %v5401_v36 = vld [vmem:[#allocation8 + $0xd8] sm:$0xf0]  ;;  %v6880_v37 = vld [vmem:[#allocation8 + $0x104] sm:$0xf] }
 0x1cf   :  { %v1386_v22 = vrot.slane %v1385_v15, 2  ;;  %v1401_v24 = vadd.f32 %v1400_v16, %v1399_v12  ;;  %v5441_v12 = vld [vmem:[#allocation8 + $0x128] sm:$0xf0]  ;;  %1920 = vmatpush.bf16.msrb.mxu2 %v5316_v61  ;;  %v5300_v35 = vor.u32 %v6848_v33, %v5297_v34  ;;  %v6906_v44 = vld [vmem:[#allocation8 + $0x1d4] sm:$0xf] }
 0x1d0   :  { %v5444_v16 = vor.u32 %v6884_v7, %v5441_v12  ;;  %v5425_v43 = vld [vmem:[#allocation8 + $0x108] sm:$0xf0]  ;;  %v5529_v48 = vld [vmem:[#allocation8 + $0x1d8] sm:$0xf0]  ;;  %v6904_v59 = vld [vmem:[#allocation8 + $0x1c4] sm:$0xf] }
 0x1d1   :  { %v1387_v29 = vadd.f32 %v1386_v22, %v1385_v15  ;;  %v1402_v32 = vrot.slane %v1401_v24, 2  ;;  %1944 = vmatpush.bf16.msra.mxu0 %v5460_v30  ;;  %v7666_v22 = vld [vmem:[%s7992_s4 + $0x1] ss:$2 sm:$0x3]  ;;  %v5540_v30 = vor.u32 %v6908_v26, %v5537_v28  ;;  %v5385_v62 = vld [vmem:[#allocation8 + $0xb8] sm:$0xf0] }
 0x1d2   :  { %1928 = vmatpush.bf16.msrb.mxu3 %v5420_v4  ;;  %1909 = vmatpush.bf16.msrb.mxu1 %v5488_v11  ;;  %v1455_v47 = vperm.slane %v7666_v22, 0  ;;  %v6902_v4 = vld [vmem:[#allocation8 + $0x1b4] sm:$0xf]  ;;  %v5513_v31 = vld [vmem:[#allocation8 + $0x1b8] sm:$0xf0] }
 0x1d3   :  { %v7647_v38 = vpop.eup %7219  ;;  %v1388_v40 = vrot.slane %v1387_v29, 1  ;;  %v1403_v41 = vadd.f32 %v1402_v32, %v1401_v24  ;;  %v5436_v32 = vor.u32 %v6882_v53, %v5433_v58  ;;  %1921 = vmatpush.bf16.msrb.mxu2 %v5308_v6  ;;  %v6868_v11 = vld [vmem:[#allocation8 + $0xa4] sm:$0xf]  ;;  %v5377_v12 = vld [vmem:[#allocation8 + $0xa8] sm:$0xf0]  ;;  %v1441_v6 = vperm.slane %v7654_v50, 1 }
 0x1d4   :  { %v1419_v46 = vmul.f32 %v7647_v38, %v7643_v5  ;;  %vm1425_vm8 = vweird.f32 %v7647_v38  ;;  %v6874_v5 = vld [vmem:[#allocation8 + $0xd4] sm:$0xf]  ;;  %v5369_v18 = vld [vmem:[#allocation8 + $0x98] sm:$0xf0]  ;;  %v6864_v10 = vld [vmem:[#allocation8 + $0x84] sm:$0xf] }
 0x1d5   :  { %v1389_v54 = vadd.f32 %v1388_v40, %v1387_v29  ;;  %v1404_v56 = vrot.slane %v1403_v41, 1  ;;  %1945 = vmatpush.bf16.msra.mxu0 %v5452_v39  ;;  %vm1426_vm10 = vmor %vm1424_vm9, %vm1425_vm8  ;;  %v5404_v42 = vor.u32 %v6874_v5, %v5401_v36  ;;  %v5393_v39 = vld [vmem:[#allocation8 + $0xc8] sm:$0xf0]  ;;  %v6866_v17 = vld [vmem:[#allocation8 + $0x94] sm:$0xf]  ;;  %v1456_v50 = vperm.slane %v7666_v22, 1 }
 0x1d6   :  { %v1420_v60 = vmul.f32 %v7647_v38, %v1419_v46  ;;  %1954 = vmatpush.bf16.msra.mxu1 %v5548_v21  ;;  %1929 = vmatpush.bf16.msrb.mxu3 %v5412_v25  ;;  %v1446_v46 = vsub.f32 %v7623_v27, %v7632_v57  ;;  %v6870_v57 = vld [vmem:[#allocation8 + $0xb4] sm:$0xf]  ;;  %v5372_v23 = vor.u32 %v6866_v17, %v5369_v18  ;;  %v5361_v53 = vld [vmem:[#allocation8 + $0x88] sm:$0xf0]  ;;  %v6896_v33 = vld [vmem:[#allocation8 + $0x184] sm:$0xf] }
 0x1d7   :  { %v1405_v1 = vadd.f32 %v1404_v56, %v1403_v41  ;;  %v7657_v3 = vmul.f32 0.16666667, %v1389_v54  ;;  %v5532_v54 = vor.u32 %v6906_v44, %v5529_v48  ;;  %v6872_v56 = vld [vmem:[#allocation8 + $0xc4] sm:$0xf]  ;;  %1922 = vmatpush.bf16.msrb.mxu2 %v5300_v35  ;;  %v5388_v0 = vor.u32 %v6870_v57, %v5385_v62  ;;  %v6898_v52 = vld [vmem:[#allocation8 + $0x194] sm:$0xf] }
 0x1d8   :  { %v1421_v8 = vmul.f32 0.5, %v1420_v60  ;;  %v5396_v45 = vor.u32 %v6872_v56, %v5393_v39  ;;  %v5521_v60 = vld [vmem:[#allocation8 + $0x1c8] sm:$0xf0]  ;;  %v5648_v39 = vld [vmem:[#allocation9 + $0xc0] sm:$0xf] }
 0x1d9   :  { %v1409_v14 = vmul.f32 0.16666667, %v1405_v1  ;;  %v1411_v15 = vmul.f32 %v7657_v3, %v7657_v3  ;;  %1946 = vmatpush.bf16.msra.mxu0 %v5444_v16  ;;  %v5524_v27 = vor.u32 %v6904_v59, %v5521_v60  ;;  %v5505_v16 = vld [vmem:[#allocation8 + $0x1a8] sm:$0xf0]  ;;  %v1447_v5 = vsub.f32 %v7637_v51, %v7657_v3  ;;  %v5664_v51 = vld [vmem:[#allocation9 + $0xe0] sm:$0xf] }
 0x1da   :  { %v1422_v19 = vsub.f32 1.5, %v1421_v8  ;;  %1955 = vmatpush.bf16.msra.mxu1 %v5540_v30  ;;  %1930 = vmatpush.bf16.msrb.mxu3 %v5404_v42  ;;  %v5516_v8 = vor.u32 %v6902_v4, %v5513_v31  ;;  %v5364_v30 = vor.u32 %v6864_v10, %v5361_v53  ;;  %v5489_v34 = vld [vmem:[#allocation8 + $0x188] sm:$0xf0]  ;;  %v6942_v3 = vld [vmem:[#allocation9 + $0xec] sm:$0xf0] }
 0x1db   :  { %v1413_v24 = vsub.f32 %v1409_v14, %v1411_v15  ;;  %v5380_v14 = vor.u32 %v6868_v11, %v5377_v12  ;;  %v6900_v15 = vld [vmem:[#allocation8 + $0x1a4] sm:$0xf]  ;;  %v5904_v60 = vld [vmem:[#allocation9 + $0x2c0] sm:$0xf]  ;;  %v6934_v62 = vld [vmem:[#allocation9 + $0xac] sm:$0xf0] }
 0x1dc   :  { %v1423_v63 = vmul.f32 %v7647_v38, %v1422_v19  ;;  %v5632_v57 = vld [vmem:[#allocation9 + $0xa0] sm:$0xf]  ;;  %v6998_v4 = vld [vmem:[#allocation9 + $0x2ac] sm:$0xf0] }
 0x1dd   :  { %v1415_v29 = vmax.f32 %v1413_v24, 0.0  ;;  %1947 = vmatpush.bf16.msra.mxu0 %v5436_v32  ;;  %v5497_v24 = vld [vmem:[#allocation8 + $0x198] sm:$0xf0]  ;;  %v6926_v17 = vld [vmem:[#allocation9 + $0x6c] sm:$0xf0] }
 0x1de   :  { %v1427_v9 = vsel %vm1426_vm10, %v7647_v38, %v1423_v63  ;;  %v5428_v38 = vor.u32 %v6880_v37, %v5425_v43  ;;  %1956 = vmatpush.bf16.msra.mxu1 %v5532_v54  ;;  %1931 = vmatpush.bf16.msrb.mxu3 %v5396_v45  ;;  %v5492_v37 = vor.u32 %v6896_v33, %v5489_v34  ;;  %v7006_v54 = vld [vmem:[#allocation9 + $0x2ec] sm:$0xf0]  ;;  %v5792_v18 = vld [vmem:[#allocation9 + $0x1e0] sm:$0xf] }
 0x1df   :  { %v1444_v40 = vmul.f32 %v1440_v20, %v1427_v9  ;;  %v1417_v41 = vadd.f32 1e-05, %v1415_v29  ;;  %v5508_v20 = vor.u32 %v6900_v15, %v5505_v16  ;;  %v5500_v29 = vor.u32 %v6898_v52, %v5497_v24  ;;  %v6938_v45 = vld [vmem:[#allocation9 + $0xcc] sm:$0xf0]  ;;  %v5600_v16 = vld [vmem:[#allocation9 + $0x60] sm:$0xf] }
 0x1e0   :  { %v5649_v59 = vor.u32 %v6938_v45, %v5648_v39  ;;  %v5856_v52 = vld [vmem:[#allocation9 + $0x260] sm:$0xf]  ;;  %v6990_v24 = vld [vmem:[#allocation9 + $0x26c] sm:$0xf0] }
 0x1e1   :  { %v1448_v49 = vperm.slane %v1444_v40, 0  ;;  %7221 = vrsqrt.f32 %v1417_v41  ;;  %1948 = vmatpush.bf16.msra.mxu0 %v5428_v38  ;;  %vm1434_vm12 = vweird.f32 %v1417_v41  ;;  %v5920_v38 = vld [vmem:[#allocation9 + $0x2e0] sm:$0xf]  ;;  %v5857_v10 = vor.u32 %v6990_v24, %v5856_v52  ;;  %v7038_v53 = vld [vmem:[#allocation9 + $0x3ec] sm:$0xf0] }
 0x1e2   :  { %1957 = vmatpush.bf16.msra.mxu1 %v5524_v27  ;;  %1932 = vmatpush.bf16.msrb.mxu3 %v5388_v0  ;;  %v5921_v56 = vor.u32 %v7006_v54, %v5920_v38  ;;  %v5840_v34 = vld [vmem:[#allocation9 + $0x240] sm:$0xf]  ;;  %v7030_v54 = vld [vmem:[#allocation9 + $0x3ac] sm:$0xf0]  ;;  %v6936_v24 = vld [vmem:[#allocation9 + $0xc4] sm:$0xf] }
 0x1e3   :  { %v1450_v55 = vmul.f32 %v1448_v49, %v1446_v46  ;;  %v5665_v49 = vor.u32 %v6942_v3, %v5664_v51  ;;  %v5824_v51 = vld [vmem:[#allocation9 + $0x220] sm:$0xf]  ;;  %v6982_v3 = vld [vmem:[#allocation9 + $0x22c] sm:$0xf0] }
 0x1e4   :  { %v5825_v38 = vor.u32 %v6982_v3, %v5824_v51  ;;  %v5552_v45 = vld [vmem:[#allocation9] sm:$0xf]  ;;  %v5890_v51 = vld [vmem:[#allocation9 + $0x2b0] sm:$0xf0] }
 0x1e5   :  { %v1459_v61 = vadd.f32 %v1455_v47, %v1450_v55  ;;  %v5696_v3 = vld [vmem:[#allocation9 + $0x120] sm:$0xf] }
 0x1e6   :  { %1958 = vmatpush.bf16.msra.mxu1 %v5516_v8  ;;  %1933 = vmatpush.bf16.msrb.mxu3 %v5380_v14  ;;  %v6930_v8 = vld [vmem:[#allocation9 + $0x8c] sm:$0xf0] }
 0x1e7   :  { %v7222_v2 = vpop.eup %7221  ;;  %v1461_v1 = vmax.f32 %v1459_v61, 0.0  ;;  %v7002_v61 = vld [vmem:[#allocation9 + $0x2cc] sm:$0xf0] }
 0x1e8   :  { %v1429_v7 = vmul.f32 %v7222_v2, %v1417_v41  ;;  %vm1435_vm11 = vweird.f32 %v7222_v2  ;;  %v5905_v27 = vor.u32 %v7002_v61, %v5904_v60  ;;  %v6994_v14 = vld [vmem:[#allocation9 + $0x28c] sm:$0xf0]  ;;  %v5744_v60 = vld [vmem:[#allocation9 + $0x180] sm:$0xf] }
 0x1e9   :  { %1463 = vst [vmem:[#allocation2 + $0x18] sm:$0x3f] %v1461_v1  ;;  %vm1436_vm13 = vmor %vm1434_vm12, %vm1435_vm11  ;;  %v5888_v1 = vld [vmem:[#allocation9 + $0x2a0] sm:$0xf] }
 0x1ea   :  { %v1430_v13 = vmul.f32 %v7222_v2, %v1429_v7  ;;  %1959 = vmatpush.bf16.msra.mxu1 %v5508_v20  ;;  %1934 = vmatpush.bf16.msrb.mxu3 %v5372_v23  ;;  %v5889_v31 = vor.u32 %v6998_v4, %v5888_v1  ;;  %v5616_v7 = vld [vmem:[#allocation9 + $0x80] sm:$0xf]  ;;  %v5601_v20 = vor.u32 %v6926_v17, %v5600_v16 }
 0x1eb   :  { %v5617_v12 = vor.u32 %v6930_v8, %v5616_v7  ;;  %v6978_v7 = vld [vmem:[#allocation9 + $0x20c] sm:$0xf0] }
 0x1ec   :  { %v1431_v19 = vmul.f32 0.5, %v1430_v13  ;;  %v5872_v13 = vld [vmem:[#allocation9 + $0x280] sm:$0xf] }
 0x1ed   :  { %v5873_v15 = vor.u32 %v6994_v14, %v5872_v13  ;;  %v5922_v13 = vld [vmem:[#allocation9 + $0x2f0] sm:$0xf0] }
 0x1ee   :  { %v1432_v21 = vsub.f32 1.5, %v1431_v19  ;;  %1960 = vmatpush.bf16.msra.mxu1 %v5500_v29  ;;  %1935 = vmatpush.bf16.msrb.mxu3 %v5364_v30  ;;  %v6970_v30 = vld [vmem:[#allocation9 + $0x1cc] sm:$0xf0] }
 0x1f0   :  { %v1433_v58 = vmul.f32 %v7222_v2, %v1432_v21  ;;  %v1465_v63 = vld [vmem:[#allocation2 + $0x18] sm:$0xf]  ;;  %v6974_v21 = vld [vmem:[#allocation9 + $0x1ec] sm:$0xf0] }
 0x1f1   :  { %v1467_v25 = vld [vmem:[#allocation2 + $0x18] sm:$0x3c]  ;;  %v1475_v26 = vpack.c.bf16 %v1465_v63, %v1465_v63  ;;  %v5793_v23 = vor.u32 %v6974_v21, %v5792_v18  ;;  %v5584_v63 = vld [vmem:[#allocation9 + $0x40] sm:$0xf] }
 0x1f2   :  { %v1471_v28 = vrot.slane %v1467_v25, 2  ;;  %v1437_v32 = vsel %vm1436_vm13, %v7222_v2, %v1433_v58  ;;  %1961 = vmatpush.bf16.msra.mxu1 %v5492_v37  ;;  %v5633_v2 = vor.u32 %v6934_v62, %v5632_v57  ;;  %v6922_v25 = vld [vmem:[#allocation9 + $0x4c] sm:$0xf0]  ;;  %v5568_v37 = vld [vmem:[#allocation9 + $0x20] sm:$0xf] }
 0x1f3   :  { %v1445_v9 = vmul.f32 %v1441_v6, %v1437_v32  ;;  %1871 = vmatmul.bf16.vlgmr.msra.gmra.mxu2 %v1475_v26  ;;  %v6048_v6 = vld [vmem:[#allocation9 + $0x3e0] sm:$0xf]  ;;  %v5585_v32 = vor.u32 %v6922_v25, %v5584_v63  ;;  %v6940_v62 = vld [vmem:[#allocation9 + $0xe4] sm:$0xf]  ;;  %v7022_v63 = vld [vmem:[#allocation9 + $0x36c] sm:$0xf0] }
 0x1f4   :  { %v1477_v35 = vpack.c.bf16 %v1471_v28, %v1471_v28  ;;  %2838 = vmatpush.bf16.msra.mxu2 %v5665_v49  ;;  %v6049_v58 = vor.u32 %v7038_v53, %v6048_v6  ;;  %v6016_v49 = vld [vmem:[#allocation9 + $0x3a0] sm:$0xf]  ;;  %v5650_v6 = vld [vmem:[#allocation9 + $0xd0] sm:$0xf0] }
 0x1f5   :  { %v1449_v36 = vperm.slane %v1445_v9, 0  ;;  %v6986_v9 = vld [vmem:[#allocation9 + $0x24c] sm:$0xf0]  ;;  %v6017_v39 = vor.u32 %v7030_v54, %v6016_v49  ;;  %v5728_v18 = vld [vmem:[#allocation9 + $0x160] sm:$0xf]  ;;  %v5653_v53 = vor.u32 %v6936_v24, %v5650_v6 }
 0x1f6   :  { %1897 = vmatmul.bf16.vlgmr.msrb.gmra.mxu0 %v1477_v35  ;;  %v6950_v49 = vld [vmem:[#allocation9 + $0x12c] sm:$0xf0] }
 0x1f7   :  { %v1451_v40 = vmul.f32 %v1449_v36, %v1447_v5  ;;  %2864 = vmatpush.bf16.msrb.mxu0 %v5921_v56  ;;  %v7034_v5 = vld [vmem:[#allocation9 + $0x3cc] sm:$0xf0] }
 0x1f8   :  { %2839 = vmatpush.bf16.msra.mxu2 %v5649_v59  ;;  %v6914_v59 = vld [vmem:[#allocation9 + $0xc] sm:$0xf0] }
 0x1f9   :  { %v1460_v41 = vadd.f32 %v1456_v50, %v1451_v40  ;;  %v5841_v50 = vor.u32 %v6986_v9, %v5840_v34  ;;  %v6918_v40 = vld [vmem:[#allocation9 + $0x2c] sm:$0xf0]  ;;  %v5553_v57 = vor.u32 %v6914_v59, %v5552_v45  ;;  %v5712_v34 = vld [vmem:[#allocation9 + $0x140] sm:$0xf]  ;;  %v5697_v45 = vor.u32 %v6950_v49, %v5696_v3  ;;  %v6928_v59 = vld [vmem:[#allocation9 + $0x84] sm:$0xf] }
 0x1fa   :  { %v6954_v9 = vld [vmem:[#allocation9 + $0x14c] sm:$0xf0] }
 0x1fb   :  { %v1462_v42 = vmax.f32 %v1460_v41, 0.0  ;;  %2865 = vmatpush.bf16.msrb.mxu0 %v5905_v27  ;;  %v5760_v41 = vld [vmem:[#allocation9 + $0x1a0] sm:$0xf]  ;;  %v7010_v24 = vld [vmem:[#allocation9 + $0x30c] sm:$0xf0] }
 0x1fc   :  { %2840 = vmatpush.bf16.msra.mxu2 %v5633_v2 }
 0x1fd   :  { %1464 = vst [vmem:[#allocation2 + $0x20] sm:$0x3f] %v1462_v42 }
 0x1ff   :  { %2866 = vmatpush.bf16.msrb.mxu0 %v5889_v31  ;;  %v5808_v31 = vld [vmem:[#allocation9 + $0x200] sm:$0xf] }
 0x200   :  { %2841 = vmatpush.bf16.msra.mxu2 %v5617_v12  ;;  %v5809_v8 = vor.u32 %v6978_v7, %v5808_v31  ;;  %v7004_v12 = vld [vmem:[#allocation9 + $0x2e4] sm:$0xf]  ;;  %v5874_v31 = vld [vmem:[#allocation9 + $0x290] sm:$0xf0] }
 0x201   :  { %v5925_v17 = vor.u32 %v7004_v12, %v5922_v13  ;;  %v6946_v13 = vld [vmem:[#allocation9 + $0x10c] sm:$0xf0] }
 0x203   :  { %1923 = vmatmul.bf16.vlgmr.msrb.gmra.mxu2 %v1475_v26  ;;  %2867 = vmatpush.bf16.msrb.mxu0 %v5873_v15  ;;  %v5776_v26 = vld [vmem:[#allocation9 + $0x1c0] sm:$0xf] }
 0x204   :  { %v1466_v43 = vld [vmem:[#allocation2 + $0x20] sm:$0xf]  ;;  %2842 = vmatpush.bf16.msra.mxu2 %v5601_v20  ;;  %v5777_v33 = vor.u32 %v6970_v30, %v5776_v26  ;;  %v6958_v20 = vld [vmem:[#allocation9 + $0x16c] sm:$0xf0]  ;;  %v5906_v30 = vld [vmem:[#allocation9 + $0x2d0] sm:$0xf0] }
 0x205   :  { %v1468_v44 = vld [vmem:[#allocation2 + $0x20] sm:$0x3c]  ;;  %v1476_v46 = vpack.c.bf16 %v1466_v43, %v1466_v43  ;;  %v5729_v52 = vor.u32 %v6958_v20, %v5728_v18  ;;  %v5794_v20 = vld [vmem:[#allocation9 + $0x1f0] sm:$0xf0] }
 0x206   :  { %1949 = vmatmul.bf16.vlgmr.msra.gmra.mxu0 %v1477_v35  ;;  %v1472_v47 = vrot.slane %v1468_v44, 2  ;;  %v6032_v35 = vld [vmem:[#allocation9 + $0x3c0] sm:$0xf]  ;;  %v5569_v44 = vor.u32 %v6918_v40, %v5568_v37  ;;  %v6932_v37 = vld [vmem:[#allocation9 + $0xa4] sm:$0xf] }
 0x207   :  { %1884 = vmatmul.bf16.vlgmr.msra.gmra.mxu3 %v1476_v46  ;;  %2868 = vmatpush.bf16.msrb.mxu0 %v5857_v10  ;;  %v6033_v36 = vor.u32 %v7034_v5, %v6032_v35  ;;  %v5634_v40 = vld [vmem:[#allocation9 + $0xb0] sm:$0xf0]  ;;  %v6972_v18 = vld [vmem:[#allocation9 + $0x1e4] sm:$0xf] }
 0x208   :  { %v1478_v22 = vpack.c.bf16 %v1472_v47, %v1472_v47  ;;  %2851 = vmatpush.bf16.msra.mxu3 %v5793_v23  ;;  %2843 = vmatpush.bf16.msra.mxu2 %v5585_v32  ;;  %v7000_v32 = vld [vmem:[#allocation9 + $0x2c4] sm:$0xf] }
 0x20a   :  { %1910 = vmatmul.bf16.vlgmr.msrb.gmra.mxu1 %v1478_v22 }
 0x20b   :  { %2877 = vmatpush.bf16.msrb.mxu1 %v6049_v58  ;;  %2869 = vmatpush.bf16.msrb.mxu0 %v5841_v50  ;;  %v5984_v58 = vld [vmem:[#allocation9 + $0x360] sm:$0xf] }
 0x20c   :  { %2852 = vmatpush.bf16.msra.mxu3 %v5777_v33  ;;  %2844 = vmatpush.bf16.msra.mxu2 %v5569_v44  ;;  %v5909_v33 = vor.u32 %v7000_v32, %v5906_v30 }
 0x20f   :  { %2878 = vmatpush.bf16.msrb.mxu1 %v6033_v36  ;;  %2870 = vmatpush.bf16.msrb.mxu0 %v5825_v38  ;;  %v5713_v36 = vor.u32 %v6954_v9, %v5712_v34  ;;  %v6050_v34 = vld [vmem:[#allocation9 + $0x3f0] sm:$0xf0] }
 0x210   :  { %2845 = vmatpush.bf16.msra.mxu2 %v5553_v57  ;;  %v5952_v57 = vld [vmem:[#allocation9 + $0x320] sm:$0xf] }
 0x213   :  { %2879 = vmatpush.bf16.msrb.mxu1 %v6017_v39  ;;  %2871 = vmatpush.bf16.msrb.mxu0 %v5809_v8  ;;  %v5680_v8 = vld [vmem:[#allocation9 + $0x100] sm:$0xf] }
 0x217   :  { %1936 = vmatmul.bf16.vlgmr.msrb.gmra.mxu3 %v1476_v46  ;;  %v6966_v46 = vld [vmem:[#allocation9 + $0x1ac] sm:$0xf0]  ;;  %2916 = vmatpush.bf16.msra.mxu0 %v5925_v17  ;;  %v5602_v17 = vld [vmem:[#allocation9 + $0x70] sm:$0xf0] }
 0x21a   :  { %1962 = vmatmul.bf16.vlgmr.msra.gmra.mxu1 %v1478_v22  ;;  %v5761_v22 = vor.u32 %v6966_v46, %v5760_v41  ;;  %v5637_v41 = vor.u32 %v6932_v37, %v5634_v40  ;;  %v7018_v46 = vld [vmem:[#allocation9 + $0x34c] sm:$0xf0] }
 0x21b   :  { %2917 = vmatpush.bf16.msra.mxu0 %v5909_v33  ;;  %v7036_v33 = vld [vmem:[#allocation9 + $0x3e4] sm:$0xf] }
 0x21c   :  { %2853 = vmatpush.bf16.msra.mxu3 %v5761_v22 }
 0x273   :  { %v7680_v48 = vpop.f32.mrf.mxu0 }
 0x276   :  { %v7682_v55 = vpop.f32.mrf.mxu2 }
 0x27b   :  { %v1900_v0 = vpop.f32.mrf.mxu0 }
 0x27c   :  { %v5666_v0 = vld [vmem:[#allocation9 + $0xf0] sm:$0xf0] }
 0x27d   :  { %v5669_v4 = vor.u32 %v6940_v62, %v5666_v0 }
 0x27e   :  { %v1874_v11 = vpop.f32.mrf.mxu2 }
 0x27f   :  { %v7026_v11 = vld [vmem:[#allocation9 + $0x38c] sm:$0xf0]  ;;  %2890 = vmatpush.bf16.msrb.mxu2 %v5669_v4  ;;  %v6992_v4 = vld [vmem:[#allocation9 + $0x284] sm:$0xf] }
 0x283   :  { %v7684_v19 = vpop.f32.mrf.mxu0  ;;  %2891 = vmatpush.bf16.msrb.mxu2 %v5653_v53  ;;  %v5797_v53 = vor.u32 %v6972_v18, %v5794_v20 }
 0x286   :  { %v7686_v29 = vpop.f32.mrf.mxu2 }
 0x287   :  { %v1911_v28 = vpop.f32.mrf.mxu1  ;;  %2892 = vmatpush.bf16.msrb.mxu2 %v5637_v41 }
 0x28a   :  { %v1885_v42 = vpop.f32.mrf.mxu3 }
 0x28b   :  { %v1952_v43 = vpop.f32.mrf.mxu0  ;;  %v1886_v47 = vadd.f32 %v1885_v42, %v7682_v55  ;;  %v6962_v55 = vld [vmem:[#allocation9 + $0x18c] sm:$0xf0]  ;;  %v5968_v42 = vld [vmem:[#allocation9 + $0x340] sm:$0xf] }
 0x28c   :  { %v5745_v1 = vor.u32 %v6962_v55, %v5744_v60  ;;  %v5969_v22 = vor.u32 %v7018_v46, %v5968_v42  ;;  %v5618_v60 = vld [vmem:[#allocation9 + $0x90] sm:$0xf0]  ;;  %v7014_v55 = vld [vmem:[#allocation9 + $0x32c] sm:$0xf0]  ;;  %v6968_v42 = vld [vmem:[#allocation9 + $0x1c4] sm:$0xf] }
 0x28d   :  { %v1899_v56 = vadd.f32 %v7680_v48, %v1886_v47  ;;  %v6000_v48 = vld [vmem:[#allocation9 + $0x380] sm:$0xf]  ;;  %v6996_v47 = vld [vmem:[#allocation9 + $0x2a4] sm:$0xf] }
 0x28e   :  { %v1926_v27 = vpop.f32.mrf.mxu2  ;;  %2854 = vmatpush.bf16.msra.mxu3 %v5745_v1  ;;  %v6001_v16 = vor.u32 %v7026_v11, %v6000_v48  ;;  %v5893_v39 = vor.u32 %v6996_v47, %v5890_v51  ;;  %v5953_v1 = vor.u32 %v7014_v55, %v5952_v57  ;;  %v5877_v48 = vor.u32 %v6992_v4, %v5874_v31  ;;  %v6984_v46 = vld [vmem:[#allocation9 + $0x244] sm:$0xf]  ;;  %v5842_v47 = vld [vmem:[#allocation9 + $0x250] sm:$0xf0] }
 0x28f   :  { %v1913_v61 = vpop.f32.mrf.mxu1  ;;  %v7690_v2 = vadd.f32 %v1911_v28, %v1899_v56  ;;  %v5985_v28 = vor.u32 %v7022_v63, %v5984_v58  ;;  %v5621_v27 = vor.u32 %v6928_v59, %v5618_v60  ;;  %v6988_v63 = vld [vmem:[#allocation9 + $0x264] sm:$0xf] }
 0x290   :  { %2880 = vmatpush.bf16.msrb.mxu1 %v6001_v16  ;;  %2918 = vmatpush.bf16.msra.mxu0 %v5893_v39  ;;  %v5681_v16 = vor.u32 %v6946_v13, %v5680_v8  ;;  %v6916_v39 = vld [vmem:[#allocation9 + $0x24] sm:$0xf] }
 0x291   :  { %v1967_v14 = vsel %vm629_vm7, %v7690_v2, 0.0  ;;  %v1981_v15 = vmul.f32 %v7690_v2, %v7690_v2  ;;  %2893 = vmatpush.bf16.msrb.mxu2 %v5621_v27  ;;  %v6964_v59 = vld [vmem:[#allocation9 + $0x1a4] sm:$0xf]  ;;  %v5762_v27 = vld [vmem:[#allocation9 + $0x1b0] sm:$0xf0] }
 0x292   :  { %v1968_v21 = vrot.slane %v1967_v14, 4  ;;  %v1887_v23 = vpop.f32.mrf.mxu3  ;;  %2855 = vmatpush.bf16.msra.mxu3 %v5729_v52  ;;  %v5936_v52 = vld [vmem:[#allocation9 + $0x300] sm:$0xf]  ;;  %v6980_v57 = vld [vmem:[#allocation9 + $0x224] sm:$0xf] }
 0x293   :  { %v1983_v10 = vsel %vm629_vm7, %v1981_v15, 0.0  ;;  %v5937_v58 = vor.u32 %v7010_v24, %v5936_v52  ;;  %v6912_v8 = vld [vmem:[#allocation9 + $0x4] sm:$0xf] }
 0x294   :  { %v1969_v25 = vadd.f32 %v1968_v21, %v1967_v14  ;;  %v1984_v26 = vrot.slane %v1983_v10, 4  ;;  %2881 = vmatpush.bf16.msrb.mxu1 %v5985_v28  ;;  %v6924_v14 = vld [vmem:[#allocation9 + $0x64] sm:$0xf]  ;;  %2919 = vmatpush.bf16.msra.mxu0 %v5877_v48  ;;  %v6018_v48 = vld [vmem:[#allocation9 + $0x3b0] sm:$0xf0] }
 0x295   :  { %v5605_v23 = vor.u32 %v6924_v14, %v5602_v17  ;;  %v6960_v13 = vld [vmem:[#allocation9 + $0x184] sm:$0xf]  ;;  %v5746_v14 = vld [vmem:[#allocation9 + $0x190] sm:$0xf0] }
 0x296   :  { %v1970_v35 = vrot.slane %v1969_v25, 2  ;;  %v1985_v50 = vadd.f32 %v1984_v26, %v1983_v10  ;;  %2856 = vmatpush.bf16.msra.mxu3 %v5713_v36  ;;  %v5749_v20 = vor.u32 %v6960_v13, %v5746_v14 }
 0x297   :  { %v1963_v5 = vpop.f32.mrf.mxu1  ;;  %2894 = vmatpush.bf16.msrb.mxu2 %v5605_v23  ;;  %v7024_v23 = vld [vmem:[#allocation9 + $0x384] sm:$0xf] }
 0x298   :  { %v1971_v43 = vadd.f32 %v1970_v35, %v1969_v25  ;;  %v1986_v44 = vrot.slane %v1985_v50, 2  ;;  %2882 = vmatpush.bf16.msrb.mxu1 %v5969_v22  ;;  %v5858_v25 = vld [vmem:[#allocation9 + $0x270] sm:$0xf0]  ;;  %v6053_v35 = vor.u32 %v7036_v33, %v6050_v34  ;;  %v7032_v22 = vld [vmem:[#allocation9 + $0x3c4] sm:$0xf] }
 0x299   :  { %v5861_v30 = vor.u32 %v6988_v63, %v5858_v25  ;;  %v6956_v25 = vld [vmem:[#allocation9 + $0x164] sm:$0xf] }
 0x29a   :  { %v1972_v38 = vrot.slane %v1971_v43, 1  ;;  %v1987_v54 = vadd.f32 %v1986_v44, %v1985_v50  ;;  %v1937_v56 = vpop.f32.mrf.mxu3  ;;  %2857 = vmatpush.bf16.msra.mxu3 %v5697_v45  ;;  %v6920_v50 = vld [vmem:[#allocation9 + $0x44] sm:$0xf]  ;;  %v5570_v45 = vld [vmem:[#allocation9 + $0x30] sm:$0xf0] }
 0x29b   :  { %v1938_v61 = vadd.f32 %v1937_v56, %v7686_v29  ;;  %2920 = vmatpush.bf16.msra.mxu0 %v5861_v30  ;;  %v5573_v55 = vor.u32 %v6916_v39, %v5570_v45  ;;  %v7020_v34 = vld [vmem:[#allocation9 + $0x364] sm:$0xf] }
 0x29c   :  { %v1973_v62 = vadd.f32 %v1972_v38, %v1971_v43  ;;  %v1988_v0 = vrot.slane %v1987_v54, 1  ;;  %2883 = vmatpush.bf16.msrb.mxu1 %v5953_v1  ;;  %v5778_v43 = vld [vmem:[#allocation9 + $0x1d0] sm:$0xf0]  ;;  %v5845_v38 = vor.u32 %v6984_v46, %v5842_v47  ;;  %v7028_v1 = vld [vmem:[#allocation9 + $0x3a4] sm:$0xf] }
 0x29d   :  { %v1951_v7 = vadd.f32 %v7684_v19, %v1938_v61  ;;  %v5781_v44 = vor.u32 %v6968_v42, %v5778_v43  ;;  %v5970_v46 = vld [vmem:[#allocation9 + $0x350] sm:$0xf0] }
 0x29e   :  { %v1989_v11 = vadd.f32 %v1988_v0, %v1987_v54  ;;  %v7699_v12 = vmul.f32 0.25, %v1973_v62  ;;  %2858 = vmatpush.bf16.msra.mxu3 %v5681_v16  ;;  %v6034_v54 = vld [vmem:[#allocation9 + $0x3d0] sm:$0xf0]  ;;  %v5765_v62 = vor.u32 %v6964_v59, %v5762_v27  ;;  %v7012_v59 = vld [vmem:[#allocation9 + $0x324] sm:$0xf] }
 0x29f   :  { %v1965_v29 = vpop.f32.mrf.mxu1  ;;  %v7701_v15 = vadd.f32 %v1963_v5, %v1951_v7  ;;  %v5586_v5 = vld [vmem:[#allocation9 + $0x50] sm:$0xf0]  ;;  %v6037_v56 = vor.u32 %v7032_v22, %v6034_v54  ;;  %2921 = vmatpush.bf16.msra.mxu0 %v5845_v38  ;;  %v6948_v38 = vld [vmem:[#allocation9 + $0x124] sm:$0xf] }
 0x2a0   :  { %v1999_v21 = vmul.f32 0.25, %v1989_v11  ;;  %v2001_v19 = vmul.f32 %v7699_v12, %v7699_v12  ;;  %2884 = vmatpush.bf16.msrb.mxu1 %v5937_v58  ;;  %v5589_v41 = vor.u32 %v6920_v50, %v5586_v5  ;;  %v5826_v0 = vld [vmem:[#allocation9 + $0x230] sm:$0xf0]  ;;  %v6021_v11 = vor.u32 %v7028_v1, %v6018_v48 }
 0x2a1   :  { %v1974_v6 = vsel %vm629_vm7, %v7701_v15, 0.0  ;;  %v1982_v10 = vmul.f32 %v7701_v15, %v7701_v15  ;;  %v5829_v7 = vor.u32 %v6980_v57, %v5826_v0  ;;  %v5554_v29 = vld [vmem:[#allocation9 + $0x10] sm:$0xf0]  ;;  %v6944_v57 = vld [vmem:[#allocation9 + $0x104] sm:$0xf] }
 0x2a2   :  { %v2003_v26 = vsub.f32 %v1999_v21, %v2001_v19  ;;  %v1975_v28 = vrot.slane %v1974_v6, 4  ;;  %v1939_v32 = vpop.f32.mrf.mxu3  ;;  %2903 = vmatpush.bf16.msrb.mxu3 %v5797_v53  ;;  %2895 = vmatpush.bf16.msrb.mxu2 %v5589_v41  ;;  %v5557_v18 = vor.u32 %v6912_v8, %v5554_v29  ;;  %v6976_v21 = vld [vmem:[#allocation9 + $0x204] sm:$0xf]  ;;  %v5810_v19 = vld [vmem:[#allocation9 + $0x210] sm:$0xf0] }
 0x2a3   :  { %v1990_v9 = vsel %vm629_vm7, %v1982_v10, 0.0  ;;  %2922 = vmatpush.bf16.msra.mxu0 %v5829_v7  ;;  %v5813_v10 = vor.u32 %v6976_v21, %v5810_v19  ;;  %v6002_v53 = vld [vmem:[#allocation9 + $0x390] sm:$0xf0] }
 0x2a4   :  { %v2005_v36 = vmax.f32 %v2003_v26, 0.0  ;;  %v1976_v37 = vadd.f32 %v1975_v28, %v1974_v6  ;;  %v1991_v40 = vrot.slane %v1990_v9, 4  ;;  %2929 = vmatpush.bf16.msra.mxu1 %v6053_v35  ;;  %v6005_v63 = vor.u32 %v7024_v23, %v6002_v53  ;;  %v5730_v26 = vld [vmem:[#allocation9 + $0x170] sm:$0xf0]  ;;  %v5928_v23 = vld [vmem:[#allocation9 + $0x2e8] sm:$0xf] }
 0x2a5   :  { %v5733_v33 = vor.u32 %v6956_v25, %v5730_v26  ;;  %v7721_v35 = vld [vmem:[%s7994_s6] ss:$2 sm:$0x3]  ;;  %v5698_v54 = vld [vmem:[#allocation9 + $0x130] sm:$0xf0] }
 0x2a6   :  { %v7710_v51 = vadd.f32 1e-05, %v2005_v36  ;;  %v1977_v3 = vrot.slane %v1976_v37, 2  ;;  %v1992_v49 = vadd.f32 %v1991_v40, %v1990_v9  ;;  %2904 = vmatpush.bf16.msrb.mxu3 %v5781_v44  ;;  %2896 = vmatpush.bf16.msrb.mxu2 %v5573_v55  ;;  %v5986_v9 = vld [vmem:[#allocation9 + $0x370] sm:$0xf0]  ;;  %v2031_v47 = vperm.slane %v7721_v35, 0 }
 0x2a7   :  { %2923 = vmatpush.bf16.msra.mxu0 %v5813_v10  ;;  %v5989_v5 = vor.u32 %v7020_v34, %v5986_v9  ;;  %v5714_v40 = vld [vmem:[#allocation9 + $0x150] sm:$0xf0]  ;;  %v7016_v44 = vld [vmem:[#allocation9 + $0x344] sm:$0xf]  ;;  %v5701_v39 = vor.u32 %v6948_v38, %v5698_v54  ;;  %v5608_v38 = vld [vmem:[#allocation9 + $0x68] sm:$0xf] }
 0x2a8   :  { %7223 = vrsqrt.f32 %v7710_v51  ;;  %v1978_v60 = vadd.f32 %v1977_v3, %v1976_v37  ;;  %v1993_v61 = vrot.slane %v1992_v49, 2  ;;  %2930 = vmatpush.bf16.msra.mxu1 %v6037_v56  ;;  %v6952_v37 = vld [vmem:[#allocation9 + $0x144] sm:$0xf]  ;;  %v5973_v3 = vor.u32 %v7016_v44, %v5970_v46  ;;  %v5549_v56 = vld [vmem:[%s7994_s6 + $0x1] ss:$2 sm:$0x3] }
 0x2a9   :  { %v5717_v42 = vor.u32 %v6952_v37, %v5714_v40  ;;  %vm2015_vm15 = vweird.f32 %v7710_v51  ;;  %v5682_v55 = vld [vmem:[#allocation9 + $0x110] sm:$0xf0]  ;;  %v2046_v0 = vperm.slane %v5549_v56, 0  ;;  %v5624_v44 = vld [vmem:[#allocation9 + $0x88] sm:$0xf] }
 0x2aa   :  { %v1979_v4 = vrot.slane %v1978_v60, 1  ;;  %v1994_v31 = vadd.f32 %v1993_v61, %v1992_v49  ;;  %2905 = vmatpush.bf16.msrb.mxu3 %v5765_v62  ;;  %2897 = vmatpush.bf16.msrb.mxu2 %v5557_v18  ;;  %v5685_v1 = vor.u32 %v6944_v57, %v5682_v55  ;;  %v5938_v48 = vld [vmem:[#allocation9 + $0x310] sm:$0xf0]  ;;  %v5672_v18 = vld [vmem:[#allocation9 + $0xe8] sm:$0xf] }
 0x2ab   :  { %v6931_v46 = vld [vmem:[#allocation9 + $0x94] sm:$0xf0]  ;;  %v5592_v57 = vld [vmem:[#allocation9 + $0x48] sm:$0xf] }
 0x2ac   :  { %v1980_v16 = vadd.f32 %v1979_v4, %v1978_v60  ;;  %v1995_v17 = vrot.slane %v1994_v31, 1  ;;  %2931 = vmatpush.bf16.msra.mxu1 %v6021_v11  ;;  %v5954_v60 = vld [vmem:[#allocation9 + $0x330] sm:$0xf0]  ;;  %v7008_v4 = vld [vmem:[#allocation9 + $0x304] sm:$0xf] }
 0x2ad   :  { %v5957_v27 = vor.u32 %v7012_v59, %v5954_v60  ;;  %v5941_v11 = vor.u32 %v7008_v4, %v5938_v48  ;;  %v6927_v54 = vld [vmem:[#allocation9 + $0x74] sm:$0xf0]  ;;  %v5864_v59 = vld [vmem:[#allocation9 + $0x268] sm:$0xf] }
 0x2ae   :  { %v7224_v52 = vpop.eup %7223  ;;  %v1996_v24 = vadd.f32 %v1995_v17, %v1994_v31  ;;  %v7713_v6 = vmul.f32 0.25, %v1980_v16  ;;  %2906 = vmatpush.bf16.msrb.mxu3 %v5749_v20  ;;  %v6943_v20 = vld [vmem:[#allocation9 + $0xf4] sm:$0xf0] }
 0x2af   :  { %v2010_v58 = vmul.f32 %v7224_v52, %v7710_v51  ;;  %vm2016_vm14 = vweird.f32 %v7224_v52  ;;  %v2037_v51 = vsub.f32 %v7690_v2, %v7699_v12  ;;  %v2032_v2 = vperm.slane %v7721_v35, 1  ;;  %v5912_v35 = vld [vmem:[#allocation9 + $0x2c8] sm:$0xf]  ;;  %v6991_v60 = vld [vmem:[#allocation9 + $0x274] sm:$0xf0] }
 0x2b0   :  { %v2000_v28 = vmul.f32 0.25, %v1996_v24  ;;  %v2002_v32 = vmul.f32 %v7713_v6, %v7713_v6  ;;  %2932 = vmatpush.bf16.msra.mxu1 %v6005_v63  ;;  %vm2017_vm0 = vmor %vm2015_vm15, %vm2016_vm14  ;;  %v2047_v24 = vperm.slane %v5549_v56, 1  ;;  %v5673_v53 = vor.u32 %v6943_v20, %v5672_v18  ;;  %v5800_v56 = vld [vmem:[#allocation9 + $0x1e8] sm:$0xf]  ;;  %v6971_v48 = vld [vmem:[#allocation9 + $0x1d4] sm:$0xf0] }
 0x2b1   :  { %v2011_v30 = vmul.f32 %v7224_v52, %v2010_v58  ;;  %v2038_v63 = vsub.f32 %v7701_v15, %v7713_v6  ;;  %v5640_v15 = vld [vmem:[#allocation9 + $0xa8] sm:$0xf]  ;;  %v6935_v6 = vld [vmem:[#allocation9 + $0xb4] sm:$0xf0] }
 0x2b2   :  { %v2004_v50 = vsub.f32 %v2000_v28, %v2002_v32  ;;  %2907 = vmatpush.bf16.msrb.mxu3 %v5733_v33  ;;  %v5656_v32 = vld [vmem:[#allocation9 + $0xc8] sm:$0xf]  ;;  %v6919_v20 = vld [vmem:[#allocation9 + $0x34] sm:$0xf0] }
 0x2b3   :  { %v2012_v36 = vmul.f32 0.5, %v2011_v30  ;;  %v6939_v30 = vld [vmem:[#allocation9 + $0xd4] sm:$0xf0]  ;;  %v5576_v18 = vld [vmem:[#allocation9 + $0x28] sm:$0xf] }
 0x2b4   :  { %v2006_v41 = vmax.f32 %v2004_v50, 0.0  ;;  %2933 = vmatpush.bf16.msra.mxu1 %v5989_v5  ;;  %v7003_v50 = vld [vmem:[#allocation9 + $0x2d4] sm:$0xf0]  ;;  %v5657_v5 = vor.u32 %v6939_v30, %v5656_v32  ;;  %v5752_v30 = vld [vmem:[#allocation9 + $0x188] sm:$0xf] }
 0x2b5   :  { %v2013_v43 = vsub.f32 1.5, %v2012_v36  ;;  %v5913_v37 = vor.u32 %v7003_v50, %v5912_v35  ;;  %v6915_v32 = vld [vmem:[#allocation9 + $0x14] sm:$0xf0]  ;;  %v6941_v50 = vld [vmem:[#allocation9 + $0xec] sm:$0xf] }
 0x2b6   :  { %v2008_v22 = vadd.f32 1e-05, %v2006_v41  ;;  %2908 = vmatpush.bf16.msrb.mxu3 %v5717_v42  ;;  %v5896_v41 = vld [vmem:[#allocation9 + $0x2a8] sm:$0xf]  ;;  %v6999_v42 = vld [vmem:[#allocation9 + $0x2b4] sm:$0xf0] }
 0x2b7   :  { %v2014_v49 = vmul.f32 %v7224_v52, %v2013_v43  ;;  %v5641_v43 = vor.u32 %v6935_v6, %v5640_v15  ;;  %v6979_v15 = vld [vmem:[#allocation9 + $0x214] sm:$0xf0]  ;;  %v6008_v6 = vld [vmem:[#allocation9 + $0x388] sm:$0xf] }
 0x2b8   :  { %7225 = vrsqrt.f32 %v2008_v22  ;;  %2934 = vmatpush.bf16.msra.mxu1 %v5973_v3  ;;  %vm2025_vm2 = vweird.f32 %v2008_v22  ;;  %v6995_v3 = vld [vmem:[#allocation9 + $0x294] sm:$0xf0] }
 0x2b9   :  { %v2018_v45 = vsel %vm2017_vm0, %v7224_v52, %v2014_v49  ;;  %v7007_v52 = vld [vmem:[#allocation9 + $0x2f4] sm:$0xf0]  ;;  %v5625_v49 = vor.u32 %v6931_v46, %v5624_v44  ;;  %v5736_v46 = vld [vmem:[#allocation9 + $0x168] sm:$0xf] }
 0x2ba   :  { %v2035_v61 = vmul.f32 %v2031_v47, %v2018_v45  ;;  %2909 = vmatpush.bf16.msrb.mxu3 %v5701_v39  ;;  %v5929_v33 = vor.u32 %v7007_v52, %v5928_v23  ;;  %v5897_v47 = vor.u32 %v6999_v42, %v5896_v41  ;;  %v6975_v39 = vld [vmem:[#allocation9 + $0x1f4] sm:$0xf0]  ;;  %v7005_v42 = vld [vmem:[#allocation9 + $0x2ec] sm:$0xf] }
 0x2bc   :  { %v2039_v62 = vperm.slane %v2035_v61, 0  ;;  %2935 = vmatpush.bf16.msra.mxu1 %v5957_v27  ;;  %v6056_v61 = vld [vmem:[#allocation9 + $0x3e8] sm:$0xf]  ;;  %v7039_v27 = vld [vmem:[#allocation9 + $0x3f4] sm:$0xf0] }
 0x2be   :  { %v7226_v31 = vpop.eup %7225  ;;  %v2041_v7 = vmul.f32 %v2039_v62, %v2037_v51  ;;  %2910 = vmatpush.bf16.msrb.mxu3 %v5685_v1  ;;  %v5609_v51 = vor.u32 %v6927_v54, %v5608_v38  ;;  %v5801_v62 = vor.u32 %v6975_v39, %v5800_v56  ;;  %v6923_v1 = vld [vmem:[#allocation9 + $0x54] sm:$0xf0]  ;;  %v5658_v38 = vld [vmem:[#allocation9 + $0xd8] sm:$0xf0]  ;;  %v5992_v56 = vld [vmem:[#allocation9 + $0x368] sm:$0xf] }
 0x2bf   :  { %v2020_v8 = vmul.f32 %v7226_v31, %v2008_v22  ;;  %vm2026_vm1 = vweird.f32 %v7226_v31  ;;  %v5880_v22 = vld [vmem:[#allocation9 + $0x288] sm:$0xf]  ;;  %v7023_v39 = vld [vmem:[#allocation9 + $0x374] sm:$0xf0] }
 0x2c0   :  { %v2050_v29 = vadd.f32 %v2046_v0, %v2041_v7  ;;  %2936 = vmatpush.bf16.msra.mxu1 %v5941_v11  ;;  %vm2027_vm3 = vmor %vm2025_vm2, %vm2026_vm1  ;;  %v5881_v45 = vor.u32 %v6995_v3, %v5880_v22  ;;  %v5784_v7 = vld [vmem:[#allocation9 + $0x1c8] sm:$0xf]  ;;  %v6057_v11 = vor.u32 %v7039_v27, %v6056_v61 }
 0x2c1   :  { %v2021_v13 = vmul.f32 %v7226_v31, %v2020_v8  ;;  %v5865_v8 = vor.u32 %v6991_v60, %v5864_v59  ;;  %v7001_v59 = vld [vmem:[#allocation9 + $0x2cc] sm:$0xf]  ;;  %v5914_v60 = vld [vmem:[#allocation9 + $0x2d8] sm:$0xf0]  ;;  %v5720_v27 = vld [vmem:[#allocation9 + $0x148] sm:$0xf] }
 0x2c2   :  { %v2052_v14 = vmax.f32 %v2050_v29, 0.0  ;;  %v5848_v29 = vld [vmem:[#allocation9 + $0x248] sm:$0xf] }
 0x2c3   :  { %v2022_v16 = vmul.f32 0.5, %v2021_v13 }
 0x2c4   :  { %2054 = vst [vmem:[#allocation2 + $0x18] sm:$0xf] %v2052_v14  ;;  %v6987_v14 = vld [vmem:[#allocation9 + $0x254] sm:$0xf0] }
 0x2c5   :  { %v2023_v17 = vsub.f32 1.5, %v2022_v16  ;;  %v6040_v16 = vld [vmem:[#allocation9 + $0x3c8] sm:$0xf]  ;;  %v5849_v23 = vor.u32 %v6987_v14, %v5848_v29  ;;  %v6951_v14 = vld [vmem:[#allocation9 + $0x134] sm:$0xf0] }
 0x2c6   :  { %v5704_v29 = vld [vmem:[#allocation9 + $0x128] sm:$0xf] }
 0x2c7   :  { %v2024_v12 = vmul.f32 %v7226_v31, %v2023_v17  ;;  %v7035_v17 = vld [vmem:[#allocation9 + $0x3d4] sm:$0xf0] }
 0x2c8   :  { %v6041_v52 = vor.u32 %v7035_v17, %v6040_v16  ;;  %v6929_v17 = vld [vmem:[#allocation9 + $0x8c] sm:$0xf] }
 0x2c9   :  { %v2028_v21 = vsel %vm2027_vm3, %v7226_v31, %v2024_v12  ;;  %v5785_v12 = vor.u32 %v6971_v48, %v5784_v7  ;;  %v6997_v48 = vld [vmem:[#allocation9 + $0x2ac] sm:$0xf] }
 0x2ca   :  { %v2036_v19 = vmul.f32 %v2032_v2, %v2028_v21  ;;  %v5593_v2 = vor.u32 %v6923_v1, %v5592_v57  ;;  %v5768_v21 = vld [vmem:[#allocation9 + $0x1a8] sm:$0xf]  ;;  %v6955_v57 = vld [vmem:[#allocation9 + $0x154] sm:$0xf0] }
 0x2cb   :  { %v2056_v10 = vld [vmem:[#allocation2 + $0x18] sm:$0x3]  ;;  %v2058_v58 = vld [vmem:[#allocation2 + $0x18] sm:$0xc]  ;;  %v5976_v1 = vld [vmem:[#allocation9 + $0x348] sm:$0xf]  ;;  %v5721_v7 = vor.u32 %v6955_v57, %v5720_v27 }
 0x2cc   :  { %v2040_v25 = vperm.slane %v2036_v19, 0  ;;  %v7733_v26 = vpack.c.bf16 %v2056_v10, %v2056_v10  ;;  %v2062_v28 = vrot.slane %v2058_v58, 2  ;;  %v6967_v19 = vld [vmem:[#allocation9 + $0x1b4] sm:$0xf0]  ;;  %v6981_v27 = vld [vmem:[#allocation9 + $0x22c] sm:$0xf] }
 0x2cd   :  { %v6983_v10 = vld [vmem:[#allocation9 + $0x234] sm:$0xf0]  ;;  %v5834_v57 = vld [vmem:[#allocation9 + $0x238] sm:$0xf0] }
 0x2ce   :  { %v2042_v34 = vmul.f32 %v2040_v25, %v2038_v63  ;;  %2846 = vmatmul.bf16.vlgmr.msra.gmra.mxu2 %v7733_v26  ;;  %v7736_v9 = vpack.c.bf16 %v2062_v28, %v2062_v28  ;;  %v7031_v58 = vld [vmem:[#allocation9 + $0x3b4] sm:$0xf0]  ;;  %v5577_v63 = vor.u32 %v6919_v20, %v5576_v18  ;;  %v5769_v25 = vor.u32 %v6967_v19, %v5768_v21  ;;  %v5560_v28 = vld [vmem:[#allocation9 + $0x8] sm:$0xf]  ;;  %v6993_v19 = vld [vmem:[#allocation9 + $0x28c] sm:$0xf] }
 0x2cf   :  { %2942 = vmatpush.bf16.msra.mxu2 %v5673_v53  ;;  %v6024_v53 = vld [vmem:[#allocation9 + $0x3a8] sm:$0xf]  ;;  %v7015_v20 = vld [vmem:[#allocation9 + $0x334] sm:$0xf0]  ;;  %v5705_v21 = vor.u32 %v6951_v14, %v5704_v29  ;;  %v6977_v29 = vld [vmem:[#allocation9 + $0x20c] sm:$0xf] }
 0x2d0   :  { %v2051_v36 = vadd.f32 %v2047_v24, %v2042_v34  ;;  %2872 = vmatmul.bf16.vlgmr.msrb.gmra.mxu0 %v7736_v9  ;;  %v5832_v24 = vld [vmem:[#allocation9 + $0x228] sm:$0xf]  ;;  %v6025_v35 = vor.u32 %v7031_v58, %v6024_v53  ;;  %v6925_v53 = vld [vmem:[#allocation9 + $0x6c] sm:$0xf]  ;;  %v5818_v14 = vld [vmem:[#allocation9 + $0x218] sm:$0xf0] }
 0x2d1   :  { %2968 = vmatpush.bf16.msrb.mxu0 %v5929_v33  ;;  %v6963_v33 = vld [vmem:[#allocation9 + $0x194] sm:$0xf0]  ;;  %v5833_v34 = vor.u32 %v6983_v10, %v5832_v24  ;;  %v5960_v18 = vld [vmem:[#allocation9 + $0x328] sm:$0xf] }
 0x2d2   :  { %v2053_v40 = vmax.f32 %v2051_v36, 0.0  ;;  %v5816_v36 = vld [vmem:[#allocation9 + $0x208] sm:$0xf]  ;;  %v5753_v41 = vor.u32 %v6963_v33, %v5752_v30  ;;  %v6947_v10 = vld [vmem:[#allocation9 + $0x114] sm:$0xf0]  ;;  %v5961_v58 = vor.u32 %v7015_v20, %v5960_v18 }
 0x2d3   :  { %2943 = vmatpush.bf16.msra.mxu2 %v5657_v5  ;;  %v5674_v5 = vld [vmem:[#allocation9 + $0xf8] sm:$0xf0]  ;;  %v5817_v22 = vor.u32 %v6979_v15, %v5816_v36  ;;  %v5688_v24 = vld [vmem:[#allocation9 + $0x108] sm:$0xf]  ;;  %v7011_v33 = vld [vmem:[#allocation9 + $0x314] sm:$0xf0] }
 0x2d4   :  { %2055 = vst [vmem:[#allocation2 + $0x20] sm:$0xf] %v2053_v40  ;;  %v5561_v40 = vor.u32 %v6915_v32, %v5560_v28  ;;  %v5677_v44 = vor.u32 %v6941_v50, %v5674_v5  ;;  %v5802_v28 = vld [vmem:[#allocation9 + $0x1f8] sm:$0xf0]  ;;  %v5944_v30 = vld [vmem:[#allocation9 + $0x308] sm:$0xf] }
 0x2d5   :  { %2969 = vmatpush.bf16.msrb.mxu0 %v5913_v37  ;;  %v7027_v37 = vld [vmem:[#allocation9 + $0x394] sm:$0xf0]  ;;  %v5866_v50 = vld [vmem:[#allocation9 + $0x278] sm:$0xf0]  ;;  %v7037_v5 = vld [vmem:[#allocation9 + $0x3ec] sm:$0xf] }
 0x2d6   :  { %v6009_v3 = vor.u32 %v7027_v37, %v6008_v6  ;;  %v6058_v36 = vld [vmem:[#allocation9 + $0x3f8] sm:$0xf0]  ;;  %v6921_v37 = vld [vmem:[#allocation9 + $0x4c] sm:$0xf] }
 0x2d7   :  { %2944 = vmatpush.bf16.msra.mxu2 %v5641_v43  ;;  %v5930_v43 = vld [vmem:[#allocation9 + $0x2f8] sm:$0xf0]  ;;  %v6957_v18 = vld [vmem:[#allocation9 + $0x16c] sm:$0xf] }
 0x2d8   :  { %v5933_v54 = vor.u32 %v7005_v42, %v5930_v43  ;;  %v6969_v42 = vld [vmem:[#allocation9 + $0x1cc] sm:$0xf]  ;;  %v5786_v43 = vld [vmem:[#allocation9 + $0x1d8] sm:$0xf0] }
 0x2d9   :  { %2970 = vmatpush.bf16.msrb.mxu0 %v5897_v47  ;;  %v6959_v47 = vld [vmem:[#allocation9 + $0x174] sm:$0xf0]  ;;  %v5738_v20 = vld [vmem:[#allocation9 + $0x178] sm:$0xf0] }
 0x2db   :  { %2945 = vmatpush.bf16.msra.mxu2 %v5625_v49  ;;  %v2057_v55 = vld [vmem:[#allocation2 + $0x20] sm:$0x3]  ;;  %v2059_v0 = vld [vmem:[#allocation2 + $0x20] sm:$0xc]  ;;  %v6937_v49 = vld [vmem:[#allocation9 + $0xcc] sm:$0xf] }
 0x2dc   :  { %v7739_v4 = vpack.c.bf16 %v2057_v55, %v2057_v55  ;;  %v2063_v31 = vrot.slane %v2059_v0, 2  ;;  %v5661_v61 = vor.u32 %v6937_v49, %v5658_v38  ;;  %v5993_v55 = vor.u32 %v7023_v39, %v5992_v56  ;;  %v6042_v49 = vld [vmem:[#allocation9 + $0x3d8] sm:$0xf0]  ;;  %v6917_v56 = vld [vmem:[#allocation9 + $0x2c] sm:$0xf] }
 0x2dd   :  { %2971 = vmatpush.bf16.msrb.mxu0 %v5881_v45  ;;  %v5737_v45 = vor.u32 %v6959_v47, %v5736_v46  ;;  %v5917_v0 = vor.u32 %v7001_v59, %v5914_v60  ;;  %v6061_v46 = vor.u32 %v7037_v5, %v6058_v36  ;;  %v6985_v47 = vld [vmem:[#allocation9 + $0x24c] sm:$0xf]  ;;  %v5578_v39 = vld [vmem:[#allocation9 + $0x38] sm:$0xf0] }
 0x2de   :  { %2859 = vmatmul.bf16.vlgmr.msra.gmra.mxu3 %v7739_v4  ;;  %2898 = vmatmul.bf16.vlgmr.msrb.gmra.mxu2 %v7733_v26  ;;  %v7743_v13 = vpack.c.bf16 %v2063_v31, %v2063_v31  ;;  %v7019_v31 = vld [vmem:[#allocation9 + $0x354] sm:$0xf0]  ;;  %v5770_v59 = vld [vmem:[#allocation9 + $0x1b8] sm:$0xf0]  ;;  %v6945_v5 = vld [vmem:[#allocation9 + $0x10c] sm:$0xf] }
 0x2df   :  { %2946 = vmatpush.bf16.msra.mxu2 %v5609_v51  ;;  %2955 = vmatpush.bf16.msra.mxu3 %v5801_v62  ;;  %v6933_v51 = vld [vmem:[#allocation9 + $0xac] sm:$0xf]  ;;  %v5642_v62 = vld [vmem:[#allocation9 + $0xb8] sm:$0xf0]  ;;  %v5977_v16 = vor.u32 %v7019_v31, %v5976_v1 }
 0x2e0   :  { %2885 = vmatmul.bf16.vlgmr.msrb.gmra.mxu1 %v7743_v13  ;;  %2924 = vmatmul.bf16.vlgmr.msra.gmra.mxu0 %v7736_v9  ;;  %v6913_v1 = vld [vmem:[#allocation9 + $0xc] sm:$0xf]  ;;  %v5562_v31 = vld [vmem:[#allocation9 + $0x18] sm:$0xf0] }
 0x2e1   :  { %2972 = vmatpush.bf16.msrb.mxu0 %v5865_v8  ;;  %2981 = vmatpush.bf16.msrb.mxu1 %v6057_v11  ;;  %v5898_v8 = vld [vmem:[#allocation9 + $0x2b8] sm:$0xf0]  ;;  %v5645_v11 = vor.u32 %v6933_v51, %v5642_v62  ;;  %v5581_v62 = vor.u32 %v6917_v56, %v5578_v39  ;;  %v6129_v56 = vld [vmem:[#allocation11 + $0x80] sm:$0xf]  ;;  %v7058_v39 = vld [vmem:[#allocation11 + $0x8c] sm:$0xf0] }
 0x2e2   :  { %v6026_v51 = vld [vmem:[#allocation9 + $0x3b8] sm:$0xf0] }
 0x2e3   :  { %2947 = vmatpush.bf16.msra.mxu2 %v5593_v2  ;;  %2956 = vmatpush.bf16.msra.mxu3 %v5785_v12  ;;  %v5626_v2 = vld [vmem:[#allocation9 + $0x98] sm:$0xf0]  ;;  %v5901_v12 = vor.u32 %v6997_v48, %v5898_v8  ;;  %v5837_v8 = vor.u32 %v6981_v27, %v5834_v57  ;;  %v7102_v27 = vld [vmem:[#allocation11 + $0x1ec] sm:$0xf0] }
 0x2e4   :  { %v5754_v48 = vld [vmem:[#allocation9 + $0x198] sm:$0xf0] }
 0x2e5   :  { %2973 = vmatpush.bf16.msrb.mxu0 %v5849_v23  ;;  %2982 = vmatpush.bf16.msrb.mxu1 %v6041_v52  ;;  %v5882_v23 = vld [vmem:[#allocation9 + $0x298] sm:$0xf0]  ;;  %v5629_v52 = vor.u32 %v6929_v17, %v5626_v2  ;;  %v5565_v2 = vor.u32 %v6913_v1, %v5562_v31  ;;  %v6289_v1 = vld [vmem:[#allocation11 + $0x1c0] sm:$0xf] }
 0x2e6   :  { %v5885_v32 = vor.u32 %v6993_v19, %v5882_v23  ;;  %v6010_v17 = vld [vmem:[#allocation9 + $0x398] sm:$0xf0]  ;;  %v7021_v23 = vld [vmem:[#allocation9 + $0x36c] sm:$0xf] }
 0x2e7   :  { %2948 = vmatpush.bf16.msra.mxu2 %v5577_v63  ;;  %2957 = vmatpush.bf16.msra.mxu3 %v5769_v25  ;;  %v5610_v63 = vld [vmem:[#allocation9 + $0x78] sm:$0xf0]  ;;  %v6973_v25 = vld [vmem:[#allocation9 + $0x1ec] sm:$0xf] }
 0x2e8   :  { %v5613_v15 = vor.u32 %v6925_v53, %v5610_v63  ;;  %v5805_v6 = vor.u32 %v6973_v25, %v5802_v28  ;;  %v5722_v53 = vld [vmem:[#allocation9 + $0x158] sm:$0xf0]  ;;  %v7017_v63 = vld [vmem:[#allocation9 + $0x34c] sm:$0xf] }
 0x2e9   :  { %2974 = vmatpush.bf16.msrb.mxu0 %v5833_v34  ;;  %2983 = vmatpush.bf16.msrb.mxu1 %v6025_v35  ;;  %v6989_v34 = vld [vmem:[#allocation9 + $0x26c] sm:$0xf]  ;;  %v5689_v35 = vor.u32 %v6947_v10, %v5688_v24  ;;  %v5741_v24 = vor.u32 %v6957_v18, %v5738_v20  ;;  %v5978_v25 = vld [vmem:[#allocation9 + $0x358] sm:$0xf0] }
 0x2ea   :  { %v6953_v10 = vld [vmem:[#allocation9 + $0x14c] sm:$0xf]  ;;  %v5690_v36 = vld [vmem:[#allocation9 + $0x118] sm:$0xf0] }
 0x2eb   :  { %2949 = vmatpush.bf16.msra.mxu2 %v5561_v40  ;;  %2958 = vmatpush.bf16.msra.mxu3 %v5753_v41  ;;  %v5945_v40 = vor.u32 %v7011_v33, %v5944_v30  ;;  %v5594_v41 = vld [vmem:[#allocation9 + $0x58] sm:$0xf0]  ;;  %v5725_v28 = vor.u32 %v6953_v10, %v5722_v53  ;;  %v5981_v33 = vor.u32 %v7017_v63, %v5978_v25  ;;  %v7068_v63 = vld [vmem:[#allocation11 + $0xe4] sm:$0xf]  ;;  %v6179_v25 = vld [vmem:[#allocation11 + $0xf0] sm:$0xf0] }
 0x2ec   :  { %v5597_v38 = vor.u32 %v6921_v37, %v5594_v41  ;;  %v5706_v30 = vld [vmem:[#allocation9 + $0x138] sm:$0xf0]  ;;  %v5693_v37 = vor.u32 %v6945_v5, %v5690_v36  ;;  %v7070_v41 = vld [vmem:[#allocation11 + $0xec] sm:$0xf0]  ;;  %v6241_v5 = vld [vmem:[#allocation11 + $0x160] sm:$0xf] }
 0x2ed   :  { %2975 = vmatpush.bf16.msrb.mxu0 %v5817_v22  ;;  %2984 = vmatpush.bf16.msrb.mxu1 %v6009_v3  ;;  %v5850_v22 = vld [vmem:[#allocation9 + $0x258] sm:$0xf0]  ;;  %v7033_v3 = vld [vmem:[#allocation9 + $0x3cc] sm:$0xf]  ;;  %v7086_v36 = vld [vmem:[#allocation11 + $0x16c] sm:$0xf0] }
 0x2ee   :  { %2911 = vmatmul.bf16.vlgmr.msrb.gmra.mxu3 %v7739_v4  ;;  %2950 = vmatmul.bf16.vlgmr.msra.gmra.mxu2 %v7733_v26  ;;  %v5853_v60 = vor.u32 %v6985_v47, %v5850_v22 }
 0x2ef   :  { %2994 = vmatpush.bf16.msrb.mxu2 %v5677_v44  ;;  %2959 = vmatpush.bf16.msra.mxu3 %v5737_v45  ;;  %v5869_v44 = vor.u32 %v6989_v34, %v5866_v50  ;;  %v6965_v45 = vld [vmem:[#allocation9 + $0x1ac] sm:$0xf] }
 0x2f0   :  { %2937 = vmatmul.bf16.vlgmr.msra.gmra.mxu1 %v7743_v13  ;;  %2976 = vmatmul.bf16.vlgmr.msrb.gmra.mxu0 %v7736_v9  ;;  %v7013_v34 = vld [vmem:[#allocation9 + $0x32c] sm:$0xf] }
 0x2f1   :  { %3020 = vmatpush.bf16.msra.mxu0 %v5933_v54  ;;  %2985 = vmatpush.bf16.msrb.mxu1 %v5993_v55  ;;  %v5789_v54 = vor.u32 %v6969_v42, %v5786_v43  ;;  %v7029_v55 = vld [vmem:[#allocation9 + $0x3ac] sm:$0xf] }
 0x2f3   :  { %2995 = vmatpush.bf16.msrb.mxu2 %v5661_v61  ;;  %2960 = vmatpush.bf16.msra.mxu3 %v5721_v7  ;;  %v6045_v61 = vor.u32 %v7033_v3, %v6042_v49  ;;  %v6961_v7 = vld [vmem:[#allocation9 + $0x18c] sm:$0xf]  ;;  %v6145_v3 = vld [vmem:[#allocation11 + $0xa0] sm:$0xf]  ;;  %v7062_v49 = vld [vmem:[#allocation11 + $0xac] sm:$0xf0] }
 0x2f5   :  { %3021 = vmatpush.bf16.msra.mxu0 %v5917_v0  ;;  %2986 = vmatpush.bf16.msrb.mxu1 %v5977_v16  ;;  %v5773_v0 = vor.u32 %v6965_v45, %v5770_v59  ;;  %v7025_v16 = vld [vmem:[#allocation9 + $0x38c] sm:$0xf]  ;;  %v6113_v45 = vld [vmem:[#allocation11 + $0x60] sm:$0xf]  ;;  %v7054_v59 = vld [vmem:[#allocation11 + $0x6c] sm:$0xf0] }
 0x2f6   :  { %v6013_v19 = vor.u32 %v7025_v16, %v6010_v17  ;;  %v6273_v16 = vld [vmem:[#allocation11 + $0x1a0] sm:$0xf] }
 0x2f7   :  { %2996 = vmatpush.bf16.msrb.mxu2 %v5645_v11  ;;  %2961 = vmatpush.bf16.msra.mxu3 %v5705_v21  ;;  %v6029_v11 = vor.u32 %v7029_v55, %v6026_v51  ;;  %v5821_v21 = vor.u32 %v6977_v29, %v5818_v14  ;;  %v6081_v29 = vld [vmem:[#allocation11 + $0x20] sm:$0xf]  ;;  %v7046_v14 = vld [vmem:[#allocation11 + $0x2c] sm:$0xf0] }
 0x2f9   :  { %3022 = vmatpush.bf16.msra.mxu0 %v5901_v12  ;;  %2987 = vmatpush.bf16.msrb.mxu1 %v5961_v58  ;;  %v5757_v12 = vor.u32 %v6961_v7, %v5754_v48  ;;  %v7098_v7 = vld [vmem:[#allocation11 + $0x1cc] sm:$0xf0] }
 0x2fa   :  { %v6290_v48 = vor.u32 %v7098_v7, %v6289_v1 }
 0x2fb   :  { %2997 = vmatpush.bf16.msrb.mxu2 %v5629_v52  ;;  %2962 = vmatpush.bf16.msra.mxu3 %v5689_v35  ;;  %v5994_v52 = vld [vmem:[#allocation9 + $0x378] sm:$0xf0] }
 0x2fc   :  { %v5997_v58 = vor.u32 %v7021_v23, %v5994_v52  ;;  %v5962_v35 = vld [vmem:[#allocation9 + $0x338] sm:$0xf0]  ;;  %v6065_v23 = vld [vmem:[#allocation11] sm:$0xf]  ;;  %v7042_v52 = vld [vmem:[#allocation11 + $0xc] sm:$0xf0] }
 0x2fd   :  { %3023 = vmatpush.bf16.msra.mxu0 %v5885_v32  ;;  %2988 = vmatpush.bf16.msrb.mxu1 %v5945_v40  ;;  %v6949_v32 = vld [vmem:[#allocation9 + $0x12c] sm:$0xf]  ;;  %v6066_v53 = vor.u32 %v7042_v52, %v6065_v23 }
 0x2fe   :  { %2963 = vmatmul.bf16.vlgmr.msra.gmra.mxu3 %v7739_v4  ;;  %v5709_v50 = vor.u32 %v6949_v32, %v5706_v30  ;;  %v6182_v32 = vor.u32 %v7068_v63, %v6179_v25 }
 0x2ff   :  { %2998 = vmatpush.bf16.msrb.mxu2 %v5613_v15  ;;  %3007 = vmatpush.bf16.msrb.mxu3 %v5805_v6  ;;  %v5965_v15 = vor.u32 %v7013_v34, %v5962_v35  ;;  %v7009_v6 = vld [vmem:[#allocation9 + $0x30c] sm:$0xf] }
 0x300   :  { %2989 = vmatmul.bf16.vlgmr.msrb.gmra.mxu1 %v7743_v13 }
 0x301   :  { %3024 = vmatpush.bf16.msra.mxu0 %v5869_v44  ;;  %3033 = vmatpush.bf16.msra.mxu1 %v6061_v46  ;;  %v6161_v44 = vld [vmem:[#allocation11 + $0xc0] sm:$0xf]  ;;  %v7066_v46 = vld [vmem:[#allocation11 + $0xcc] sm:$0xf0] }
 0x302   :  { %v6162_v47 = vor.u32 %v7066_v46, %v6161_v44 }
 0x303   :  { %2999 = vmatpush.bf16.msrb.mxu2 %v5597_v38  ;;  %3008 = vmatpush.bf16.msrb.mxu3 %v5789_v54  ;;  %v6146_v38 = vor.u32 %v7062_v49, %v6145_v3  ;;  %v6225_v3 = vld [vmem:[#allocation11 + $0x140] sm:$0xf]  ;;  %v7082_v49 = vld [vmem:[#allocation11 + $0x14c] sm:$0xf0] }
 0x305   :  { %3025 = vmatpush.bf16.msra.mxu0 %v5853_v60  ;;  %3034 = vmatpush.bf16.msra.mxu1 %v6045_v61  ;;  %v6305_v60 = vld [vmem:[#allocation11 + $0x1e0] sm:$0xf]  ;;  %v6114_v61 = vor.u32 %v7054_v59, %v6113_v45 }
 0x306   :  { %v6306_v57 = vor.u32 %v7102_v27, %v6305_v60  ;;  %v6147_v60 = vld [vmem:[#allocation11 + $0xb0] sm:$0xf0] }
 0x307   :  { %3000 = vmatpush.bf16.msrb.mxu2 %v5581_v62  ;;  %3009 = vmatpush.bf16.msrb.mxu3 %v5773_v0  ;;  %v6097_v62 = vld [vmem:[#allocation11 + $0x40] sm:$0xf]  ;;  %v7050_v0 = vld [vmem:[#allocation11 + $0x4c] sm:$0xf0] }
 0x308   :  { %v6098_v31 = vor.u32 %v7050_v0, %v6097_v62  ;;  %v6209_v62 = vld [vmem:[#allocation11 + $0x120] sm:$0xf]  ;;  %v7078_v0 = vld [vmem:[#allocation11 + $0x12c] sm:$0xf0] }
 0x309   :  { %3026 = vmatpush.bf16.msra.mxu0 %v5837_v8  ;;  %3035 = vmatpush.bf16.msra.mxu1 %v6029_v11  ;;  %v6210_v7 = vor.u32 %v7078_v0, %v6209_v62  ;;  %v7092_v62 = vld [vmem:[#allocation11 + $0x1a4] sm:$0xf]  ;;  %v6275_v0 = vld [vmem:[#allocation11 + $0x1b0] sm:$0xf0] }
 0x30b   :  { %3001 = vmatpush.bf16.msrb.mxu2 %v5565_v2  ;;  %3010 = vmatpush.bf16.msrb.mxu3 %v5757_v12  ;;  %v6082_v2 = vor.u32 %v7046_v14, %v6081_v29  ;;  %v7094_v12 = vld [vmem:[#allocation11 + $0x1ac] sm:$0xf0]  ;;  %v7056_v29 = vld [vmem:[#allocation11 + $0x84] sm:$0xf] }
 0x30c   :  { %v6274_v18 = vor.u32 %v7094_v12, %v6273_v16 }
 0x30d   :  { %3027 = vmatpush.bf16.msra.mxu0 %v5821_v21  ;;  %3036 = vmatpush.bf16.msra.mxu1 %v6013_v19 }
 0x30e   :  { %3002 = vmatmul.bf16.vlgmr.msrb.gmra.mxu2 %v7733_v26  ;;  %v5946_v26 = vld [vmem:[#allocation9 + $0x318] sm:$0xf0] }
 0x30f   :  { %3011 = vmatpush.bf16.msrb.mxu3 %v5741_v24  ;;  %v5949_v40 = vor.u32 %v7009_v6, %v5946_v26  ;;  %v6257_v24 = vld [vmem:[#allocation11 + $0x180] sm:$0xf]  ;;  %v6242_v6 = vor.u32 %v7086_v36, %v6241_v5 }
 0x310   :  { %3028 = vmatmul.bf16.vlgmr.msra.gmra.mxu0 %v7736_v9  ;;  %v6177_v9 = vld [vmem:[#allocation11 + $0xe0] sm:$0xf] }
 0x311   :  { %3037 = vmatpush.bf16.msra.mxu1 %v5997_v58  ;;  %v6178_v42 = vor.u32 %v7070_v41, %v6177_v9  ;;  %v7090_v58 = vld [vmem:[#allocation11 + $0x18c] sm:$0xf0]  ;;  %v6433_v26 = vld [vmem:[#allocation11 + $0x2e0] sm:$0xf] }
 0x313   :  { %3012 = vmatpush.bf16.msrb.mxu3 %v5725_v28  ;;  %3996 = vmatpush.bf16.msra.mxu2 %v6178_v42  ;;  %v6258_v28 = vor.u32 %v7090_v58, %v6257_v24  ;;  %v7064_v42 = vld [vmem:[#allocation11 + $0xc4] sm:$0xf]  ;;  %v7074_v24 = vld [vmem:[#allocation11 + $0x10c] sm:$0xf0] }
 0x315   :  { %3038 = vmatpush.bf16.msra.mxu1 %v5981_v33 }
 0x317   :  { %3013 = vmatpush.bf16.msrb.mxu3 %v5709_v50  ;;  %3997 = vmatpush.bf16.msra.mxu2 %v6162_v47 }
 0x319   :  { %3039 = vmatpush.bf16.msra.mxu1 %v5965_v15 }
 0x31b   :  { %3014 = vmatpush.bf16.msrb.mxu3 %v5693_v37  ;;  %3998 = vmatpush.bf16.msra.mxu2 %v6146_v38  ;;  %v7134_v37 = vld [vmem:[#allocation11 + $0x2ec] sm:$0xf0] }
 0x31c   :  { %v6434_v41 = vor.u32 %v7134_v37, %v6433_v26  ;;  %v6369_v26 = vld [vmem:[#allocation11 + $0x260] sm:$0xf] }
 0x31d   :  { %3040 = vmatpush.bf16.msra.mxu1 %v5949_v40 }
 0x31e   :  { %3015 = vmatmul.bf16.vlgmr.msrb.gmra.mxu3 %v7739_v4  ;;  %v6130_v4 = vor.u32 %v7058_v39, %v6129_v56  ;;  %4022 = vmatpush.bf16.msrb.mxu0 %v6434_v41  ;;  %v6417_v56 = vld [vmem:[#allocation11 + $0x2c0] sm:$0xf]  ;;  %v7130_v39 = vld [vmem:[#allocation11 + $0x2cc] sm:$0xf0] }
 0x31f   :  { %4009 = vmatpush.bf16.msra.mxu3 %v6306_v57  ;;  %v6418_v59 = vor.u32 %v7130_v39, %v6417_v56  ;;  %v7118_v41 = vld [vmem:[#allocation11 + $0x26c] sm:$0xf0] }
 0x320   :  { %3041 = vmatmul.bf16.vlgmr.msra.gmra.mxu1 %v7743_v13  ;;  %3999 = vmatpush.bf16.msra.mxu2 %v6130_v4  ;;  %v7060_v4 = vld [vmem:[#allocation11 + $0xa4] sm:$0xf] }
 0x322   :  { %4023 = vmatpush.bf16.msrb.mxu0 %v6418_v59 }
 0x323   :  { %4010 = vmatpush.bf16.msra.mxu3 %v6290_v48  ;;  %v6401_v48 = vld [vmem:[#allocation11 + $0x2a0] sm:$0xf] }
 0x324   :  { %4000 = vmatpush.bf16.msra.mxu2 %v6114_v61  ;;  %v6150_v61 = vor.u32 %v7060_v4, %v6147_v60  ;;  %v7114_v60 = vld [vmem:[#allocation11 + $0x24c] sm:$0xf0] }
 0x327   :  { %4011 = vmatpush.bf16.msra.mxu3 %v6274_v18 }
 0x328   :  { %4001 = vmatpush.bf16.msra.mxu2 %v6098_v31 }
 0x32b   :  { %4012 = vmatpush.bf16.msra.mxu3 %v6258_v28  ;;  %v7052_v28 = vld [vmem:[#allocation11 + $0x64] sm:$0xf] }
 0x32c   :  { %4002 = vmatpush.bf16.msra.mxu2 %v6082_v2  ;;  %v6131_v2 = vld [vmem:[#allocation11 + $0x90] sm:$0xf0] }
 0x32d   :  { %v6134_v18 = vor.u32 %v7056_v29, %v6131_v2 }
 0x32f   :  { %4013 = vmatpush.bf16.msra.mxu3 %v6242_v6  ;;  %v6307_v6 = vld [vmem:[#allocation11 + $0x1f0] sm:$0xf0] }
 0x330   :  { %4003 = vmatpush.bf16.msra.mxu2 %v6066_v53  ;;  %v6385_v53 = vld [vmem:[#allocation11 + $0x280] sm:$0xf] }
 0x334   :  { %4048 = vmatpush.bf16.msrb.mxu2 %v6182_v32 }
 0x34d   :  { %v2873_v43 = vpop.f32.mrf.mxu0 }
 0x351   :  { %v2847_v22 = vpop.f32.mrf.mxu2 }
 0x355   :  { %v2875_v54 = vpop.f32.mrf.mxu0 }
 0x356   :  { %v6226_v54 = vor.u32 %v7082_v49, %v6225_v3  ;;  %v7096_v3 = vld [vmem:[#allocation11 + $0x1c4] sm:$0xf] }
 0x358   :  { %4014 = vmatpush.bf16.msra.mxu3 %v6226_v54  ;;  %v6291_v54 = vld [vmem:[#allocation11 + $0x1d0] sm:$0xf0] }
 0x359   :  { %v2849_v13 = vpop.f32.mrf.mxu2 }
 0x35c   :  { %4015 = vmatpush.bf16.msra.mxu3 %v6210_v7 }
 0x35d   :  { %v2886_v55 = vpop.f32.mrf.mxu1  ;;  %v7757_v51 = vpop.f32.mrf.mxu0 }
 0x361   :  { %v2860_v8 = vpop.f32.mrf.mxu3  ;;  %v7759_v11 = vpop.f32.mrf.mxu2 }
 0x362   :  { %v2861_v17 = vadd.f32 %v2860_v8, %v2847_v22  ;;  %v7126_v8 = vld [vmem:[#allocation11 + $0x2ac] sm:$0xf0] }
 0x364   :  { %v2874_v20 = vadd.f32 %v2873_v43, %v2861_v17  ;;  %v6163_v43 = vld [vmem:[#allocation11 + $0xd0] sm:$0xf0]  ;;  %v6402_v17 = vor.u32 %v7126_v8, %v6401_v48  ;;  %v6278_v48 = vor.u32 %v7092_v62, %v6275_v0 }
 0x365   :  { %v2888_v21 = vpop.f32.mrf.mxu1  ;;  %v2927_v19 = vpop.f32.mrf.mxu0  ;;  %v6166_v44 = vor.u32 %v7064_v42, %v6163_v43  ;;  %v7048_v42 = vld [vmem:[#allocation11 + $0x44] sm:$0xf]  ;;  %v6419_v62 = vld [vmem:[#allocation11 + $0x2d0] sm:$0xf0] }
 0x366   :  { %v7761_v10 = vadd.f32 %v2886_v55, %v2874_v20  ;;  %4024 = vmatpush.bf16.msrb.mxu0 %v6402_v17 }
 0x367   :  { %4049 = vmatpush.bf16.msrb.mxu2 %v6166_v44 }
 0x368   :  { %v3047_v30 = vsel %vm3046_vm4, %v7761_v10, 0.0  ;;  %v3075_v33 = vmul.f32 %v7761_v10, %v7761_v10 }
 0x369   :  { %v3048_v34 = vrot.slane %v3047_v30, 4  ;;  %v2862_v35 = vpop.f32.mrf.mxu3  ;;  %v2901_v50 = vpop.f32.mrf.mxu2 }
 0x36a   :  { %v3079_v15 = vsel %vm3046_vm4, %v3075_v33, 0.0  ;;  %v7100_v35 = vld [vmem:[#allocation11 + $0x1e4] sm:$0xf] }
 0x36b   :  { %v3049_v40 = vadd.f32 %v3048_v34, %v3047_v30  ;;  %v3080_v9 = vrot.slane %v3079_v15, 4  ;;  %4050 = vmatpush.bf16.msrb.mxu2 %v6150_v61  ;;  %v6115_v34 = vld [vmem:[#allocation11 + $0x70] sm:$0xf0]  ;;  %v7044_v61 = vld [vmem:[#allocation11 + $0x24] sm:$0xf] }
 0x36d   :  { %v3050_v46 = vrot.slane %v3049_v40, 2  ;;  %v3081_v47 = vadd.f32 %v3080_v9, %v3079_v15  ;;  %v2938_v22 = vpop.f32.mrf.mxu1  ;;  %v7768_v38 = vpop.f32.mrf.mxu0  ;;  %v6118_v15 = vor.u32 %v7052_v28, %v6115_v34  ;;  %v6310_v9 = vor.u32 %v7100_v35, %v6307_v6 }
 0x36f   :  { %v3051_v13 = vadd.f32 %v3050_v46, %v3049_v40  ;;  %v3082_v45 = vrot.slane %v3081_v47, 2  ;;  %4051 = vmatpush.bf16.msrb.mxu2 %v6134_v18  ;;  %v6067_v18 = vld [vmem:[#allocation11 + $0x10] sm:$0xf0] }
 0x371   :  { %v3052_v27 = vrot.slane %v3051_v13, 1  ;;  %v3083_v57 = vadd.f32 %v3082_v45, %v3081_v47  ;;  %v2912_v55 = vpop.f32.mrf.mxu3  ;;  %v7771_v31 = vpop.f32.mrf.mxu2  ;;  %v6370_v47 = vor.u32 %v7118_v41, %v6369_v26  ;;  %v6353_v45 = vld [vmem:[#allocation11 + $0x240] sm:$0xf] }
 0x372   :  { %v2913_v1 = vadd.f32 %v2912_v55, %v7759_v11  ;;  %v6193_v11 = vld [vmem:[#allocation11 + $0x100] sm:$0xf] }
 0x373   :  { %v3053_v14 = vadd.f32 %v3052_v27, %v3051_v13  ;;  %v3084_v16 = vrot.slane %v3083_v57, 1  ;;  %v6194_v25 = vor.u32 %v7074_v24, %v6193_v11  ;;  %4052 = vmatpush.bf16.msrb.mxu2 %v6118_v15  ;;  %v6294_v13 = vor.u32 %v7096_v3, %v6291_v54  ;;  %v6083_v27 = vld [vmem:[#allocation11 + $0x30] sm:$0xf0]  ;;  %v6545_v3 = vld [vmem:[#allocation11 + $0x3c0] sm:$0xf] }
 0x374   :  { %v2926_v12 = vadd.f32 %v7757_v51, %v2913_v1  ;;  %v7122_v51 = vld [vmem:[#allocation11 + $0x28c] sm:$0xf0]  ;;  %v6354_v1 = vor.u32 %v7114_v60, %v6353_v45  ;;  %v6086_v7 = vor.u32 %v7044_v61, %v6083_v27  ;;  %v6227_v60 = vld [vmem:[#allocation11 + $0x150] sm:$0xf0] }
 0x375   :  { %v3085_v20 = vadd.f32 %v3084_v16, %v3083_v57  ;;  %v7774_v21 = vmul.f32 0.5, %v3053_v14  ;;  %v2940_v19 = vpop.f32.mrf.mxu1  ;;  %v2979_v52 = vpop.f32.mrf.mxu0  ;;  %v6386_v33 = vor.u32 %v7122_v51, %v6385_v53  ;;  %4016 = vmatpush.bf16.msra.mxu3 %v6194_v25  ;;  %v6337_v14 = vld [vmem:[#allocation11 + $0x220] sm:$0xf]  ;;  %v7110_v16 = vld [vmem:[#allocation11 + $0x22c] sm:$0xf0] }
 0x376   :  { %v7776_v23 = vadd.f32 %v2938_v22, %v2926_v12  ;;  %v6099_v22 = vld [vmem:[#allocation11 + $0x50] sm:$0xf0]  ;;  %v6338_v2 = vor.u32 %v7110_v16, %v6337_v14  ;;  %v7040_v12 = vld [vmem:[#allocation11 + $0x4] sm:$0xf]  ;;  %v7158_v14 = vld [vmem:[#allocation11 + $0x3ac] sm:$0xf0] }
 0x377   :  { %v3111_v58 = vmul.f32 0.5, %v3085_v20  ;;  %v3115_v63 = vmul.f32 %v7774_v21, %v7774_v21  ;;  %4025 = vmatpush.bf16.msrb.mxu0 %v6386_v33  ;;  %v6102_v49 = vor.u32 %v7048_v42, %v6099_v22  ;;  %v7088_v20 = vld [vmem:[#allocation11 + $0x184] sm:$0xf]  ;;  %v6070_v24 = vor.u32 %v7040_v12, %v6067_v18  ;;  %v6259_v53 = vld [vmem:[#allocation11 + $0x190] sm:$0xf0] }
 0x378   :  { %v3054_v32 = vsel %vm3046_vm4, %v7776_v23, 0.0  ;;  %v3076_v30 = vmul.f32 %v7776_v23, %v7776_v23  ;;  %v7106_v33 = vld [vmem:[#allocation11 + $0x20c] sm:$0xf0] }
 0x379   :  { %v3119_v50 = vsub.f32 %v3111_v58, %v3115_v63  ;;  %v3055_v5 = vrot.slane %v3054_v32, 4  ;;  %v2914_v36 = vpop.f32.mrf.mxu3  ;;  %v2953_v40 = vpop.f32.mrf.mxu2  ;;  %4061 = vmatpush.bf16.msrb.mxu3 %v6310_v9  ;;  %4053 = vmatpush.bf16.msrb.mxu2 %v6102_v49  ;;  %v7792_v58 = vld [vmem:[%s7996_s8] ss:$2 sm:$0xf]  ;;  %v6262_v63 = vor.u32 %v7088_v20, %v6259_v53  ;;  %v7162_v49 = vld [vmem:[#allocation11 + $0x3cc] sm:$0xf0] }
 0x37a   :  { %v3086_v37 = vsel %vm3046_vm4, %v3076_v30, 0.0  ;;  %v6321_v30 = vld [vmem:[#allocation11 + $0x200] sm:$0xf]  ;;  %v7084_v36 = vld [vmem:[#allocation11 + $0x164] sm:$0xf]  ;;  %v3173_v9 = vperm.slane %v7792_v58, 0  ;;  %v6546_v45 = vor.u32 %v7162_v49, %v6545_v3 }
 0x37b   :  { %v3123_v43 = vmax.f32 %v3119_v50, 0.0  ;;  %v3056_v44 = vadd.f32 %v3055_v5, %v3054_v32  ;;  %v3087_v46 = vrot.slane %v3086_v37, 4  ;;  %4026 = vmatpush.bf16.msrb.mxu0 %v6370_v47  ;;  %v6322_v35 = vor.u32 %v7106_v33, %v6321_v30  ;;  %v6561_v50 = vld [vmem:[#allocation11 + $0x3e0] sm:$0xf]  ;;  %v7166_v5 = vld [vmem:[#allocation11 + $0x3ec] sm:$0xf0] }
 0x37c   :  { %v6562_v41 = vor.u32 %v7166_v5, %v6561_v50  ;;  %v7076_v20 = vld [vmem:[#allocation11 + $0x124] sm:$0xf]  ;;  %v6513_v33 = vld [vmem:[#allocation11 + $0x380] sm:$0xf] }
 0x37d   :  { %v7785_v56 = vadd.f32 1e-05, %v3123_v43  ;;  %v3057_v39 = vrot.slane %v3056_v44, 2  ;;  %v3088_v4 = vadd.f32 %v3087_v46, %v3086_v37  ;;  %v2990_v59 = vpop.f32.mrf.mxu1  ;;  %4062 = vmatpush.bf16.msrb.mxu3 %v6294_v13  ;;  %4054 = vmatpush.bf16.msrb.mxu2 %v6086_v7  ;;  %v6243_v37 = vld [vmem:[#allocation11 + $0x170] sm:$0xf0] }
 0x37e   :  { %v6246_v42 = vor.u32 %v7084_v36, %v6243_v37  ;;  %v6435_v43 = vld [vmem:[#allocation11 + $0x2f0] sm:$0xf0]  ;;  %4035 = vmatpush.bf16.msrb.mxu1 %v6562_v41  ;;  %v7072_v36 = vld [vmem:[#allocation11 + $0x104] sm:$0xf] }
 0x37f   :  { %7227 = vrsqrt.f32 %v7785_v56  ;;  %v3058_v57 = vadd.f32 %v3057_v39, %v3056_v44  ;;  %v3089_v55 = vrot.slane %v3088_v4, 2  ;;  %4027 = vmatpush.bf16.msrb.mxu0 %v6354_v1  ;;  %vm3137_vm6 = vweird.f32 %v7785_v56 }
 0x381   :  { %v3059_v8 = vrot.slane %v3058_v57, 1  ;;  %v3090_v29 = vadd.f32 %v3089_v55, %v3088_v4  ;;  %v2964_v17 = vpop.f32.mrf.mxu3  ;;  %4063 = vmatpush.bf16.msrb.mxu3 %v6278_v48  ;;  %4055 = vmatpush.bf16.msrb.mxu2 %v6070_v24  ;;  %v7128_v55 = vld [vmem:[#allocation11 + $0x2c4] sm:$0xf] }
 0x382   :  { %v2965_v52 = vadd.f32 %v2964_v17, %v7771_v31  ;;  %v6422_v48 = vor.u32 %v7128_v55, %v6419_v62  ;;  %4036 = vmatpush.bf16.msrb.mxu1 %v6546_v45  ;;  %v7828_v24 = vld [vmem:[%s7996_s8 + $0x1] ss:$2 sm:$0xf]  ;;  %v6371_v45 = vld [vmem:[#allocation11 + $0x270] sm:$0xf0] }
 0x383   :  { %v3060_v19 = vadd.f32 %v3059_v8, %v3058_v57  ;;  %v3091_v11 = vrot.slane %v3090_v29, 1  ;;  %4028 = vmatpush.bf16.msrb.mxu0 %v6338_v2  ;;  %v3200_v37 = vperm.slane %v7828_v24, 0  ;;  %v6481_v55 = vld [vmem:[#allocation11 + $0x340] sm:$0xf] }
 0x384   :  { %v2978_v32 = vadd.f32 %v7768_v38, %v2965_v52  ;;  %v7132_v38 = vld [vmem:[#allocation11 + $0x2e4] sm:$0xf] }
 0x385   :  { %v7794_v25 = vpop.eup %7227  ;;  %v3092_v51 = vadd.f32 %v3091_v11, %v3090_v29  ;;  %v7796_v28 = vmul.f32 0.5, %v3060_v19  ;;  %v2992_v34 = vpop.f32.mrf.mxu1  ;;  %4064 = vmatpush.bf16.msrb.mxu3 %v6262_v63  ;;  %v6438_v22 = vor.u32 %v7132_v38, %v6435_v43  ;;  %v6529_v29 = vld [vmem:[#allocation11 + $0x3a0] sm:$0xf]  ;;  %v6211_v19 = vld [vmem:[#allocation11 + $0x130] sm:$0xf0] }
 0x386   :  { %v3132_v31 = vmul.f32 %v7794_v25, %v7785_v56  ;;  %v7803_v26 = vadd.f32 %v2990_v59, %v2978_v32  ;;  %v7080_v59 = vld [vmem:[#allocation11 + $0x144] sm:$0xf]  ;;  %vm3138_vm5 = vweird.f32 %v7794_v25  ;;  %v6530_v18 = vor.u32 %v7158_v14, %v6529_v29  ;;  %v6403_v11 = vld [vmem:[#allocation11 + $0x2b0] sm:$0xf0] }
 0x387   :  { %v3112_v15 = vmul.f32 0.5, %v3092_v51  ;;  %v3116_v6 = vmul.f32 %v7796_v28, %v7796_v28  ;;  %4029 = vmatpush.bf16.msrb.mxu0 %v6322_v35  ;;  %v6230_v57 = vor.u32 %v7080_v59, %v6227_v60  ;;  %vm3139_vm7 = vmor %vm3137_vm6, %vm3138_vm5  ;;  %v7124_v56 = vld [vmem:[#allocation11 + $0x2a4] sm:$0xf]  ;;  %v6214_v51 = vor.u32 %v7076_v20, %v6211_v19  ;;  %v6355_v14 = vld [vmem:[#allocation11 + $0x250] sm:$0xf0] }
 0x388   :  { %v3133_v40 = vmul.f32 %v7794_v25, %v3132_v31  ;;  %v3061_v46 = vsel %vm3046_vm4, %v7803_v26, 0.0  ;;  %v3077_v47 = vmul.f32 %v7803_v26, %v7803_v26  ;;  %v6406_v30 = vor.u32 %v7124_v56, %v6403_v11  ;;  %v7154_v31 = vld [vmem:[#allocation11 + $0x38c] sm:$0xf0]  ;;  %4037 = vmatpush.bf16.msrb.mxu1 %v6530_v18  ;;  %v7120_v38 = vld [vmem:[#allocation11 + $0x284] sm:$0xf] }
 0x389   :  { %v3120_v44 = vsub.f32 %v3112_v15, %v3116_v6  ;;  %v3062_v39 = vrot.slane %v3061_v46, 4  ;;  %v2966_v4 = vpop.f32.mrf.mxu3  ;;  %4065 = vmatpush.bf16.msrb.mxu3 %v6246_v42  ;;  %v6514_v5 = vor.u32 %v7154_v31, %v6513_v33  ;;  %v3185_v15 = vsub.f32 %v7761_v10, %v7774_v21  ;;  %v7150_v21 = vld [vmem:[#allocation11 + $0x36c] sm:$0xf0]  ;;  %v6465_v20 = vld [vmem:[#allocation11 + $0x320] sm:$0xf] }
 0x38a   :  { %v3134_v54 = vmul.f32 0.5, %v3133_v40  ;;  %v3093_v27 = vsel %vm3046_vm4, %v3077_v47, 0.0  ;;  %v6387_v40 = vld [vmem:[#allocation11 + $0x290] sm:$0xf0]  ;;  %v6497_v47 = vld [vmem:[#allocation11 + $0x360] sm:$0xf] }
 0x38b   :  { %v3124_v61 = vmax.f32 %v3120_v44, 0.0  ;;  %4074 = vmatpush.bf16.msra.mxu0 %v6438_v22  ;;  %v3063_v1 = vadd.f32 %v3062_v39, %v3061_v46  ;;  %v3094_v7 = vrot.slane %v3093_v27, 4  ;;  %v6390_v43 = vor.u32 %v7120_v38, %v6387_v40  ;;  %v7142_v19 = vld [vmem:[#allocation11 + $0x32c] sm:$0xf0]  ;;  %v7071_v33 = vld [vmem:[#allocation11 + $0xf4] sm:$0xf0] }
 0x38c   :  { %v3135_v0 = vsub.f32 1.5, %v3134_v54  ;;  %4038 = vmatpush.bf16.msrb.mxu1 %v6514_v5  ;;  %v7116_v54 = vld [vmem:[#allocation11 + $0x264] sm:$0xf]  ;;  %v6498_v4 = vor.u32 %v7150_v21, %v6497_v47  ;;  %v3174_v18 = vperm.slane %v7792_v58, 1  ;;  %v6169_v5 = vld [vmem:[#allocation11 + $0xc8] sm:$0xf] }
 0x38d   :  { %v7811_v13 = vpop.f32.mrf.mxu0  ;;  %v7816_v8 = vadd.f32 1e-05, %v3124_v61  ;;  %v3064_v17 = vrot.slane %v3063_v1, 2  ;;  %v3095_v2 = vadd.f32 %v3094_v7, %v3093_v27  ;;  %4066 = vmatpush.bf16.msrb.mxu3 %v6230_v57  ;;  %v6374_v57 = vor.u32 %v7116_v54, %v6371_v45  ;;  %v7146_v7 = vld [vmem:[#allocation11 + $0x34c] sm:$0xf0] }
 0x38e   :  { %v3136_v16 = vmul.f32 %v7794_v25, %v3135_v0  ;;  %v6482_v29 = vor.u32 %v7146_v7, %v6481_v55  ;;  %v6563_v47 = vld [vmem:[#allocation11 + $0x3f0] sm:$0xf0]  ;;  %v7063_v45 = vld [vmem:[#allocation11 + $0xb4] sm:$0xf0] }
 0x38f   :  { %7229 = vrsqrt.f32 %v7816_v8  ;;  %4075 = vmatpush.bf16.msra.mxu0 %v6422_v48  ;;  %v3065_v53 = vadd.f32 %v3064_v17, %v3063_v1  ;;  %v3096_v63 = vrot.slane %v3095_v2, 2  ;;  %v7112_v48 = vld [vmem:[#allocation11 + $0x244] sm:$0xf]  ;;  %vm3147_vm9 = vweird.f32 %v7816_v8 }
 0x390   :  { %v3140_v52 = vsel %vm3139_vm7, %v7794_v25, %v3136_v16  ;;  %v6195_v25 = vld [vmem:[#allocation11 + $0x110] sm:$0xf0]  ;;  %4039 = vmatpush.bf16.msrb.mxu1 %v6498_v4  ;;  %v6153_v4 = vld [vmem:[#allocation11 + $0xa8] sm:$0xf] }
 0x391   :  { %v7819_v12 = vpop.f32.mrf.mxu2  ;;  %v3181_v32 = vmul.f32 %v3173_v9, %v3140_v52  ;;  %v3066_v34 = vrot.slane %v3065_v53, 1  ;;  %v3097_v35 = vadd.f32 %v3096_v63, %v3095_v2  ;;  %4067 = vmatpush.bf16.msrb.mxu3 %v6214_v51  ;;  %v6198_v42 = vor.u32 %v7072_v36, %v6195_v25  ;;  %v7108_v63 = vld [vmem:[#allocation11 + $0x224] sm:$0xf]  ;;  %v6339_v51 = vld [vmem:[#allocation11 + $0x230] sm:$0xf0] }
 0x392   :  { %v6358_v2 = vor.u32 %v7112_v48, %v6355_v14  ;;  %v6342_v31 = vor.u32 %v7108_v63, %v6339_v51  ;;  %v7067_v36 = vld [vmem:[#allocation11 + $0xd4] sm:$0xf0]  ;;  %v6449_v25 = vld [vmem:[#allocation11 + $0x300] sm:$0xf]  ;;  %v6154_v14 = vor.u32 %v7063_v45, %v6153_v4  ;;  %v3175_v51 = vperm.slane %v7792_v58, 2 }
 0x393   :  { %v3189_v6 = vperm.slane %v3181_v32, 0  ;;  %4076 = vmatpush.bf16.msra.mxu0 %v6406_v30  ;;  %v3067_v9 = vadd.f32 %v3066_v34, %v3065_v53  ;;  %v3098_v41 = vrot.slane %v3097_v35, 1  ;;  %v6466_v53 = vor.u32 %v7142_v19, %v6465_v20  ;;  %v6185_v30 = vld [vmem:[#allocation11 + $0xe8] sm:$0xf] }
 0x394   :  { %4040 = vmatpush.bf16.msrb.mxu1 %v6482_v29  ;;  %v6186_v38 = vor.u32 %v7071_v33, %v6185_v30 }
 0x395   :  { %v3031_v50 = vpop.f32.mrf.mxu0  ;;  %v7230_v44 = vpop.eup %7229  ;;  %v3193_v46 = vmul.f32 %v3189_v6, %v3185_v15  ;;  %v3099_v3 = vadd.f32 %v3098_v41, %v3097_v35  ;;  %v7834_v49 = vmul.f32 0.5, %v3067_v9  ;;  %4068 = vmatpush.bf16.msrb.mxu3 %v6198_v42  ;;  %v3201_v35 = vperm.slane %v7828_v24, 1  ;;  %v7138_v15 = vld [vmem:[#allocation11 + $0x30c] sm:$0xf0]  ;;  %v7104_v9 = vld [vmem:[#allocation11 + $0x204] sm:$0xf] }
 0x396   :  { %v3142_v22 = vmul.f32 %v7230_v44, %v7816_v8  ;;  %vm3148_vm8 = vweird.f32 %v7230_v44  ;;  %v3186_v6 = vsub.f32 %v7776_v23, %v7796_v28  ;;  %v6450_v40 = vor.u32 %v7138_v15, %v6449_v25  ;;  %v6323_v41 = vld [vmem:[#allocation11 + $0x210] sm:$0xf0] }
 0x397   :  { %v3208_v39 = vadd.f32 %v3200_v37, %v3193_v46  ;;  %4077 = vmatpush.bf16.msra.mxu0 %v6390_v43  ;;  %v3113_v60 = vmul.f32 0.5, %v3099_v3  ;;  %v3117_v61 = vmul.f32 %v7834_v49, %v7834_v49  ;;  %vm3149_vm10 = vmor %vm3147_vm9, %vm3148_vm8  ;;  %v7164_v46 = vld [vmem:[#allocation11 + $0x3e4] sm:$0xf] }
 0x398   :  { %v3143_v59 = vmul.f32 %v7230_v44, %v3142_v22  ;;  %4041 = vmatpush.bf16.msrb.mxu1 %v6466_v53  ;;  %v6566_v22 = vor.u32 %v7164_v46, %v6563_v47  ;;  %v6121_v53 = vld [vmem:[#allocation11 + $0x68] sm:$0xf] }
 0x399   :  { %v3005_v10 = vpop.f32.mrf.mxu2  ;;  %v3212_v27 = vmax.f32 %v3208_v39, 0.0  ;;  %v3121_v0 = vsub.f32 %v3113_v60, %v3117_v61  ;;  %v6170_v39 = vor.u32 %v7067_v36, %v6169_v5  ;;  %v6515_v5 = vld [vmem:[#allocation11 + $0x390] sm:$0xf0]  ;;  %v6297_v47 = vld [vmem:[#allocation11 + $0x1c8] sm:$0xf] }
 0x39a   :  { %v3144_v62 = vmul.f32 0.5, %v3143_v59 }
 0x39b   :  { %3216 = vst [vmem:[#allocation2 + $0x18] sm:$0x3] %v3212_v27  ;;  %4078 = vmatpush.bf16.msra.mxu0 %v6374_v57  ;;  %v3125_v17 = vmax.f32 %v3121_v0, 0.0  ;;  %v7160_v27 = vld [vmem:[#allocation11 + $0x3c4] sm:$0xf] }
 0x39c   :  { %v3145_v16 = vsub.f32 1.5, %v3144_v62  ;;  %4042 = vmatpush.bf16.msrb.mxu1 %v6450_v40  ;;  %v6547_v57 = vld [vmem:[#allocation11 + $0x3d0] sm:$0xf0] }
 0x39d   :  { %v3042_v1 = vpop.f32.mrf.mxu1  ;;  %v7840_v11 = vadd.f32 1e-05, %v3125_v17  ;;  %v6550_v0 = vor.u32 %v7160_v27, %v6547_v57  ;;  %v7059_v17 = vld [vmem:[#allocation11 + $0x94] sm:$0xf0]  ;;  %v7144_v57 = vld [vmem:[#allocation11 + $0x344] sm:$0xf] }
 0x39e   :  { %v3146_v56 = vmul.f32 %v7230_v44, %v3145_v16  ;;  %v6137_v16 = vld [vmem:[#allocation11 + $0x88] sm:$0xf]  ;;  %v7047_v27 = vld [vmem:[#allocation11 + $0x34] sm:$0xf0] }
 0x39f   :  { %4079 = vmatpush.bf16.msra.mxu0 %v6358_v2  ;;  %7231 = vrsqrt.f32 %v7840_v11  ;;  %v6138_v33 = vor.u32 %v7059_v17, %v6137_v16  ;;  %vm3157_vm12 = vweird.f32 %v7840_v11 }
 0x3a0   :  { %v3150_v34 = vsel %vm3149_vm10, %v7230_v44, %v3146_v56  ;;  %4087 = vmatpush.bf16.msra.mxu1 %v6566_v22  ;;  %v6531_v56 = vld [vmem:[#allocation11 + $0x3b0] sm:$0xf0]  ;;  %v7099_v22 = vld [vmem:[#allocation11 + $0x1d4] sm:$0xf0] }
 0x3a1   :  { %v3016_v52 = vpop.f32.mrf.mxu3  ;;  %v3182_v8 = vmul.f32 %v3174_v18, %v3150_v34  ;;  %v7156_v18 = vld [vmem:[#allocation11 + $0x3a4] sm:$0xf]  ;;  %v6313_v34 = vld [vmem:[#allocation11 + $0x1e8] sm:$0xf] }
 0x3a2   :  { %v3017_v32 = vadd.f32 %v3016_v52, %v7819_v12  ;;  %v3220_v37 = vld [vmem:[#allocation2 + $0x18] sm:$0x3]  ;;  %v6534_v63 = vor.u32 %v7156_v18, %v6531_v56  ;;  %v7069_v56 = vld [vmem:[#allocation11 + $0xec] sm:$0xf] }
 0x3a3   :  { %v3190_v42 = vperm.slane %v3182_v8, 0  ;;  %v7850_v44 = vpack.c.bf16 %v3220_v37, %v3220_v37  ;;  %4080 = vmatpush.bf16.msra.mxu0 %v6342_v31  ;;  %v7055_v31 = vld [vmem:[#allocation11 + $0x74] sm:$0xf0] }
 0x3a4   :  { %v3030_v50 = vadd.f32 %v7811_v13, %v3017_v32  ;;  %v6326_v13 = vor.u32 %v7104_v9, %v6323_v41  ;;  %4088 = vmatpush.bf16.msra.mxu1 %v6550_v0  ;;  %v7103_v8 = vld [vmem:[#allocation11 + $0x1f4] sm:$0xf0]  ;;  %v6122_v37 = vor.u32 %v7055_v31, %v6121_v53  ;;  %v6441_v31 = vld [vmem:[#allocation11 + $0x2e8] sm:$0xf] }
 0x3a5   :  { %v3044_v12 = vpop.f32.mrf.mxu1  ;;  %v3194_v3 = vmul.f32 %v3190_v42, %v3186_v6  ;;  %4004 = vmatmul.bf16.vlgmr.msra.gmra.mxu2 %v7850_v44  ;;  %v7232_v10 = vpop.eup %7231  ;;  %v6314_v42 = vor.u32 %v7103_v8, %v6313_v34  ;;  %v7091_v18 = vld [vmem:[#allocation11 + $0x194] sm:$0xf0]  ;;  %v7136_v34 = vld [vmem:[#allocation11 + $0x304] sm:$0xf] }
 0x3a6   :  { %v7848_v43 = vadd.f32 %v3042_v1, %v3030_v50  ;;  %4100 = vmatpush.bf16.msra.mxu2 %v6186_v38  ;;  %v3152_v60 = vmul.f32 %v7232_v10, %v7840_v11  ;;  %vm3158_vm11 = vweird.f32 %v7232_v10  ;;  %v7152_v50 = vld [vmem:[#allocation11 + $0x384] sm:$0xf]  ;;  %v3202_v12 = vperm.slane %v7828_v24, 2  ;;  %v6105_v38 = vld [vmem:[#allocation11 + $0x48] sm:$0xf] }
 0x3a7   :  { %v3209_v59 = vadd.f32 %v3201_v35, %v3194_v3  ;;  %4081 = vmatpush.bf16.msra.mxu0 %v6326_v13  ;;  %vm3159_vm13 = vmor %vm3157_vm12, %vm3158_vm11  ;;  %v6518_v15 = vor.u32 %v7152_v50, %v6515_v5  ;;  %v7051_v13 = vld [vmem:[#allocation11 + $0x54] sm:$0xf0]  ;;  %v7148_v3 = vld [vmem:[#allocation11 + $0x364] sm:$0xf] }
 0x3a8   :  { %v3068_v23 = vsel %vm3046_vm4, %v7848_v43, 0.0  ;;  %v3078_v28 = vmul.f32 %v7848_v43, %v7848_v43  ;;  %v3153_v7 = vmul.f32 %v7232_v10, %v3152_v60  ;;  %4089 = vmatpush.bf16.msra.mxu1 %v6534_v63  ;;  %v6298_v60 = vor.u32 %v7099_v22, %v6297_v47  ;;  %v7135_v8 = vld [vmem:[#allocation11 + $0x2f4] sm:$0xf0]  ;;  %v7065_v50 = vld [vmem:[#allocation11 + $0xcc] sm:$0xf] }
 0x3a9   :  { %v3069_v21 = vrot.slane %v3068_v23, 4  ;;  %v3018_v54 = vpop.f32.mrf.mxu3  ;;  %v3213_v1 = vmax.f32 %v3209_v59, 0.0  ;;  %v6171_v5 = vld [vmem:[#allocation11 + $0xd8] sm:$0xf0]  ;;  %v7061_v47 = vld [vmem:[#allocation11 + $0xac] sm:$0xf] }
 0x3aa   :  { %v3100_v61 = vsel %vm3046_vm4, %v3078_v28, 0.0  ;;  %4101 = vmatpush.bf16.msra.mxu2 %v6170_v39  ;;  %v3154_v2 = vmul.f32 0.5, %v3153_v7  ;;  %v6499_v54 = vld [vmem:[#allocation11 + $0x370] sm:$0xf0]  ;;  %v6106_v39 = vor.u32 %v7051_v13, %v6105_v38  ;;  %v6073_v7 = vld [vmem:[#allocation11 + $0x8] sm:$0xf]  ;;  %v6442_v38 = vor.u32 %v7135_v8, %v6441_v31 }
 0x3ab   :  { %v3070_v55 = vadd.f32 %v3069_v21, %v3068_v23  ;;  %v3101_v62 = vrot.slane %v3100_v61, 4  ;;  %3217 = vst [vmem:[#allocation2 + $0x20] sm:$0x3] %v3213_v1  ;;  %v3187_v23 = vsub.f32 %v7803_v26, %v7834_v49  ;;  %v6502_v4 = vor.u32 %v7148_v3, %v6499_v54  ;;  %v6281_v26 = vld [vmem:[#allocation11 + $0x1a8] sm:$0xf] }
 0x3ac   :  { %v3155_v52 = vsub.f32 1.5, %v3154_v2  ;;  %4090 = vmatpush.bf16.msra.mxu1 %v6518_v15  ;;  %v7095_v49 = vld [vmem:[#allocation11 + $0x1b4] sm:$0xf0]  ;;  %v6265_v2 = vld [vmem:[#allocation11 + $0x188] sm:$0xf] }
 0x3ad   :  { %v3071_v48 = vrot.slane %v3070_v55, 2  ;;  %v3102_v29 = vadd.f32 %v3101_v62, %v3100_v61  ;;  %v6089_v61 = vld [vmem:[#allocation11 + $0x28] sm:$0xf]  ;;  %v6282_v17 = vor.u32 %v7095_v49, %v6281_v26  ;;  %v7131_v13 = vld [vmem:[#allocation11 + $0x2d4] sm:$0xf0] }
 0x3ae   :  { %4102 = vmatpush.bf16.msra.mxu2 %v6154_v14  ;;  %v3156_v35 = vmul.f32 %v7232_v10, %v3155_v52  ;;  %v6090_v16 = vor.u32 %v7047_v27, %v6089_v61  ;;  %v6187_v52 = vld [vmem:[#allocation11 + $0xf8] sm:$0xf0]  ;;  %v3176_v27 = vperm.slane %v7792_v58, 3  ;;  %v6201_v49 = vld [vmem:[#allocation11 + $0x108] sm:$0xf] }
 0x3af   :  { %v3072_v20 = vadd.f32 %v3071_v48, %v3070_v55  ;;  %v3103_v19 = vrot.slane %v3102_v29, 2  ;;  %v6483_v55 = vld [vmem:[#allocation11 + $0x350] sm:$0xf0]  ;;  %v7043_v48 = vld [vmem:[#allocation11 + $0x14] sm:$0xf0] }
 0x3b0   :  { %v3160_v6 = vsel %vm3159_vm13, %v7232_v10, %v3156_v35  ;;  %4091 = vmatpush.bf16.msra.mxu1 %v6502_v4  ;;  %v6486_v1 = vor.u32 %v7144_v57, %v6483_v55  ;;  %v6074_v63 = vor.u32 %v7043_v48, %v6073_v7  ;;  %v6451_v35 = vld [vmem:[#allocation11 + $0x310] sm:$0xf0]  ;;  %v6155_v22 = vld [vmem:[#allocation11 + $0xb8] sm:$0xf0]  ;;  %v6409_v4 = vld [vmem:[#allocation11 + $0x2a8] sm:$0xf] }
 0x3b1   :  { %v3073_v32 = vrot.slane %v3072_v20, 1  ;;  %v3104_v30 = vadd.f32 %v3103_v19, %v3102_v29  ;;  %v3183_v40 = vmul.f32 %v3175_v51, %v3160_v6  ;;  %v6467_v19 = vld [vmem:[#allocation11 + $0x330] sm:$0xf0]  ;;  %v6266_v51 = vor.u32 %v7091_v18, %v6265_v2  ;;  %v6233_v6 = vld [vmem:[#allocation11 + $0x148] sm:$0xf] }
 0x3b2   :  { %4103 = vmatpush.bf16.msra.mxu2 %v6138_v33  ;;  %v3221_v11 = vld [vmem:[#allocation2 + $0x20] sm:$0x3]  ;;  %v6190_v33 = vor.u32 %v7069_v56, %v6187_v52  ;;  %v6158_v54 = vor.u32 %v7061_v47, %v6155_v22  ;;  %v7123_v7 = vld [vmem:[#allocation11 + $0x294] sm:$0xf0]  ;;  %v7053_v48 = vld [vmem:[#allocation11 + $0x6c] sm:$0xf] }
 0x3b3   :  { %v3074_v36 = vadd.f32 %v3073_v32, %v3072_v20  ;;  %v3105_v25 = vrot.slane %v3104_v30, 1  ;;  %v7865_v46 = vpack.c.bf16 %v3221_v11, %v3221_v11  ;;  %v3191_v28 = vperm.slane %v3183_v40, 0  ;;  %v7140_v20 = vld [vmem:[#allocation11 + $0x324] sm:$0xf]  ;;  %v6249_v32 = vld [vmem:[#allocation11 + $0x168] sm:$0xf] }
 0x3b4   :  { %4092 = vmatpush.bf16.msra.mxu1 %v6486_v1  ;;  %v6470_v53 = vor.u32 %v7140_v20, %v6467_v19  ;;  %v6174_v40 = vor.u32 %v7065_v50, %v6171_v5  ;;  %v6425_v11 = vld [vmem:[#allocation11 + $0x2c8] sm:$0xf]  ;;  %v6315_v2 = vld [vmem:[#allocation11 + $0x1f8] sm:$0xf0]  ;;  %v7119_v56 = vld [vmem:[#allocation11 + $0x274] sm:$0xf0] }
 0x3b5   :  { %v3106_v9 = vadd.f32 %v3105_v25, %v3104_v30  ;;  %v7863_v41 = vmul.f32 0.5, %v3074_v36  ;;  %4017 = vmatmul.bf16.vlgmr.msra.gmra.mxu3 %v7865_v46  ;;  %4056 = vmatmul.bf16.vlgmr.msrb.gmra.mxu2 %v7850_v44  ;;  %v3195_v45 = vmul.f32 %v3191_v28, %v3187_v23  ;;  %v7087_v30 = vld [vmem:[#allocation11 + $0x174] sm:$0xf0]  ;;  %v6454_v36 = vor.u32 %v7136_v34, %v6451_v35  ;;  %v6217_v28 = vld [vmem:[#allocation11 + $0x128] sm:$0xf] }
 0x3b6   :  { %4104 = vmatpush.bf16.msra.mxu2 %v6122_v37  ;;  %4113 = vmatpush.bf16.msra.mxu3 %v6314_v42  ;;  %v6250_v15 = vor.u32 %v7087_v30, %v6249_v32  ;;  %v6393_v1 = vld [vmem:[#allocation11 + $0x288] sm:$0xf]  ;;  %v7049_v32 = vld [vmem:[#allocation11 + $0x4c] sm:$0xf]  ;;  %v6107_v30 = vld [vmem:[#allocation11 + $0x58] sm:$0xf0] }
 0x3b7   :  { %v3114_v10 = vmul.f32 0.5, %v3106_v9  ;;  %v3118_v21 = vmul.f32 %v7863_v41, %v7863_v41  ;;  %v3210_v62 = vadd.f32 %v3202_v12, %v3195_v45  ;;  %v7083_v9 = vld [vmem:[#allocation11 + $0x154] sm:$0xf0]  ;;  %v6394_v20 = vor.u32 %v7123_v7, %v6393_v1  ;;  %v6377_v19 = vld [vmem:[#allocation11 + $0x268] sm:$0xf] }
 0x3b8   :  { %4093 = vmatpush.bf16.msra.mxu1 %v6470_v53  ;;  %v6234_v23 = vor.u32 %v7083_v9, %v6233_v6  ;;  %v7127_v45 = vld [vmem:[#allocation11 + $0x2b4] sm:$0xf0]  ;;  %v3188_v52 = vsub.f32 %v7848_v43, %v7863_v41  ;;  %v6299_v31 = vld [vmem:[#allocation11 + $0x1d8] sm:$0xf0]  ;;  %v6378_v35 = vor.u32 %v7119_v56, %v6377_v19  ;;  %v6110_v8 = vor.u32 %v7049_v32, %v6107_v30  ;;  %v6361_v50 = vld [vmem:[#allocation11 + $0x248] sm:$0xf] }
 0x3b9   :  { %v3122_v59 = vsub.f32 %v3114_v10, %v3118_v21  ;;  %v3214_v29 = vmax.f32 %v3210_v62, 0.0  ;;  %v6426_v21 = vor.u32 %v7131_v13, %v6425_v11  ;;  %v6410_v55 = vor.u32 %v7127_v45, %v6409_v4  ;;  %v7045_v43 = vld [vmem:[#allocation11 + $0x2c] sm:$0xf]  ;;  %v6091_v41 = vld [vmem:[#allocation11 + $0x38] sm:$0xf0] }
 0x3ba   :  { %4105 = vmatpush.bf16.msra.mxu2 %v6106_v39  ;;  %4114 = vmatpush.bf16.msra.mxu3 %v6298_v60  ;;  %v7079_v39 = vld [vmem:[#allocation11 + $0x134] sm:$0xf0]  ;;  %v6139_v60 = vld [vmem:[#allocation11 + $0x98] sm:$0xf0]  ;;  %v7041_v11 = vld [vmem:[#allocation11 + $0xc] sm:$0xf] }
 0x3bb   :  { %v3126_v0 = vmax.f32 %v3122_v59, 0.0  ;;  %3218 = vst [vmem:[#allocation2 + $0x28] sm:$0x3] %v3214_v29  ;;  %v7057_v59 = vld [vmem:[#allocation11 + $0x8c] sm:$0xf]  ;;  %v6218_v26 = vor.u32 %v7079_v39, %v6217_v28 }
 0x3bc   :  { %4094 = vmatpush.bf16.msra.mxu1 %v6454_v36  ;;  %v6142_v62 = vor.u32 %v7057_v59, %v6139_v60  ;;  %v6123_v29 = vld [vmem:[#allocation11 + $0x78] sm:$0xf0]  ;;  %v7089_v47 = vld [vmem:[#allocation11 + $0x18c] sm:$0xf]  ;;  %v6329_v28 = vld [vmem:[#allocation11 + $0x208] sm:$0xf] }
 0x3bd   :  { %v7873_v14 = vadd.f32 1e-05, %v3126_v0  ;;  %v7075_v0 = vld [vmem:[#allocation11 + $0x114] sm:$0xf0]  ;;  %v6075_v13 = vld [vmem:[#allocation11 + $0x18] sm:$0xf0] }
 0x3be   :  { %4106 = vmatpush.bf16.msra.mxu2 %v6090_v16  ;;  %4115 = vmatpush.bf16.msra.mxu3 %v6282_v17  ;;  %v7101_v17 = vld [vmem:[#allocation11 + $0x1ec] sm:$0xf]  ;;  %v6202_v18 = vor.u32 %v7075_v0, %v6201_v49  ;;  %v6267_v22 = vld [vmem:[#allocation11 + $0x198] sm:$0xf0]  ;;  %v7167_v39 = vld [vmem:[#allocation11 + $0x3f4] sm:$0xf0] }
 0x3bf   :  { %7233 = vrsqrt.f32 %v7873_v14  ;;  %vm3167_vm15 = vweird.f32 %v7873_v14  ;;  %v7085_v4 = vld [vmem:[#allocation11 + $0x16c] sm:$0xf]  ;;  %v6251_v45 = vld [vmem:[#allocation11 + $0x178] sm:$0xf0]  ;;  %v7163_v0 = vld [vmem:[#allocation11 + $0x3d4] sm:$0xf0] }
 0x3c0   :  { %v7133_v59 = vld [vmem:[#allocation11 + $0x2ec] sm:$0xf]  ;;  %v6443_v60 = vld [vmem:[#allocation11 + $0x2f8] sm:$0xf0] }
 0x3c1   :  { %v7081_v1 = vld [vmem:[#allocation11 + $0x14c] sm:$0xf]  ;;  %v6235_v7 = vld [vmem:[#allocation11 + $0x158] sm:$0xf0] }
 0x3c2   :  { %4107 = vmatpush.bf16.msra.mxu2 %v6074_v63  ;;  %4116 = vmatpush.bf16.msra.mxu3 %v6266_v51  ;;  %v3222_v37 = vld [vmem:[#allocation2 + $0x28] sm:$0x3]  ;;  %v3203_v63 = vperm.slane %v7828_v24, 3  ;;  %v6318_v51 = vor.u32 %v7101_v17, %v6315_v2  ;;  %v7093_v24 = vld [vmem:[#allocation11 + $0x1ac] sm:$0xf]  ;;  %v6238_v17 = vor.u32 %v7081_v1, %v6235_v7 }
 0x3c3   :  { %v7877_v42 = vpack.c.bf16 %v3222_v37, %v3222_v37  ;;  %v6094_v37 = vor.u32 %v7045_v43, %v6091_v41  ;;  %v7125_v19 = vld [vmem:[#allocation11 + $0x2ac] sm:$0xf]  ;;  %v6411_v56 = vld [vmem:[#allocation11 + $0x2b8] sm:$0xf0] }
 0x3c4   :  { %v7073_v32 = vld [vmem:[#allocation11 + $0x10c] sm:$0xf]  ;;  %v6203_v30 = vld [vmem:[#allocation11 + $0x118] sm:$0xf0] }
 0x3c5   :  { %v7234_v25 = vpop.eup %7233  ;;  %4069 = vmatmul.bf16.vlgmr.msrb.gmra.mxu3 %v7865_v46  ;;  %4108 = vmatmul.bf16.vlgmr.msra.gmra.mxu2 %v7850_v44  ;;  %v6507_v1 = vld [vmem:[#allocation11 + $0x378] sm:$0xf0] }
 0x3c6   :  { %v3162_v12 = vmul.f32 %v7234_v25, %v7873_v14  ;;  %4152 = vmatpush.bf16.msrb.mxu2 %v6190_v33  ;;  %4030 = vmatmul.bf16.vlgmr.msrb.gmra.mxu0 %v7877_v42  ;;  %vm3168_vm14 = vweird.f32 %v7234_v25  ;;  %v6126_v14 = vor.u32 %v7053_v48, %v6123_v29  ;;  %v7097_v33 = vld [vmem:[#allocation11 + $0x1cc] sm:$0xf]  ;;  %v6427_v29 = vld [vmem:[#allocation11 + $0x2d8] sm:$0xf0] }
 0x3c7   :  { %4117 = vmatpush.bf16.msra.mxu3 %v6250_v15  ;;  %4126 = vmatpush.bf16.msrb.mxu0 %v6442_v38  ;;  %vm3169_vm0 = vmor %vm3167_vm15, %vm3168_vm14  ;;  %v6302_v36 = vor.u32 %v7097_v33, %v6299_v31  ;;  %v6283_v15 = vld [vmem:[#allocation11 + $0x1b8] sm:$0xf0]  ;;  %v6345_v38 = vld [vmem:[#allocation11 + $0x228] sm:$0xf] }
 0x3c8   :  { %v3163_v3 = vmul.f32 %v7234_v25, %v3162_v12  ;;  %v6286_v9 = vor.u32 %v7093_v24, %v6283_v15  ;;  %v7129_v48 = vld [vmem:[#allocation11 + $0x2cc] sm:$0xf]  ;;  %v6395_v31 = vld [vmem:[#allocation11 + $0x298] sm:$0xf0]  ;;  %v6489_v24 = vld [vmem:[#allocation11 + $0x348] sm:$0xf] }
 0x3c9   :  { %v6430_v2 = vor.u32 %v7129_v48, %v6427_v29  ;;  %v7121_v33 = vld [vmem:[#allocation11 + $0x28c] sm:$0xf]  ;;  %v7147_v15 = vld [vmem:[#allocation11 + $0x354] sm:$0xf0]  ;;  %v6491_v29 = vld [vmem:[#allocation11 + $0x358] sm:$0xf0] }
 0x3ca   :  { %v3164_v10 = vmul.f32 0.5, %v3163_v3  ;;  %4153 = vmatpush.bf16.msrb.mxu2 %v6174_v40  ;;  %v7111_v40 = vld [vmem:[#allocation11 + $0x234] sm:$0xf0]  ;;  %v7145_v48 = vld [vmem:[#allocation11 + $0x34c] sm:$0xf] }
 0x3cb   :  { %4118 = vmatpush.bf16.msra.mxu3 %v6234_v23  ;;  %4127 = vmatpush.bf16.msrb.mxu0 %v6426_v21  ;;  %v6346_v3 = vor.u32 %v7111_v40, %v6345_v38  ;;  %v6078_v23 = vor.u32 %v7041_v11, %v6075_v13  ;;  %v6270_v21 = vor.u32 %v7089_v47, %v6267_v22  ;;  %v6473_v40 = vld [vmem:[#allocation11 + $0x328] sm:$0xf]  ;;  %v7109_v11 = vld [vmem:[#allocation11 + $0x22c] sm:$0xf]  ;;  %v6347_v13 = vld [vmem:[#allocation11 + $0x238] sm:$0xf0] }
 0x3cc   :  { %v3165_v61 = vsub.f32 1.5, %v3164_v10  ;;  %v7107_v10 = vld [vmem:[#allocation11 + $0x214] sm:$0xf0]  ;;  %v6350_v22 = vor.u32 %v7109_v11, %v6347_v13 }
 0x3ce   :  { %v3166_v57 = vmul.f32 %v7234_v25, %v3165_v61  ;;  %4154 = vmatpush.bf16.msrb.mxu2 %v6158_v54  ;;  %v6569_v54 = vld [vmem:[#allocation11 + $0x3e8] sm:$0xf] }
 0x3cf   :  { %4119 = vmatpush.bf16.msra.mxu3 %v6218_v26  ;;  %4128 = vmatpush.bf16.msrb.mxu0 %v6410_v55  ;;  %v6570_v26 = vor.u32 %v7167_v39, %v6569_v54  ;;  %v6446_v55 = vor.u32 %v7133_v59, %v6443_v60  ;;  %v6571_v54 = vld [vmem:[#allocation11 + $0x3f8] sm:$0xf0] }
 0x3d0   :  { %v3170_v16 = vsel %vm3169_vm0, %v7234_v25, %v3166_v57  ;;  %v7115_v25 = vld [vmem:[#allocation11 + $0x254] sm:$0xf0]  ;;  %v6254_v57 = vor.u32 %v7085_v4, %v6251_v45  ;;  %v7161_v45 = vld [vmem:[#allocation11 + $0x3cc] sm:$0xf]  ;;  %v6555_v59 = vld [vmem:[#allocation11 + $0x3d8] sm:$0xf0] }
 0x3d1   :  { %v3184_v58 = vmul.f32 %v3176_v27, %v3170_v16  ;;  %v6362_v12 = vor.u32 %v7115_v25, %v6361_v50  ;;  %v6330_v27 = vor.u32 %v7107_v10, %v6329_v28  ;;  %v6505_v50 = vld [vmem:[#allocation11 + $0x368] sm:$0xf]  ;;  %v6379_v25 = vld [vmem:[#allocation11 + $0x278] sm:$0xf0]  ;;  %v7105_v28 = vld [vmem:[#allocation11 + $0x20c] sm:$0xf]  ;;  %v6558_v60 = vor.u32 %v7161_v45, %v6555_v59 }
 0x3d2   :  { %4155 = vmatpush.bf16.msrb.mxu2 %v6142_v62  ;;  %v6553_v62 = vld [vmem:[#allocation11 + $0x3c8] sm:$0xf]  ;;  %v6331_v10 = vld [vmem:[#allocation11 + $0x218] sm:$0xf0]  ;;  %v7182_v45 = vld [vmem:[#allocation12 + $0x70] sm:$0xff] }
 0x3d3   :  { %v3192_v53 = vperm.slane %v3184_v58, 0  ;;  %4120 = vmatpush.bf16.msra.mxu3 %v6202_v18  ;;  %4129 = vmatpush.bf16.msrb.mxu0 %v6394_v20  ;;  %v6554_v16 = vor.u32 %v7163_v0, %v6553_v62  ;;  %v6537_v58 = vld [vmem:[#allocation11 + $0x3a8] sm:$0xf]  ;;  %v7159_v18 = vld [vmem:[#allocation11 + $0x3b4] sm:$0xf0] }
 0x3d4   :  { %v7077_v20 = vld [vmem:[#allocation11 + $0x12c] sm:$0xf] }
 0x3d5   :  { %v3196_v34 = vmul.f32 %v3192_v53, %v3188_v52  ;;  %v6538_v52 = vor.u32 %v7159_v18, %v6537_v58  ;;  %v6414_v53 = vor.u32 %v7125_v19, %v6411_v56  ;;  %v7149_v0 = vld [vmem:[#allocation11 + $0x36c] sm:$0xf] }
 0x3d6   :  { %4156 = vmatpush.bf16.msrb.mxu2 %v6126_v14  ;;  %4121 = vmatmul.bf16.vlgmr.msra.gmra.mxu3 %v7865_v46  ;;  %v6219_v14 = vld [vmem:[#allocation11 + $0x138] sm:$0xf0]  ;;  %v6510_v7 = vor.u32 %v7149_v0, %v6507_v1  ;;  %v7137_v18 = vld [vmem:[#allocation11 + $0x30c] sm:$0xf] }
 0x3d7   :  { %v3211_v5 = vadd.f32 %v3203_v63, %v3196_v34  ;;  %4165 = vmatpush.bf16.msrb.mxu3 %v6318_v51  ;;  %4082 = vmatmul.bf16.vlgmr.msra.gmra.mxu0 %v7877_v42  ;;  %v6521_v63 = vld [vmem:[#allocation11 + $0x388] sm:$0xf]  ;;  %v7155_v51 = vld [vmem:[#allocation11 + $0x394] sm:$0xf0] }
 0x3d8   :  { %4130 = vmatpush.bf16.msrb.mxu0 %v6378_v35  ;;  %v6522_v34 = vor.u32 %v7155_v51, %v6521_v63  ;;  %v6206_v35 = vor.u32 %v7073_v32, %v6203_v30  ;;  %v7169_v0 = vld [vmem:[#allocation12 + $0x8] sm:$0xff] }
 0x3d9   :  { %v3215_v6 = vmax.f32 %v3211_v5, 0.0  ;;  %v7151_v5 = vld [vmem:[#allocation11 + $0x374] sm:$0xf0]  ;;  %v7181_v1 = vld [vmem:[#allocation12 + $0x68] sm:$0xff] }
 0x3da   :  { %4157 = vmatpush.bf16.msrb.mxu2 %v6110_v8  ;;  %v6398_v8 = vor.u32 %v7121_v33, %v6395_v31  ;;  %v6506_v43 = vor.u32 %v7151_v5, %v6505_v50 }
 0x3db   :  { %3219 = vst [vmem:[#allocation2 + $0x10] sm:$0x3] %v3215_v6  ;;  %4166 = vmatpush.bf16.msrb.mxu3 %v6302_v36  ;;  %v7117_v36 = vld [vmem:[#allocation11 + $0x26c] sm:$0xf] }
 0x3dc   :  { %4131 = vmatpush.bf16.msrb.mxu0 %v6362_v12  ;;  %v6382_v41 = vor.u32 %v7117_v36, %v6379_v25  ;;  %v7113_v6 = vld [vmem:[#allocation11 + $0x24c] sm:$0xf]  ;;  %v6363_v12 = vld [vmem:[#allocation11 + $0x258] sm:$0xf0] }
 0x3dd   :  { %v6366_v38 = vor.u32 %v7113_v6, %v6363_v12 }
 0x3de   :  { %4158 = vmatpush.bf16.msrb.mxu2 %v6094_v37  ;;  %v6490_v37 = vor.u32 %v7147_v15, %v6489_v24 }
 0x3df   :  { %4167 = vmatpush.bf16.msrb.mxu3 %v6286_v9  ;;  %v7143_v9 = vld [vmem:[#allocation11 + $0x334] sm:$0xf0] }
 0x3e0   :  { %4132 = vmatpush.bf16.msrb.mxu0 %v6346_v3  ;;  %v6474_v47 = vor.u32 %v7143_v9, %v6473_v40  ;;  %v6457_v3 = vld [vmem:[#allocation11 + $0x308] sm:$0xf] }
 0x3e2   :  { %4159 = vmatpush.bf16.msrb.mxu2 %v6078_v23  ;;  %v3223_v61 = vld [vmem:[#allocation2 + $0x10] sm:$0x3]  ;;  %v7139_v23 = vld [vmem:[#allocation11 + $0x314] sm:$0xf0] }
 0x3e3   :  { %4168 = vmatpush.bf16.msrb.mxu3 %v6270_v21  ;;  %v7889_v49 = vpack.c.bf16 %v3223_v61, %v3223_v61  ;;  %v7165_v21 = vld [vmem:[#allocation11 + $0x3ec] sm:$0xf]  ;;  %v6458_v39 = vor.u32 %v7139_v23, %v6457_v3  ;;  %v7171_v23 = vld [vmem:[#allocation12 + $0x18] sm:$0xff] }
 0x3e4   :  { %4133 = vmatpush.bf16.msrb.mxu0 %v6330_v27  ;;  %v6574_v4 = vor.u32 %v7165_v21, %v6571_v54  ;;  %v7157_v61 = vld [vmem:[#allocation11 + $0x3ac] sm:$0xf]  ;;  %v6539_v27 = vld [vmem:[#allocation11 + $0x3b8] sm:$0xf0] }
 0x3e5   :  { %4043 = vmatmul.bf16.vlgmr.msrb.gmra.mxu1 %v7889_v49  ;;  %4160 = vmatmul.bf16.vlgmr.msrb.gmra.mxu2 %v7850_v44  ;;  %v6222_v44 = vor.u32 %v7077_v20, %v6219_v14 }
 0x3e6   :  { %4139 = vmatpush.bf16.msrb.mxu1 %v6570_v26  ;;  %v6542_v26 = vor.u32 %v7157_v61, %v6539_v27 }
 0x3e7   :  { %4169 = vmatpush.bf16.msrb.mxu3 %v6254_v57  ;;  %4134 = vmatmul.bf16.vlgmr.msrb.gmra.mxu0 %v7877_v42  ;;  %v7153_v57 = vld [vmem:[#allocation11 + $0x38c] sm:$0xf] }
 0x3e8   :  { %4178 = vmatpush.bf16.msra.mxu0 %v6446_v55  ;;  %v6523_v55 = vld [vmem:[#allocation11 + $0x398] sm:$0xf0] }
 0x3e9   :  { %v6526_v62 = vor.u32 %v7153_v57, %v6523_v55 }
 0x3ea   :  { %4140 = vmatpush.bf16.msrb.mxu1 %v6554_v16  ;;  %v6494_v16 = vor.u32 %v7145_v48, %v6491_v29 }
 0x3eb   :  { %4170 = vmatpush.bf16.msrb.mxu3 %v6238_v17  ;;  %v7141_v17 = vld [vmem:[#allocation11 + $0x32c] sm:$0xf] }
 0x3ec   :  { %4179 = vmatpush.bf16.msra.mxu0 %v6430_v2  ;;  %v6475_v2 = vld [vmem:[#allocation11 + $0x338] sm:$0xf0] }
 0x3ed   :  { %v6478_v58 = vor.u32 %v7141_v17, %v6475_v2 }
 0x3ee   :  { %4141 = vmatpush.bf16.msrb.mxu1 %v6538_v52 }
 0x3ef   :  { %4171 = vmatpush.bf16.msrb.mxu3 %v6222_v44 }
 0x3f0   :  { %4180 = vmatpush.bf16.msra.mxu0 %v6414_v53 }
 0x3f2   :  { %4142 = vmatpush.bf16.msrb.mxu1 %v6522_v34 }
 0x3f3   :  { %4172 = vmatpush.bf16.msrb.mxu3 %v6206_v35  ;;  %v7175_v35 = vld [vmem:[#allocation12 + $0x38] sm:$0xff] }
 0x3f4   :  { %4181 = vmatpush.bf16.msra.mxu0 %v6398_v8  ;;  %4637 = vmatpush.bf16.msra.mxu2 %v7175_v35 }
 0x3f5   :  { %4095 = vmatmul.bf16.vlgmr.msra.gmra.mxu1 %v7889_v49 }
 0x3f6   :  { %4143 = vmatpush.bf16.msrb.mxu1 %v6506_v43  ;;  %4173 = vmatmul.bf16.vlgmr.msrb.gmra.mxu3 %v7865_v46  ;;  %v6334_v46 = vor.u32 %v7105_v28, %v6331_v10  ;;  %v7173_v43 = vld [vmem:[#allocation12 + $0x28] sm:$0xff]  ;;  %v7183_v28 = vld [vmem:[#allocation12 + $0x78] sm:$0xff] }
 0x3f7   :  { %4650 = vmatpush.bf16.msra.mxu3 %v7183_v28 }
 0x3f8   :  { %4182 = vmatpush.bf16.msra.mxu0 %v6382_v41 }
 0x3fa   :  { %4144 = vmatpush.bf16.msrb.mxu1 %v6490_v37 }
 0x3fb   :  { %4651 = vmatpush.bf16.msra.mxu3 %v7182_v45 }
 0x3fc   :  { %4183 = vmatpush.bf16.msra.mxu0 %v6366_v38  ;;  %v7172_v38 = vld [vmem:[#allocation12 + $0x20] sm:$0xff] }
 0x3fe   :  { %4145 = vmatpush.bf16.msrb.mxu1 %v6474_v47 }
 0x3ff   :  { %4652 = vmatpush.bf16.msra.mxu3 %v7181_v1 }
 0x400   :  { %4184 = vmatpush.bf16.msra.mxu0 %v6350_v22 }
 0x402   :  { %4146 = vmatpush.bf16.msrb.mxu1 %v6458_v39 }
 0x404   :  { %4185 = vmatpush.bf16.msra.mxu0 %v6334_v46 }
 0x405   :  { %4147 = vmatmul.bf16.vlgmr.msrb.gmra.mxu1 %v7889_v49 }
 0x406   :  { %4191 = vmatpush.bf16.msra.mxu1 %v6574_v4  ;;  %v7170_v4 = vld [vmem:[#allocation12 + $0x10] sm:$0xff] }
 0x407   :  { %4186 = vmatmul.bf16.vlgmr.msra.gmra.mxu0 %v7877_v42  ;;  %v6459_v42 = vld [vmem:[#allocation11 + $0x318] sm:$0xf0] }
 0x408   :  { %v6462_v20 = vor.u32 %v7137_v18, %v6459_v42  ;;  %v7168_v18 = vld [vmem:[#allocation12] sm:$0xff] }
 0x409   :  { %v7180_v42 = vld [vmem:[#allocation12 + $0x60] sm:$0xff] }
 0x40a   :  { %4192 = vmatpush.bf16.msra.mxu1 %v6558_v60  ;;  %4653 = vmatpush.bf16.msra.mxu3 %v7180_v42 }
 0x40e   :  { %4193 = vmatpush.bf16.msra.mxu1 %v6542_v26 }
 0x412   :  { %4194 = vmatpush.bf16.msra.mxu1 %v6526_v62 }
 0x416   :  { %4195 = vmatpush.bf16.msra.mxu1 %v6510_v7 }
 0x41a   :  { %4196 = vmatpush.bf16.msra.mxu1 %v6494_v16 }
 0x41e   :  { %4197 = vmatpush.bf16.msra.mxu1 %v6478_v58 }
 0x422   :  { %4198 = vmatpush.bf16.msra.mxu1 %v6462_v20 }
 0x425   :  { %4199 = vmatmul.bf16.vlgmr.msra.gmra.mxu1 %v7889_v49  ;;  %v7174_v49 = vld [vmem:[#allocation12 + $0x30] sm:$0xff] }
 0x426   :  { %4638 = vmatpush.bf16.msra.mxu2 %v7174_v49  ;;  %v7178_v49 = vld [vmem:[#allocation12 + $0x50] sm:$0xff] }
 0x428   :  { %v4005_v14 = vpop.f32.mrf.mxu2 }
 0x42a   :  { %4639 = vmatpush.bf16.msra.mxu2 %v7173_v43 }
 0x42e   :  { %4640 = vmatpush.bf16.msra.mxu2 %v7172_v38 }
 0x430   :  { %v4007_v19 = vpop.f32.mrf.mxu2 }
 0x432   :  { %4641 = vmatpush.bf16.msra.mxu2 %v7171_v23 }
 0x436   :  { %4642 = vmatpush.bf16.msra.mxu2 %v7170_v4  ;;  %v7945_v4 = vld [vmem:[%s7998_s10] ss:$2 sm:$0xf] }
 0x438   :  { %v4018_v56 = vpop.f32.mrf.mxu3  ;;  %v4057_v52 = vpop.f32.mrf.mxu2 }
 0x439   :  { %v4019_v5 = vadd.f32 %v4018_v56, %v4005_v14 }
 0x43a   :  { %4643 = vmatpush.bf16.msra.mxu2 %v7169_v0 }
 0x43e   :  { %4644 = vmatpush.bf16.msra.mxu2 %v7168_v18 }
 0x440   :  { %v4020_v44 = vpop.f32.mrf.mxu3  ;;  %v4059_v53 = vpop.f32.mrf.mxu2 }
 0x443   :  { %v4031_v63 = vpop.f32.mrf.mxu0 }
 0x444   :  { %v4032_v36 = vadd.f32 %v4031_v63, %v4019_v5  ;;  %v7190_v5 = vld [vmem:[#allocation12 + $0xb0] sm:$0xff] }
 0x448   :  { %v4070_v51 = vpop.f32.mrf.mxu3  ;;  %v7899_v32 = vpop.f32.mrf.mxu2 }
 0x449   :  { %v4071_v59 = vadd.f32 %v4070_v51, %v4057_v52 }
 0x44b   :  { %v4033_v30 = vpop.f32.mrf.mxu0 }
 0x44c   :  { %v7179_v30 = vld [vmem:[#allocation12 + $0x58] sm:$0xff] }
 0x44d   :  { %4654 = vmatpush.bf16.msra.mxu3 %v7179_v30 }
 0x450   :  { %v4072_v33 = vpop.f32.mrf.mxu3  ;;  %v4111_v31 = vpop.f32.mrf.mxu2 }
 0x451   :  { %v7191_v33 = vld [vmem:[#allocation12 + $0xb8] sm:$0xff]  ;;  %4655 = vmatpush.bf16.msra.mxu3 %v7178_v49 }
 0x452   :  { %4663 = vmatpush.bf16.msrb.mxu0 %v7191_v33 }
 0x454   :  { %v4083_v34 = vpop.f32.mrf.mxu0 }
 0x455   :  { %v4084_v26 = vadd.f32 %v4083_v34, %v4071_v59 }
 0x456   :  { %4664 = vmatpush.bf16.msrb.mxu0 %v7190_v5 }
 0x459   :  { %v7901_v8 = vpop.f32.mrf.mxu3 }
 0x45c   :  { %v4085_v50 = vpop.f32.mrf.mxu0 }
 0x461   :  { %v4124_v24 = vpop.f32.mrf.mxu3 }
 0x462   :  { %v4044_v25 = vpop.f32.mrf.mxu1 }
 0x463   :  { %v7903_v41 = vadd.f32 %v4044_v25, %v4032_v36  ;;  %v4123_v36 = vadd.f32 %v7901_v8, %v7899_v32 }
 0x464   :  { %v7909_v37 = vpop.f32.mrf.mxu0 }
 0x465   :  { %v4204_v15 = vsel %vm3046_vm4, %v7903_v41, 0.0  ;;  %v4232_v6 = vmul.f32 %v7903_v41, %v7903_v41  ;;  %v4136_v24 = vadd.f32 %v7909_v37, %v4123_v36 }
 0x466   :  { %v4205_v12 = vrot.slane %v4204_v15, 4 }
 0x467   :  { %v4236_v40 = vsel %vm3046_vm4, %v4232_v6, 0.0 }
 0x468   :  { %v4206_v9 = vadd.f32 %v4205_v12, %v4204_v15  ;;  %v4237_v11 = vrot.slane %v4236_v40, 4  ;;  %v7912_v13 = vpop.f32.mrf.mxu2 }
 0x46a   :  { %v4207_v47 = vrot.slane %v4206_v9, 2  ;;  %v4238_v22 = vadd.f32 %v4237_v11, %v4236_v40  ;;  %v4046_v3 = vpop.f32.mrf.mxu1  ;;  %v7189_v11 = vld [vmem:[#allocation12 + $0xa8] sm:$0xff] }
 0x46b   :  { %4665 = vmatpush.bf16.msrb.mxu0 %v7189_v11 }
 0x46c   :  { %v4208_v10 = vadd.f32 %v4207_v47, %v4206_v9  ;;  %v4239_v21 = vrot.slane %v4238_v22, 2  ;;  %v4137_v46 = vpop.f32.mrf.mxu0  ;;  %v7177_v9 = vld [vmem:[#allocation12 + $0x48] sm:$0xff] }
 0x46d   :  { %4656 = vmatpush.bf16.msra.mxu3 %v7177_v9  ;;  %v4331_v9 = vperm.slane %v7945_v4, 1 }
 0x46e   :  { %v4209_v54 = vrot.slane %v4208_v10, 1  ;;  %v4240_v39 = vadd.f32 %v4239_v21, %v4238_v22 }
 0x470   :  { %v4210_v60 = vadd.f32 %v4209_v54, %v4208_v10  ;;  %v4241_v61 = vrot.slane %v4240_v39, 1  ;;  %v4163_v27 = vpop.f32.mrf.mxu2  ;;  %v7176_v54 = vld [vmem:[#allocation12 + $0x40] sm:$0xff] }
 0x471   :  { %4657 = vmatpush.bf16.msra.mxu3 %v7176_v54 }
 0x472   :  { %v4242_v57 = vadd.f32 %v4241_v61, %v4240_v39  ;;  %v7914_v55 = vmul.f32 0.5, %v4210_v60  ;;  %v4096_v62 = vpop.f32.mrf.mxu1  ;;  %v7188_v39 = vld [vmem:[#allocation12 + $0xa0] sm:$0xff] }
 0x473   :  { %v7916_v7 = vadd.f32 %v4096_v62, %v4084_v26  ;;  %4666 = vmatpush.bf16.msrb.mxu0 %v7188_v39  ;;  %v4330_v26 = vperm.slane %v7945_v4, 0 }
 0x474   :  { %v4268_v48 = vmul.f32 0.5, %v4242_v57  ;;  %v4272_v29 = vmul.f32 %v7914_v55, %v7914_v55 }
 0x475   :  { %v4211_v16 = vsel %vm3046_vm4, %v7916_v7, 0.0  ;;  %v4233_v17 = vmul.f32 %v7916_v7, %v7916_v7 }
 0x476   :  { %v4276_v2 = vsub.f32 %v4268_v48, %v4272_v29  ;;  %v4212_v58 = vrot.slane %v4211_v16, 4  ;;  %v7187_v48 = vld [vmem:[#allocation12 + $0x98] sm:$0xff] }
 0x477   :  { %v4243_v20 = vsel %vm3046_vm4, %v4233_v17, 0.0  ;;  %v7952_v17 = vld [vmem:[%s7998_s10 + $0x1] ss:$2 sm:$0xf]  ;;  %4667 = vmatpush.bf16.msrb.mxu0 %v7187_v48 }
 0x478   :  { %v4280_v14 = vmax.f32 %v4276_v2, 0.0  ;;  %v4213_v19 = vadd.f32 %v4212_v58, %v4211_v16  ;;  %v4244_v56 = vrot.slane %v4243_v20, 4 }
 0x479   :  { %v7925_v52 = vpop.f32.mrf.mxu3 }
 0x47a   :  { %v4284_v44 = vadd.f32 1e-05, %v4280_v14  ;;  %v4214_v53 = vrot.slane %v4213_v19, 2  ;;  %v4245_v63 = vadd.f32 %v4244_v56, %v4243_v20  ;;  %v4098_v51 = vpop.f32.mrf.mxu1  ;;  %v4357_v56 = vperm.slane %v7952_v17, 0 }
 0x47c   :  { %7235 = vrsqrt.f32 %v4284_v44  ;;  %v4215_v31 = vadd.f32 %v4214_v53, %v4213_v19  ;;  %v4246_v34 = vrot.slane %v4245_v63, 2  ;;  %vm4294_vm2 = vweird.f32 %v4284_v44  ;;  %v7186_v19 = vld [vmem:[#allocation12 + $0x90] sm:$0xff] }
 0x47d   :  { %4668 = vmatpush.bf16.msrb.mxu0 %v7186_v19  ;;  %v7194_v19 = vld [vmem:[#allocation12 + $0xd0] sm:$0xff] }
 0x47e   :  { %v4216_v35 = vrot.slane %v4215_v31, 1  ;;  %v4247_v50 = vadd.f32 %v4246_v34, %v4245_v63 }
 0x480   :  { %v4217_v25 = vadd.f32 %v4216_v35, %v4215_v31  ;;  %v4248_v43 = vrot.slane %v4247_v50, 1  ;;  %v7185_v35 = vld [vmem:[#allocation12 + $0x88] sm:$0xff] }
 0x481   :  { %v4176_v15 = vpop.f32.mrf.mxu3  ;;  %4669 = vmatpush.bf16.msrb.mxu0 %v7185_v35 }
 0x482   :  { %v7236_v6 = vpop.eup %7235  ;;  %v4249_v12 = vadd.f32 %v4248_v43, %v4247_v50  ;;  %v7930_v38 = vmul.f32 0.5, %v4217_v25  ;;  %v4148_v40 = vpop.f32.mrf.mxu1 }
 0x483   :  { %v4289_v47 = vmul.f32 %v7236_v6, %v4284_v44  ;;  %v7932_v22 = vadd.f32 %v4148_v40, %v4136_v24  ;;  %vm4295_vm1 = vweird.f32 %v7236_v6  ;;  %v4342_v44 = vsub.f32 %v7903_v41, %v7914_v55  ;;  %v7184_v55 = vld [vmem:[#allocation12 + $0x80] sm:$0xff]  ;;  %v7199_v24 = vld [vmem:[#allocation12 + $0xf8] sm:$0xff] }
 0x484   :  { %v7934_v3 = vpop.f32.mrf.mxu0  ;;  %v4269_v32 = vmul.f32 0.5, %v4249_v12  ;;  %v4273_v8 = vmul.f32 %v7930_v38, %v7930_v38  ;;  %vm4296_vm3 = vmor %vm4294_vm2, %vm4295_vm1  ;;  %4676 = vmatpush.bf16.msrb.mxu1 %v7199_v24  ;;  %v4343_v54 = vsub.f32 %v7916_v7, %v7930_v38 }
 0x485   :  { %v4290_v37 = vmul.f32 %v7236_v6, %v4289_v47  ;;  %v4218_v23 = vsel %vm3046_vm4, %v7932_v22, 0.0  ;;  %v4234_v28 = vmul.f32 %v7932_v22, %v7932_v22  ;;  %4670 = vmatpush.bf16.msrb.mxu0 %v7184_v55  ;;  %v7198_v47 = vld [vmem:[#allocation12 + $0xf0] sm:$0xff]  ;;  %v7192_v55 = vld [vmem:[#allocation12 + $0xc0] sm:$0xff] }
 0x486   :  { %v4277_v10 = vsub.f32 %v4269_v32, %v4273_v8  ;;  %v4219_v21 = vrot.slane %v4218_v23, 4  ;;  %v4175_v8 = vadd.f32 %v7925_v52, %v7912_v13 }
 0x487   :  { %v4291_v46 = vmul.f32 0.5, %v4290_v37  ;;  %v4250_v45 = vsel %vm3046_vm4, %v4234_v28, 0.0 }
 0x488   :  { %v4281_v59 = vmax.f32 %v4277_v10, 0.0  ;;  %v4220_v60 = vadd.f32 %v4219_v21, %v4218_v23  ;;  %v4251_v61 = vrot.slane %v4250_v45, 4  ;;  %4677 = vmatpush.bf16.msrb.mxu1 %v7198_v47  ;;  %v4188_v28 = vadd.f32 %v7934_v3, %v4175_v8  ;;  %v7197_v10 = vld [vmem:[#allocation12 + $0xe8] sm:$0xff]  ;;  %v7196_v3 = vld [vmem:[#allocation12 + $0xe0] sm:$0xff] }
 0x489   :  { %v4292_v27 = vsub.f32 1.5, %v4291_v46  ;;  %v4358_v46 = vperm.slane %v7952_v17, 1  ;;  %v4333_v8 = vperm.slane %v7945_v4, 3 }
 0x48a   :  { %v4285_v57 = vadd.f32 1e-05, %v4281_v59  ;;  %v4221_v62 = vrot.slane %v4220_v60, 2  ;;  %v4252_v0 = vadd.f32 %v4251_v61, %v4250_v45  ;;  %v4150_v1 = vpop.f32.mrf.mxu1 }
 0x48b   :  { %v4293_v29 = vmul.f32 %v7236_v6, %v4292_v27  ;;  %v7195_v1 = vld [vmem:[#allocation12 + $0xd8] sm:$0xff] }
 0x48c   :  { %v4189_v16 = vpop.f32.mrf.mxu0  ;;  %7237 = vrsqrt.f32 %v4285_v57  ;;  %v4222_v2 = vadd.f32 %v4221_v62, %v4220_v60  ;;  %v4253_v58 = vrot.slane %v4252_v0, 2  ;;  %vm4304_vm6 = vweird.f32 %v4285_v57  ;;  %4678 = vmatpush.bf16.msrb.mxu1 %v7197_v10 }
 0x48d   :  { %v4297_v18 = vsel %vm4296_vm3, %v7236_v6, %v4293_v29 }
 0x48e   :  { %v4338_v42 = vmul.f32 %v4330_v26, %v4297_v18  ;;  %v4223_v20 = vrot.slane %v4222_v2, 1  ;;  %v4254_v14 = vadd.f32 %v4253_v58, %v4252_v0 }
 0x490   :  { %v4346_v53 = vperm.slane %v4338_v42, 0  ;;  %v4224_v63 = vadd.f32 %v4223_v20, %v4222_v2  ;;  %v4255_v51 = vrot.slane %v4254_v14, 1  ;;  %4679 = vmatpush.bf16.msrb.mxu1 %v7196_v3 }
 0x492   :  { %v7238_v30 = vpop.eup %7237  ;;  %v4350_v33 = vmul.f32 %v4346_v53, %v4342_v44  ;;  %v4256_v31 = vadd.f32 %v4255_v51, %v4254_v14  ;;  %v7957_v34 = vmul.f32 0.5, %v4224_v63  ;;  %v4332_v14 = vperm.slane %v7945_v4, 2 }
 0x493   :  { %v4299_v50 = vmul.f32 %v7238_v30, %v4285_v57  ;;  %vm4305_vm5 = vweird.f32 %v7238_v30 }
 0x494   :  { %v4365_v49 = vadd.f32 %v4357_v56, %v4350_v33  ;;  %v4270_v5 = vmul.f32 0.5, %v4256_v31  ;;  %v4274_v36 = vmul.f32 %v7957_v34, %v7957_v34  ;;  %vm4306_vm7 = vmor %vm4304_vm6, %vm4305_vm5  ;;  %4680 = vmatpush.bf16.msrb.mxu1 %v7195_v1  ;;  %v7193_v31 = vld [vmem:[#allocation12 + $0xc8] sm:$0xff] }
 0x495   :  { %v4300_v25 = vmul.f32 %v7238_v30, %v4299_v50 }
 0x496   :  { %v4369_v43 = vmax.f32 %v4365_v49, 0.0  ;;  %v4278_v41 = vsub.f32 %v4270_v5, %v4274_v36  ;;  %v4344_v49 = vsub.f32 %v7932_v22, %v7957_v34  ;;  %v4359_v36 = vperm.slane %v7952_v17, 2 }
 0x497   :  { %v4301_v15 = vmul.f32 0.5, %v4300_v25 }
 0x498   :  { %v4373_v6 = vpack.c.bf16 %v4369_v43, %v4369_v43  ;;  %v4282_v12 = vmax.f32 %v4278_v41, 0.0  ;;  %4681 = vmatpush.bf16.msrb.mxu1 %v7194_v19 }
 0x499   :  { %v4302_v40 = vsub.f32 1.5, %v4301_v15 }
 0x49a   :  { %v4286_v11 = vadd.f32 1e-05, %v4282_v12  ;;  %4645 = vmatmul.bf16.vlgmr.msra.gmra.mxu2 %v4373_v6 }
 0x49b   :  { %v4303_v32 = vmul.f32 %v7238_v30, %v4302_v40 }
 0x49c   :  { %7239 = vrsqrt.f32 %v4286_v11  ;;  %4682 = vmatpush.bf16.msrb.mxu1 %v7193_v31 }
 0x49d   :  { %v4307_v37 = vsel %vm4306_vm7, %v7238_v30, %v4303_v32 }
 0x49e   :  { %v4339_v23 = vmul.f32 %v4331_v9, %v4307_v37 }
 0x4a0   :  { %v4347_v39 = vperm.slane %v4339_v23, 0  ;;  %4683 = vmatpush.bf16.msrb.mxu1 %v7192_v55 }
 0x4a2   :  { %v4200_v21 = vpop.f32.mrf.mxu1  ;;  %v7240_v59 = vpop.eup %7239  ;;  %v4351_v60 = vmul.f32 %v4347_v39, %v4343_v54  ;;  %v4360_v54 = vperm.slane %v7952_v17, 3 }
 0x4a3   :  { %v7968_v45 = vadd.f32 %v4200_v21, %v4188_v28  ;;  %v4309_v61 = vmul.f32 %v7240_v59, %v4286_v11  ;;  %vm4315_vm8 = vweird.f32 %v7240_v59 }
 0x4a4   :  { %v4366_v26 = vadd.f32 %v4358_v46, %v4351_v60 }
 0x4a5   :  { %v4225_v13 = vsel %vm3046_vm4, %v7968_v45, 0.0  ;;  %v4235_v52 = vmul.f32 %v7968_v45, %v7968_v45  ;;  %v4310_v38 = vmul.f32 %v7240_v59, %v4309_v61 }
 0x4a6   :  { %v4226_v27 = vrot.slane %v4225_v13, 4  ;;  %v4370_v0 = vmax.f32 %v4366_v26, 0.0  ;;  %v7214_v26 = vld [vmem:[%s8000_s12] ss:$0 sm:$0xff] }
 0x4a7   :  { %v4257_v7 = vsel %vm3046_vm4, %v4235_v52, 0.0  ;;  %v4311_v48 = vmul.f32 0.5, %v4310_v38  ;;  %vm4314_vm4 = vweird.f32 %v4286_v11 }
 0x4a8   :  { %v4227_v57 = vadd.f32 %v4226_v27, %v4225_v13  ;;  %v4258_v62 = vrot.slane %v4257_v7, 4  ;;  %v4374_v58 = vpack.c.bf16 %v4370_v0, %v4370_v0  ;;  %vm4316_vm9 = vmor %vm4314_vm4, %vm4315_vm8 }
 0x4a9   :  { %v4312_v18 = vsub.f32 1.5, %v4311_v48 }
 0x4aa   :  { %v4228_v29 = vrot.slane %v4227_v57, 2  ;;  %v4259_v16 = vadd.f32 %v4258_v62, %v4257_v7  ;;  %v4202_v2 = vpop.f32.mrf.mxu1  ;;  %4658 = vmatmul.bf16.vlgmr.msra.gmra.mxu3 %v4374_v58 }
 0x4ab   :  { %v4313_v56 = vmul.f32 %v7240_v59, %v4312_v18 }
 0x4ac   :  { %v4229_v42 = vadd.f32 %v4228_v29, %v4227_v57  ;;  %v4260_v20 = vrot.slane %v4259_v16, 2 }
 0x4ad   :  { %v4317_v63 = vsel %vm4316_vm9, %v7240_v59, %v4313_v56 }
 0x4ae   :  { %v4230_v44 = vrot.slane %v4229_v42, 1  ;;  %v4261_v53 = vadd.f32 %v4260_v20, %v4259_v16  ;;  %v4340_v33 = vmul.f32 %v4332_v14, %v4317_v63 }
 0x4b0   :  { %v4231_v51 = vadd.f32 %v4230_v44, %v4229_v42  ;;  %v4262_v30 = vrot.slane %v4261_v53, 1  ;;  %v4348_v5 = vperm.slane %v4340_v33, 0 }
 0x4b2   :  { %v4263_v35 = vadd.f32 %v4262_v30, %v4261_v53  ;;  %v4267_v50 = vmul.f32 0.5, %v4231_v51  ;;  %v4352_v41 = vmul.f32 %v4348_v5, %v4344_v49 }
 0x4b4   :  { %v4271_v25 = vmul.f32 0.5, %v4263_v35  ;;  %v4275_v43 = vmul.f32 %v4267_v50, %v4267_v50  ;;  %v4367_v15 = vadd.f32 %v4359_v36, %v4352_v41  ;;  %v4345_v10 = vsub.f32 %v7968_v45, %v4267_v50 }
 0x4b6   :  { %v4279_v24 = vsub.f32 %v4271_v25, %v4275_v43  ;;  %v4371_v12 = vmax.f32 %v4367_v15, 0.0 }
 0x4b8   :  { %v4283_v6 = vmax.f32 %v4279_v24, 0.0  ;;  %v4375_v9 = vpack.c.bf16 %v4371_v12, %v4371_v12 }
 0x4ba   :  { %v4287_v40 = vadd.f32 1e-05, %v4283_v6  ;;  %4671 = vmatmul.bf16.vlgmr.msrb.gmra.mxu0 %v4375_v9 }
 0x4bc   :  { %7241 = vrsqrt.f32 %v4287_v40  ;;  %vm4324_vm11 = vweird.f32 %v4287_v40 }
 0x4c2   :  { %v7242_v11 = vpop.eup %7241 }
 0x4c3   :  { %v4319_v47 = vmul.f32 %v7242_v11, %v4287_v40  ;;  %vm4325_vm10 = vweird.f32 %v7242_v11 }
 0x4c4   :  { %vm4326_vm12 = vmor %vm4324_vm11, %vm4325_vm10 }
 0x4c5   :  { %v4320_v22 = vmul.f32 %v7242_v11, %v4319_v47 }
 0x4c7   :  { %v4321_v34 = vmul.f32 0.5, %v4320_v22 }
 0x4c9   :  { %v4322_v32 = vsub.f32 1.5, %v4321_v34 }
 0x4cb   :  { %v4323_v37 = vmul.f32 %v7242_v11, %v4322_v32 }
 0x4cd   :  { %v4327_v23 = vsel %vm4326_vm12, %v7242_v11, %v4323_v37 }
 0x4ce   :  { %v4341_v28 = vmul.f32 %v4333_v8, %v4327_v23 }
 0x4d0   :  { %v4349_v21 = vperm.slane %v4341_v28, 0 }
 0x4d2   :  { %v4353_v39 = vmul.f32 %v4349_v21, %v4345_v10 }
 0x4d4   :  { %v4368_v46 = vadd.f32 %v4360_v54, %v4353_v39 }
 0x4d6   :  { %v4372_v59 = vmax.f32 %v4368_v46, 0.0 }
 0x4d8   :  { %v4376_v60 = vpack.c.bf16 %v4372_v59, %v4372_v59 }
 0x4da   :  { %4684 = vmatmul.bf16.vlgmr.msrb.gmra.mxu1 %v4376_v60 }
 0x51d   :  { %v4646_v13 = vpop.f32.mrf.mxu2 }
 0x51e   :  { %v4647_v7 = vadd.f32 %v7214_v26, %v4646_v13 }
 0x525   :  { %v4648_v52 = vpop.f32.mrf.mxu2 }
 0x52d   :  { %v4659_v3 = vpop.f32.mrf.mxu3 }
 0x52e   :  { %v4660_v45 = vadd.f32 %v4659_v3, %v4647_v7 }
 0x535   :  { %v4661_v61 = vpop.f32.mrf.mxu3 }
 0x537   :  { %v4672_v4 = vpop.f32.mrf.mxu0 }
 0x538   :  { %v4673_v38 = vadd.f32 %v4672_v4, %v4660_v45 }
 0x53f   :  { %v4674_v27 = vpop.f32.mrf.mxu0 }
 0x557   :  { %v4685_v57 = vpop.f32.mrf.mxu1 }
 0x558   :  { %v4686_v17 = vadd.f32 %v4685_v57, %v4673_v38 }
 0x55a   :  { %v4689_v62 = vsub.f32 0.0, %v4686_v17 }
 0x55c   :  { %v4690_v0 = vmul.f32 1.442695, %v4689_v62 }
 0x55e   :  { %7243 = vpow2.f32 %v4690_v0 }
 0x55f   :  { %v4687_v1 = vpop.f32.mrf.mxu1 }
 0x564   :  { %v7244_v48 = vpop.eup %7243 }
 0x565   :  { %v4692_v29 = vadd.f32 1.0, %v7244_v48 }
 0x567   :  { %7245 = vrcp.f32 %v4692_v29 }
 0x56d   :  { %v7246_v16 = vpop.eup %7245 }
 0x56e   :  { %4694 = vst [vmem:[#allocation14] sm:$0x3] %v7246_v16 }
 0x56f   :  { %4705 = dma.vmem_to_hbm [thread:$0]  %s4701_s9, 32, %s4703_s17, [#allocation5]  }
 0x570   :  { %7423 = dma.done.wait [#allocation5], 32  }
 0x571   :  { %7424 = vsyncadd [#allocation5], 4294967264 }
 0x572   :  { %4710 = vsyncpa [#allocation4], 1 }
 0x573   :  { %4711 = vsyncpa [#allocation7], 1 }
 0x574   :  { %4712 = vsyncpa [#allocation10], 1 }
 0x575   :  { %4713 = vsyncpa [#allocation13], 1 }
 0x576   :  { %4714 = vsyncpa [#allocation5], 1 }

</bundles_post_ra>
